<compile_context>
chip_gen: v6e
topology: v6e:2x2x1
jax: 0.10.0
libtpu: 0.0.40
codegen_flags: <defaults>
</compile_context>

<pallas_src>
import jax
import jax.numpy as jnp
from jax.experimental import pallas as pl
from jax.experimental.pallas import tpu as pltpu


def _make_resblock_kernel(H, W):
    """Build the fused residual-block kernel for a fixed spatial size."""
    HW = H * W

    def kernel(x_ref, w1_ref, b1_ref, w2_ref, b2_ref, m_ref, o_ref):
        # x_ref : (1, C, H*W)   input image, channels on sublanes
        # w*_ref: (9, C, C)     conv weights, tap-major (t = ky*3 + kx)
        # b*_ref: (C, 1)        bias
        # m_ref : (9, H*W)      per-tap validity masks (1.0 inside image)
        # o_ref : (1, C, H*W)   output image
        f32 = jnp.float32
        x = x_ref[0].astype(f32)                               # (C, H*W)

        def conv3x3(w_ref, b_ref, img):
            """img: (C, H*W) f32 -> conv3x3(img) + bias as (C, H*W) f32."""
            acc = None
            for dy in (-1, 0, 1):
                for dx in (-1, 0, 1):
                    t = (dy + 1) * 3 + (dx + 1)
                    # Output pixel p reads input pixel p + dy*W + dx, i.e. a
                    # flat roll by -(dy*W + dx); the roll wraps across row /
                    # image boundaries, so mask those positions to zero.
                    shift = (-(dy * W + dx)) % HW
                    tap = img if shift == 0 else pltpu.roll(img, shift, axis=1)
                    if t != 4:                                  # center needs no mask
                        tap = tap * m_ref[t:t + 1, :]           # sublane bcast
                    part = jnp.dot(w_ref[t].astype(f32), tap,
                                   preferred_element_type=f32)  # (C, H*W)
                    acc = part if acc is None else acc + part
            return acc + b_ref[...].astype(f32)

        h = jnp.maximum(conv3x3(w1_ref, b1_ref, x), 0.0)        # relu(conv1)
        y = conv3x3(w2_ref, b2_ref, h) + x                      # conv2 + res
        o_ref[0] = y.astype(o_ref.dtype)

    return kernel


@jax.jit
def residual_block_forward(x_nchw, params):
    """ResidualBlock.forward: x + conv2(relu(conv1(x))). Input/output NCHW."""
    N, C, H, W = x_nchw.shape
    HW = H * W

    # NCHW -> (N, C, H*W): contiguous reshape (free). Spatial goes on lanes.
    # Best perf when C % 8 == 0 and H*W % 128 == 0 (lane-dense, unmasked vst);
    # other sizes are still correct (blocks equal full array dims).
    x2 = x_nchw.reshape(N, C, HW)

    # (Cout, Cin, kH, kW) -> (kH, kW, Cout, Cin) -> (9, Cout, Cin): tap index
    # t = ky*3 + kx matches the kernel's (dy+1)*3 + (dx+1).
    w1 = jnp.transpose(params["w1"], (2, 3, 0, 1)).reshape(9, C, C)
    w2 = jnp.transpose(params["w2"], (2, 3, 0, 1)).reshape(9, C, C)
    b1 = params["b1"].reshape(C, 1)
    b2 = params["b2"].reshape(C, 1)

    # Per-tap validity masks (hoisted out of the kernel): tap (dy, dx) at
    # output pixel (h, w) reads (h+dy, w+dx); zero it when that falls outside
    # the image (the in-kernel flat roll would otherwise wrap around).
    hh = jnp.arange(H, dtype=jnp.int32)[:, None]
    ww = jnp.arange(W, dtype=jnp.int32)[None, :]
    mask_rows = []
    for dy in (-1, 0, 1):
        for dx in (-1, 0, 1):
            ok_h = (hh + dy >= 0) & (hh + dy < H)
            ok_w = (ww + dx >= 0) & (ww + dx < W)
            mask_rows.append((ok_h & ok_w).astype(jnp.float32).reshape(HW))
    masks = jnp.stack(mask_rows, axis=0)                        # (9, H*W)

    out = pl.pallas_call(
        _make_resblock_kernel(H, W),
        out_shape=jax.ShapeDtypeStruct((N, C, HW), x_nchw.dtype),
        grid_spec=pltpu.PrefetchScalarGridSpec(
            num_scalar_prefetch=0,
            grid=(N,),
            in_specs=[
                pl.BlockSpec((1, C, HW), lambda n: (n, 0, 0)),
                pl.BlockSpec((9, C, C), lambda n: (0, 0, 0)),
                pl.BlockSpec((C, 1), lambda n: (0, 0)),
                pl.BlockSpec((9, C, C), lambda n: (0, 0, 0)),
                pl.BlockSpec((C, 1), lambda n: (0, 0)),
                pl.BlockSpec((9, HW), lambda n: (0, 0)),
            ],
            out_specs=pl.BlockSpec((1, C, HW), lambda n: (n, 0, 0)),
        ),
        compiler_params=pltpu.CompilerParams(
            dimension_semantics=("parallel",)),
    )(x2, w1, b1, w2, b2, masks)

    return out.reshape(N, C, H, W)


def init_residual_block_params(key, nf, scale=0.1, dtype=jnp.float32):
    """kaiming_normal(fan_in) * scale init, zero bias (PyTorch layout)."""
    k1, k2 = jax.random.split(key)
    fan_in = nf * 3 * 3
    std = (2.0 / fan_in) ** 0.5
    w1 = jax.random.normal(k1, (nf, nf, 3, 3), dtype) * std * scale
    w2 = jax.random.normal(k2, (nf, nf, 3, 3), dtype) * std * scale
    b1 = jnp.zeros((nf,), dtype)
    b2 = jnp.zeros((nf,), dtype)
    return {"w1": w1, "b1": b1, "w2": w2, "b2": b2}


def _reference_forward(x_nchw, params):
    """Pure-JAX reference (lax conv at highest precision) for a sanity check."""
    dn = jax.lax.conv_dimension_numbers(x_nchw.shape, params["w1"].shape,
                                        ("NCHW", "OIHW", "NCHW"))
    h = jax.lax.conv_general_dilated(x_nchw, params["w1"], (1, 1),
                                     ((1, 1), (1, 1)), dimension_numbers=dn,
                                     precision=jax.lax.Precision.HIGHEST)
    h = jnp.maximum(h + params["b1"][None, :, None, None], 0.0)
    o = jax.lax.conv_general_dilated(h, params["w2"], (1, 1),
                                     ((1, 1), (1, 1)), dimension_numbers=dn,
                                     precision=jax.lax.Precision.HIGHEST)
    o = o + params["b2"][None, :, None, None]
    return x_nchw + o


if __name__ == "__main__":
    key = jax.random.PRNGKey(0)
    kx, kp = jax.random.split(key)

    # nf=64 is the module's default; H*W = 256 keeps the lane axis dense.
    N, nf, H, W = 2, 64, 16, 16
    x = jax.random.normal(kx, (N, nf, H, W), jnp.float32)   # NCHW, like torch
    params = init_residual_block_params(kp, nf, scale=0.1)

    out = residual_block_forward(x, params)
    out = jax.block_until_ready(out)

    ref = _reference_forward(x, params)
    assert out.shape == x.shape and out.dtype == x.dtype
    # Tolerance accounts for MXU f32 matmul pass precision vs the
    # highest-precision XLA conv reference; stencil/mask bugs are >= 1e-1.
    assert jnp.allclose(out, ref, atol=5e-3, rtol=5e-3), "mismatch vs reference"

    print("KERNEL_OK")
</pallas_src>

<mosaic_0001>
module attributes {stable_mosaic.version = 11 : i64} {
  func.func @kernel(%arg0: i32, %arg1: memref<1x64x256xf32, #tpu.memory_space<vmem>>, %arg2: memref<9x64x64xf32, #tpu.memory_space<vmem>>, %arg3: memref<64x1xf32, #tpu.memory_space<vmem>>, %arg4: memref<9x64x64xf32, #tpu.memory_space<vmem>>, %arg5: memref<64x1xf32, #tpu.memory_space<vmem>>, %arg6: memref<9x256xf32, #tpu.memory_space<vmem>>, %arg7: memref<1x64x256xf32, #tpu.memory_space<vmem>>) attributes {dimension_semantics = [#tpu.dimension_semantics<parallel>], iteration_bounds = array<i64: 2>, scalar_prefetch = 0 : i64, scratch_operands = 0 : i64, tpu.core_type = #tpu.core_type<tc>, window_params = [{transform_indices = @transform_0, window_bounds = array<i64: 1, 64, 256>}, {pipeline_mode = #tpu.pipeline_mode<synchronous>, transform_indices = @transform_1, window_bounds = array<i64: 9, 64, 64>}, {pipeline_mode = #tpu.pipeline_mode<synchronous>, transform_indices = @transform_2, window_bounds = array<i64: 64, 1>}, {pipeline_mode = #tpu.pipeline_mode<synchronous>, transform_indices = @transform_3, window_bounds = array<i64: 9, 64, 64>}, {pipeline_mode = #tpu.pipeline_mode<synchronous>, transform_indices = @transform_4, window_bounds = array<i64: 64, 1>}, {pipeline_mode = #tpu.pipeline_mode<synchronous>, transform_indices = @transform_5, window_bounds = array<i64: 9, 256>}, {transform_indices = @transform_6, window_bounds = array<i64: 1, 64, 256>}]} {
    %c0 = arith.constant 0 : index
    %c0_0 = arith.constant 0 : index
    %c0_1 = arith.constant 0 : index
    %0 = vector.load %arg1[%c0, %c0_0, %c0_1] : memref<1x64x256xf32, #tpu.memory_space<vmem>>, vector<1x64x256xf32>
    %1 = vector.shape_cast %0 : vector<1x64x256xf32> to vector<64x256xf32>
    %c17_i32 = arith.constant 17 : i32
    %2 = tpu.dynamic_rotate %1 by %c17_i32 dim 1 : vector<64x256xf32>, i32 -> vector<64x256xf32>
    %c0_2 = arith.constant 0 : index
    %c0_3 = arith.constant 0 : index
    %3 = vector.load %arg6[%c0_2, %c0_3] : memref<9x256xf32, #tpu.memory_space<vmem>>, vector<1x256xf32>
    %4 = vector.broadcast %3 : vector<1x256xf32> to vector<64x256xf32>
    %5 = arith.mulf %2, %4 : vector<64x256xf32>
    %c0_4 = arith.constant 0 : index
    %c0_5 = arith.constant 0 : index
    %c0_6 = arith.constant 0 : index
    %6 = vector.load %arg2[%c0_4, %c0_5, %c0_6] : memref<9x64x64xf32, #tpu.memory_space<vmem>>, vector<1x64x64xf32>
    %7 = vector.shape_cast %6 : vector<1x64x64xf32> to vector<64x64xf32>
    %cst = arith.constant dense<0.000000e+00> : vector<64x256xf32>
    %8 = tpu.matmul %7, %5, %cst {dimension_numbers = #tpu.dot_dimension_numbers<[1], [0], [0], [1], [0, 0, 1, 1], [], []>} : vector<64x64xf32>, vector<64x256xf32>, vector<64x256xf32> -> vector<64x256xf32>
    %c16_i32 = arith.constant 16 : i32
    %9 = tpu.dynamic_rotate %1 by %c16_i32 dim 1 : vector<64x256xf32>, i32 -> vector<64x256xf32>
    %c1 = arith.constant 1 : index
    %c0_7 = arith.constant 0 : index
    %10 = vector.load %arg6[%c1, %c0_7] : memref<9x256xf32, #tpu.memory_space<vmem>>, vector<1x256xf32>
    %11 = vector.broadcast %10 : vector<1x256xf32> to vector<64x256xf32>
    %12 = arith.mulf %9, %11 : vector<64x256xf32>
    %c1_8 = arith.constant 1 : index
    %c0_9 = arith.constant 0 : index
    %c0_10 = arith.constant 0 : index
    %13 = vector.load %arg2[%c1_8, %c0_9, %c0_10] : memref<9x64x64xf32, #tpu.memory_space<vmem>>, vector<1x64x64xf32>
    %14 = vector.shape_cast %13 : vector<1x64x64xf32> to vector<64x64xf32>
    %cst_11 = arith.constant dense<0.000000e+00> : vector<64x256xf32>
    %15 = tpu.matmul %14, %12, %cst_11 {dimension_numbers = #tpu.dot_dimension_numbers<[1], [0], [0], [1], [0, 0, 1, 1], [], []>} : vector<64x64xf32>, vector<64x256xf32>, vector<64x256xf32> -> vector<64x256xf32>
    %16 = arith.addf %8, %15 : vector<64x256xf32>
    %c15_i32 = arith.constant 15 : i32
    %17 = tpu.dynamic_rotate %1 by %c15_i32 dim 1 : vector<64x256xf32>, i32 -> vector<64x256xf32>
    %c2 = arith.constant 2 : index
    %c0_12 = arith.constant 0 : index
    %18 = vector.load %arg6[%c2, %c0_12] : memref<9x256xf32, #tpu.memory_space<vmem>>, vector<1x256xf32>
    %19 = vector.broadcast %18 : vector<1x256xf32> to vector<64x256xf32>
    %20 = arith.mulf %17, %19 : vector<64x256xf32>
    %c2_13 = arith.constant 2 : index
    %c0_14 = arith.constant 0 : index
    %c0_15 = arith.constant 0 : index
    %21 = vector.load %arg2[%c2_13, %c0_14, %c0_15] : memref<9x64x64xf32, #tpu.memory_space<vmem>>, vector<1x64x64xf32>
    %22 = vector.shape_cast %21 : vector<1x64x64xf32> to vector<64x64xf32>
    %cst_16 = arith.constant dense<0.000000e+00> : vector<64x256xf32>
    %23 = tpu.matmul %22, %20, %cst_16 {dimension_numbers = #tpu.dot_dimension_numbers<[1], [0], [0], [1], [0, 0, 1, 1], [], []>} : vector<64x64xf32>, vector<64x256xf32>, vector<64x256xf32> -> vector<64x256xf32>
    %24 = arith.addf %16, %23 : vector<64x256xf32>
    %c1_i32 = arith.constant 1 : i32
    %25 = tpu.dynamic_rotate %1 by %c1_i32 dim 1 : vector<64x256xf32>, i32 -> vector<64x256xf32>
    %c3 = arith.constant 3 : index
    %c0_17 = arith.constant 0 : index
    %26 = vector.load %arg6[%c3, %c0_17] : memref<9x256xf32, #tpu.memory_space<vmem>>, vector<1x256xf32>
    %27 = vector.broadcast %26 : vector<1x256xf32> to vector<64x256xf32>
    %28 = arith.mulf %25, %27 : vector<64x256xf32>
    %c3_18 = arith.constant 3 : index
    %c0_19 = arith.constant 0 : index
    %c0_20 = arith.constant 0 : index
    %29 = vector.load %arg2[%c3_18, %c0_19, %c0_20] : memref<9x64x64xf32, #tpu.memory_space<vmem>>, vector<1x64x64xf32>
    %30 = vector.shape_cast %29 : vector<1x64x64xf32> to vector<64x64xf32>
    %cst_21 = arith.constant dense<0.000000e+00> : vector<64x256xf32>
    %31 = tpu.matmul %30, %28, %cst_21 {dimension_numbers = #tpu.dot_dimension_numbers<[1], [0], [0], [1], [0, 0, 1, 1], [], []>} : vector<64x64xf32>, vector<64x256xf32>, vector<64x256xf32> -> vector<64x256xf32>
    %32 = arith.addf %24, %31 : vector<64x256xf32>
    %c4 = arith.constant 4 : index
    %c0_22 = arith.constant 0 : index
    %c0_23 = arith.constant 0 : index
    %33 = vector.load %arg2[%c4, %c0_22, %c0_23] : memref<9x64x64xf32, #tpu.memory_space<vmem>>, vector<1x64x64xf32>
    %34 = vector.shape_cast %33 : vector<1x64x64xf32> to vector<64x64xf32>
    %cst_24 = arith.constant dense<0.000000e+00> : vector<64x256xf32>
    %35 = tpu.matmul %34, %1, %cst_24 {dimension_numbers = #tpu.dot_dimension_numbers<[1], [0], [0], [1], [0, 0, 1, 1], [], []>} : vector<64x64xf32>, vector<64x256xf32>, vector<64x256xf32> -> vector<64x256xf32>
    %36 = arith.addf %32, %35 : vector<64x256xf32>
    %c255_i32 = arith.constant 255 : i32
    %37 = tpu.dynamic_rotate %1 by %c255_i32 dim 1 : vector<64x256xf32>, i32 -> vector<64x256xf32>
    %c5 = arith.constant 5 : index
    %c0_25 = arith.constant 0 : index
    %38 = vector.load %arg6[%c5, %c0_25] : memref<9x256xf32, #tpu.memory_space<vmem>>, vector<1x256xf32>
    %39 = vector.broadcast %38 : vector<1x256xf32> to vector<64x256xf32>
    %40 = arith.mulf %37, %39 : vector<64x256xf32>
    %c5_26 = arith.constant 5 : index
    %c0_27 = arith.constant 0 : index
    %c0_28 = arith.constant 0 : index
    %41 = vector.load %arg2[%c5_26, %c0_27, %c0_28] : memref<9x64x64xf32, #tpu.memory_space<vmem>>, vector<1x64x64xf32>
    %42 = vector.shape_cast %41 : vector<1x64x64xf32> to vector<64x64xf32>
    %cst_29 = arith.constant dense<0.000000e+00> : vector<64x256xf32>
    %43 = tpu.matmul %42, %40, %cst_29 {dimension_numbers = #tpu.dot_dimension_numbers<[1], [0], [0], [1], [0, 0, 1, 1], [], []>} : vector<64x64xf32>, vector<64x256xf32>, vector<64x256xf32> -> vector<64x256xf32>
    %44 = arith.addf %36, %43 : vector<64x256xf32>
    %c241_i32 = arith.constant 241 : i32
    %45 = tpu.dynamic_rotate %1 by %c241_i32 dim 1 : vector<64x256xf32>, i32 -> vector<64x256xf32>
    %c6 = arith.constant 6 : index
    %c0_30 = arith.constant 0 : index
    %46 = vector.load %arg6[%c6, %c0_30] : memref<9x256xf32, #tpu.memory_space<vmem>>, vector<1x256xf32>
    %47 = vector.broadcast %46 : vector<1x256xf32> to vector<64x256xf32>
    %48 = arith.mulf %45, %47 : vector<64x256xf32>
    %c6_31 = arith.constant 6 : index
    %c0_32 = arith.constant 0 : index
    %c0_33 = arith.constant 0 : index
    %49 = vector.load %arg2[%c6_31, %c0_32, %c0_33] : memref<9x64x64xf32, #tpu.memory_space<vmem>>, vector<1x64x64xf32>
    %50 = vector.shape_cast %49 : vector<1x64x64xf32> to vector<64x64xf32>
    %cst_34 = arith.constant dense<0.000000e+00> : vector<64x256xf32>
    %51 = tpu.matmul %50, %48, %cst_34 {dimension_numbers = #tpu.dot_dimension_numbers<[1], [0], [0], [1], [0, 0, 1, 1], [], []>} : vector<64x64xf32>, vector<64x256xf32>, vector<64x256xf32> -> vector<64x256xf32>
    %52 = arith.addf %44, %51 : vector<64x256xf32>
    %c240_i32 = arith.constant 240 : i32
    %53 = tpu.dynamic_rotate %1 by %c240_i32 dim 1 : vector<64x256xf32>, i32 -> vector<64x256xf32>
    %c7 = arith.constant 7 : index
    %c0_35 = arith.constant 0 : index
    %54 = vector.load %arg6[%c7, %c0_35] : memref<9x256xf32, #tpu.memory_space<vmem>>, vector<1x256xf32>
    %55 = vector.broadcast %54 : vector<1x256xf32> to vector<64x256xf32>
    %56 = arith.mulf %53, %55 : vector<64x256xf32>
    %c7_36 = arith.constant 7 : index
    %c0_37 = arith.constant 0 : index
    %c0_38 = arith.constant 0 : index
    %57 = vector.load %arg2[%c7_36, %c0_37, %c0_38] : memref<9x64x64xf32, #tpu.memory_space<vmem>>, vector<1x64x64xf32>
    %58 = vector.shape_cast %57 : vector<1x64x64xf32> to vector<64x64xf32>
    %cst_39 = arith.constant dense<0.000000e+00> : vector<64x256xf32>
    %59 = tpu.matmul %58, %56, %cst_39 {dimension_numbers = #tpu.dot_dimension_numbers<[1], [0], [0], [1], [0, 0, 1, 1], [], []>} : vector<64x64xf32>, vector<64x256xf32>, vector<64x256xf32> -> vector<64x256xf32>
    %60 = arith.addf %52, %59 : vector<64x256xf32>
    %c239_i32 = arith.constant 239 : i32
    %61 = tpu.dynamic_rotate %1 by %c239_i32 dim 1 : vector<64x256xf32>, i32 -> vector<64x256xf32>
    %c8 = arith.constant 8 : index
    %c0_40 = arith.constant 0 : index
    %62 = vector.load %arg6[%c8, %c0_40] : memref<9x256xf32, #tpu.memory_space<vmem>>, vector<1x256xf32>
    %63 = vector.broadcast %62 : vector<1x256xf32> to vector<64x256xf32>
    %64 = arith.mulf %61, %63 : vector<64x256xf32>
    %c8_41 = arith.constant 8 : index
    %c0_42 = arith.constant 0 : index
    %c0_43 = arith.constant 0 : index
    %65 = vector.load %arg2[%c8_41, %c0_42, %c0_43] : memref<9x64x64xf32, #tpu.memory_space<vmem>>, vector<1x64x64xf32>
    %66 = vector.shape_cast %65 : vector<1x64x64xf32> to vector<64x64xf32>
    %cst_44 = arith.constant dense<0.000000e+00> : vector<64x256xf32>
    %67 = tpu.matmul %66, %64, %cst_44 {dimension_numbers = #tpu.dot_dimension_numbers<[1], [0], [0], [1], [0, 0, 1, 1], [], []>} : vector<64x64xf32>, vector<64x256xf32>, vector<64x256xf32> -> vector<64x256xf32>
    %68 = arith.addf %60, %67 : vector<64x256xf32>
    %c0_45 = arith.constant 0 : index
    %c0_46 = arith.constant 0 : index
    %69 = vector.load %arg3[%c0_45, %c0_46] : memref<64x1xf32, #tpu.memory_space<vmem>>, vector<64x1xf32>
    %70 = vector.broadcast %69 : vector<64x1xf32> to vector<64x256xf32>
    %71 = arith.addf %68, %70 : vector<64x256xf32>
    %cst_47 = arith.constant 0.000000e+00 : f32
    %72 = vector.broadcast %cst_47 : f32 to vector<64x256xf32>
    %73 = arith.maximumf %71, %72 : vector<64x256xf32>
    %c17_i32_48 = arith.constant 17 : i32
    %74 = tpu.dynamic_rotate %73 by %c17_i32_48 dim 1 : vector<64x256xf32>, i32 -> vector<64x256xf32>
    %c0_49 = arith.constant 0 : index
    %c0_50 = arith.constant 0 : index
    %75 = vector.load %arg6[%c0_49, %c0_50] : memref<9x256xf32, #tpu.memory_space<vmem>>, vector<1x256xf32>
    %76 = vector.broadcast %75 : vector<1x256xf32> to vector<64x256xf32>
    %77 = arith.mulf %74, %76 : vector<64x256xf32>
    %c0_51 = arith.constant 0 : index
    %c0_52 = arith.constant 0 : index
    %c0_53 = arith.constant 0 : index
    %78 = vector.load %arg4[%c0_51, %c0_52, %c0_53] : memref<9x64x64xf32, #tpu.memory_space<vmem>>, vector<1x64x64xf32>
    %79 = vector.shape_cast %78 : vector<1x64x64xf32> to vector<64x64xf32>
    %cst_54 = arith.constant dense<0.000000e+00> : vector<64x256xf32>
    %80 = tpu.matmul %79, %77, %cst_54 {dimension_numbers = #tpu.dot_dimension_numbers<[1], [0], [0], [1], [0, 0, 1, 1], [], []>} : vector<64x64xf32>, vector<64x256xf32>, vector<64x256xf32> -> vector<64x256xf32>
    %c16_i32_55 = arith.constant 16 : i32
    %81 = tpu.dynamic_rotate %73 by %c16_i32_55 dim 1 : vector<64x256xf32>, i32 -> vector<64x256xf32>
    %c1_56 = arith.constant 1 : index
    %c0_57 = arith.constant 0 : index
    %82 = vector.load %arg6[%c1_56, %c0_57] : memref<9x256xf32, #tpu.memory_space<vmem>>, vector<1x256xf32>
    %83 = vector.broadcast %82 : vector<1x256xf32> to vector<64x256xf32>
    %84 = arith.mulf %81, %83 : vector<64x256xf32>
    %c1_58 = arith.constant 1 : index
    %c0_59 = arith.constant 0 : index
    %c0_60 = arith.constant 0 : index
    %85 = vector.load %arg4[%c1_58, %c0_59, %c0_60] : memref<9x64x64xf32, #tpu.memory_space<vmem>>, vector<1x64x64xf32>
    %86 = vector.shape_cast %85 : vector<1x64x64xf32> to vector<64x64xf32>
    %cst_61 = arith.constant dense<0.000000e+00> : vector<64x256xf32>
    %87 = tpu.matmul %86, %84, %cst_61 {dimension_numbers = #tpu.dot_dimension_numbers<[1], [0], [0], [1], [0, 0, 1, 1], [], []>} : vector<64x64xf32>, vector<64x256xf32>, vector<64x256xf32> -> vector<64x256xf32>
    %88 = arith.addf %80, %87 : vector<64x256xf32>
    %c15_i32_62 = arith.constant 15 : i32
    %89 = tpu.dynamic_rotate %73 by %c15_i32_62 dim 1 : vector<64x256xf32>, i32 -> vector<64x256xf32>
    %c2_63 = arith.constant 2 : index
    %c0_64 = arith.constant 0 : index
    %90 = vector.load %arg6[%c2_63, %c0_64] : memref<9x256xf32, #tpu.memory_space<vmem>>, vector<1x256xf32>
    %91 = vector.broadcast %90 : vector<1x256xf32> to vector<64x256xf32>
    %92 = arith.mulf %89, %91 : vector<64x256xf32>
    %c2_65 = arith.constant 2 : index
    %c0_66 = arith.constant 0 : index
    %c0_67 = arith.constant 0 : index
    %93 = vector.load %arg4[%c2_65, %c0_66, %c0_67] : memref<9x64x64xf32, #tpu.memory_space<vmem>>, vector<1x64x64xf32>
    %94 = vector.shape_cast %93 : vector<1x64x64xf32> to vector<64x64xf32>
    %cst_68 = arith.constant dense<0.000000e+00> : vector<64x256xf32>
    %95 = tpu.matmul %94, %92, %cst_68 {dimension_numbers = #tpu.dot_dimension_numbers<[1], [0], [0], [1], [0, 0, 1, 1], [], []>} : vector<64x64xf32>, vector<64x256xf32>, vector<64x256xf32> -> vector<64x256xf32>
    %96 = arith.addf %88, %95 : vector<64x256xf32>
    %c1_i32_69 = arith.constant 1 : i32
    %97 = tpu.dynamic_rotate %73 by %c1_i32_69 dim 1 : vector<64x256xf32>, i32 -> vector<64x256xf32>
    %c3_70 = arith.constant 3 : index
    %c0_71 = arith.constant 0 : index
    %98 = vector.load %arg6[%c3_70, %c0_71] : memref<9x256xf32, #tpu.memory_space<vmem>>, vector<1x256xf32>
    %99 = vector.broadcast %98 : vector<1x256xf32> to vector<64x256xf32>
    %100 = arith.mulf %97, %99 : vector<64x256xf32>
    %c3_72 = arith.constant 3 : index
    %c0_73 = arith.constant 0 : index
    %c0_74 = arith.constant 0 : index
    %101 = vector.load %arg4[%c3_72, %c0_73, %c0_74] : memref<9x64x64xf32, #tpu.memory_space<vmem>>, vector<1x64x64xf32>
    %102 = vector.shape_cast %101 : vector<1x64x64xf32> to vector<64x64xf32>
    %cst_75 = arith.constant dense<0.000000e+00> : vector<64x256xf32>
    %103 = tpu.matmul %102, %100, %cst_75 {dimension_numbers = #tpu.dot_dimension_numbers<[1], [0], [0], [1], [0, 0, 1, 1], [], []>} : vector<64x64xf32>, vector<64x256xf32>, vector<64x256xf32> -> vector<64x256xf32>
    %104 = arith.addf %96, %103 : vector<64x256xf32>
    %c4_76 = arith.constant 4 : index
    %c0_77 = arith.constant 0 : index
    %c0_78 = arith.constant 0 : index
    %105 = vector.load %arg4[%c4_76, %c0_77, %c0_78] : memref<9x64x64xf32, #tpu.memory_space<vmem>>, vector<1x64x64xf32>
    %106 = vector.shape_cast %105 : vector<1x64x64xf32> to vector<64x64xf32>
    %cst_79 = arith.constant dense<0.000000e+00> : vector<64x256xf32>
    %107 = tpu.matmul %106, %73, %cst_79 {dimension_numbers = #tpu.dot_dimension_numbers<[1], [0], [0], [1], [0, 0, 1, 1], [], []>} : vector<64x64xf32>, vector<64x256xf32>, vector<64x256xf32> -> vector<64x256xf32>
    %108 = arith.addf %104, %107 : vector<64x256xf32>
    %c255_i32_80 = arith.constant 255 : i32
    %109 = tpu.dynamic_rotate %73 by %c255_i32_80 dim 1 : vector<64x256xf32>, i32 -> vector<64x256xf32>
    %c5_81 = arith.constant 5 : index
    %c0_82 = arith.constant 0 : index
    %110 = vector.load %arg6[%c5_81, %c0_82] : memref<9x256xf32, #tpu.memory_space<vmem>>, vector<1x256xf32>
    %111 = vector.broadcast %110 : vector<1x256xf32> to vector<64x256xf32>
    %112 = arith.mulf %109, %111 : vector<64x256xf32>
    %c5_83 = arith.constant 5 : index
    %c0_84 = arith.constant 0 : index
    %c0_85 = arith.constant 0 : index
    %113 = vector.load %arg4[%c5_83, %c0_84, %c0_85] : memref<9x64x64xf32, #tpu.memory_space<vmem>>, vector<1x64x64xf32>
    %114 = vector.shape_cast %113 : vector<1x64x64xf32> to vector<64x64xf32>
    %cst_86 = arith.constant dense<0.000000e+00> : vector<64x256xf32>
    %115 = tpu.matmul %114, %112, %cst_86 {dimension_numbers = #tpu.dot_dimension_numbers<[1], [0], [0], [1], [0, 0, 1, 1], [], []>} : vector<64x64xf32>, vector<64x256xf32>, vector<64x256xf32> -> vector<64x256xf32>
    %116 = arith.addf %108, %115 : vector<64x256xf32>
    %c241_i32_87 = arith.constant 241 : i32
    %117 = tpu.dynamic_rotate %73 by %c241_i32_87 dim 1 : vector<64x256xf32>, i32 -> vector<64x256xf32>
    %c6_88 = arith.constant 6 : index
    %c0_89 = arith.constant 0 : index
    %118 = vector.load %arg6[%c6_88, %c0_89] : memref<9x256xf32, #tpu.memory_space<vmem>>, vector<1x256xf32>
    %119 = vector.broadcast %118 : vector<1x256xf32> to vector<64x256xf32>
    %120 = arith.mulf %117, %119 : vector<64x256xf32>
    %c6_90 = arith.constant 6 : index
    %c0_91 = arith.constant 0 : index
    %c0_92 = arith.constant 0 : index
    %121 = vector.load %arg4[%c6_90, %c0_91, %c0_92] : memref<9x64x64xf32, #tpu.memory_space<vmem>>, vector<1x64x64xf32>
    %122 = vector.shape_cast %121 : vector<1x64x64xf32> to vector<64x64xf32>
    %cst_93 = arith.constant dense<0.000000e+00> : vector<64x256xf32>
    %123 = tpu.matmul %122, %120, %cst_93 {dimension_numbers = #tpu.dot_dimension_numbers<[1], [0], [0], [1], [0, 0, 1, 1], [], []>} : vector<64x64xf32>, vector<64x256xf32>, vector<64x256xf32> -> vector<64x256xf32>
    %124 = arith.addf %116, %123 : vector<64x256xf32>
    %c240_i32_94 = arith.constant 240 : i32
    %125 = tpu.dynamic_rotate %73 by %c240_i32_94 dim 1 : vector<64x256xf32>, i32 -> vector<64x256xf32>
    %c7_95 = arith.constant 7 : index
    %c0_96 = arith.constant 0 : index
    %126 = vector.load %arg6[%c7_95, %c0_96] : memref<9x256xf32, #tpu.memory_space<vmem>>, vector<1x256xf32>
    %127 = vector.broadcast %126 : vector<1x256xf32> to vector<64x256xf32>
    %128 = arith.mulf %125, %127 : vector<64x256xf32>
    %c7_97 = arith.constant 7 : index
    %c0_98 = arith.constant 0 : index
    %c0_99 = arith.constant 0 : index
    %129 = vector.load %arg4[%c7_97, %c0_98, %c0_99] : memref<9x64x64xf32, #tpu.memory_space<vmem>>, vector<1x64x64xf32>
    %130 = vector.shape_cast %129 : vector<1x64x64xf32> to vector<64x64xf32>
    %cst_100 = arith.constant dense<0.000000e+00> : vector<64x256xf32>
    %131 = tpu.matmul %130, %128, %cst_100 {dimension_numbers = #tpu.dot_dimension_numbers<[1], [0], [0], [1], [0, 0, 1, 1], [], []>} : vector<64x64xf32>, vector<64x256xf32>, vector<64x256xf32> -> vector<64x256xf32>
    %132 = arith.addf %124, %131 : vector<64x256xf32>
    %c239_i32_101 = arith.constant 239 : i32
    %133 = tpu.dynamic_rotate %73 by %c239_i32_101 dim 1 : vector<64x256xf32>, i32 -> vector<64x256xf32>
    %c8_102 = arith.constant 8 : index
    %c0_103 = arith.constant 0 : index
    %134 = vector.load %arg6[%c8_102, %c0_103] : memref<9x256xf32, #tpu.memory_space<vmem>>, vector<1x256xf32>
    %135 = vector.broadcast %134 : vector<1x256xf32> to vector<64x256xf32>
    %136 = arith.mulf %133, %135 : vector<64x256xf32>
    %c8_104 = arith.constant 8 : index
    %c0_105 = arith.constant 0 : index
    %c0_106 = arith.constant 0 : index
    %137 = vector.load %arg4[%c8_104, %c0_105, %c0_106] : memref<9x64x64xf32, #tpu.memory_space<vmem>>, vector<1x64x64xf32>
    %138 = vector.shape_cast %137 : vector<1x64x64xf32> to vector<64x64xf32>
    %cst_107 = arith.constant dense<0.000000e+00> : vector<64x256xf32>
    %139 = tpu.matmul %138, %136, %cst_107 {dimension_numbers = #tpu.dot_dimension_numbers<[1], [0], [0], [1], [0, 0, 1, 1], [], []>} : vector<64x64xf32>, vector<64x256xf32>, vector<64x256xf32> -> vector<64x256xf32>
    %140 = arith.addf %132, %139 : vector<64x256xf32>
    %c0_108 = arith.constant 0 : index
    %c0_109 = arith.constant 0 : index
    %141 = vector.load %arg5[%c0_108, %c0_109] : memref<64x1xf32, #tpu.memory_space<vmem>>, vector<64x1xf32>
    %142 = vector.broadcast %141 : vector<64x1xf32> to vector<64x256xf32>
    %143 = arith.addf %140, %142 : vector<64x256xf32>
    %144 = arith.addf %143, %1 : vector<64x256xf32>
    %c0_110 = arith.constant 0 : index
    %c0_111 = arith.constant 0 : index
    %c0_112 = arith.constant 0 : index
    %145 = vector.load %arg7[%c0_110, %c0_111, %c0_112] : memref<1x64x256xf32, #tpu.memory_space<vmem>>, vector<1x64x256xf32>
    %146 = vector.shape_cast %145 : vector<1x64x256xf32> to vector<64x256xf32>
    %147 = vector.shape_cast %144 : vector<64x256xf32> to vector<1x64x256xf32>
    tpu.vector_store %arg7[%c0_110, %c0_111, %c0_112], %147 {strides = array<i32>} : memref<1x64x256xf32, #tpu.memory_space<vmem>>, vector<1x64x256xf32>,
    return
  }
  func.func @transform_0(%arg0: i32) -> (i32, i32, i32) {
    %c0_i32 = arith.constant 0 : i32
    %c0_i32_0 = arith.constant 0 : i32
    %c0_i32_1 = arith.constant 0 : i32
    return %arg0, %c0_i32, %c0_i32_0 : i32, i32, i32
  }
  func.func @transform_1(%arg0: i32) -> (i32, i32, i32) {
    %c0_i32 = arith.constant 0 : i32
    %c0_i32_0 = arith.constant 0 : i32
    %c0_i32_1 = arith.constant 0 : i32
    %c0_i32_2 = arith.constant 0 : i32
    return %c0_i32, %c0_i32_0, %c0_i32_1 : i32, i32, i32
  }
  func.func @transform_2(%arg0: i32) -> (i32, i32) {
    %c0_i32 = arith.constant 0 : i32
    %c0_i32_0 = arith.constant 0 : i32
    %c0_i32_1 = arith.constant 0 : i32
    return %c0_i32, %c0_i32_0 : i32, i32
  }
  func.func @transform_3(%arg0: i32) -> (i32, i32, i32) {
    %c0_i32 = arith.constant 0 : i32
    %c0_i32_0 = arith.constant 0 : i32
    %c0_i32_1 = arith.constant 0 : i32
    %c0_i32_2 = arith.constant 0 : i32
    return %c0_i32, %c0_i32_0, %c0_i32_1 : i32, i32, i32
  }
  func.func @transform_4(%arg0: i32) -> (i32, i32) {
    %c0_i32 = arith.constant 0 : i32
    %c0_i32_0 = arith.constant 0 : i32
    %c0_i32_1 = arith.constant 0 : i32
    return %c0_i32, %c0_i32_0 : i32, i32
  }
  func.func @transform_5(%arg0: i32) -> (i32, i32) {
    %c0_i32 = arith.constant 0 : i32
    %c0_i32_0 = arith.constant 0 : i32
    %c0_i32_1 = arith.constant 0 : i32
    return %c0_i32, %c0_i32_0 : i32, i32
  }
  func.func @transform_6(%arg0: i32) -> (i32, i32, i32) {
    %c0_i32 = arith.constant 0 : i32
    %c0_i32_0 = arith.constant 0 : i32
    %c0_i32_1 = arith.constant 0 : i32
    return %arg0, %c0_i32, %c0_i32_0 : i32, i32, i32
  }
}

</mosaic_0001>

<bundles_post_ra>
// kernel: residual_block_forward.1
= control target key start
LH: loop header
LB: loop body
LE: loop exit
PB: predicated region body
PF: predicated region fallthrough
CT: control target
= control target key end

     0   :  { %11 = vsyncpa [#allocation3], 0  ;;  %s4883_s21 = smov 0   ;;  %s7819_s0 = inlined_call_operand.vmem [shape: f32[2,64,256], index: 0, kind: input, shape index: {}]   ;;  %s7820_s1 = inlined_call_operand.vmem [shape: f32[9,64,64], index: 1, kind: input, shape index: {}]   ;;  %s7821_s2 = inlined_call_operand.vmem [shape: f32[64,1], index: 2, kind: input, shape index: {}]   ;;  %s7822_s3 = inlined_call_operand.hbm [shape: f32[9,64,64], index: 3, kind: input, shape index: {}]   ;;  %s7823_s4 = inlined_call_operand.vmem [shape: f32[64,1], index: 4, kind: input, shape index: {}]   ;;  %s7824_s5 = inlined_call_operand.vmem [shape: f32[9,256], index: 5, kind: input, shape index: {}]   ;;  %s7825_s6 = inlined_call_operand.vmem [shape: f32[2,64,256], index: 6, kind: output, shape index: {}]  }
   0x1 LB: > { %s4514_s22 = sadd.s32 4294967295, %s4833_s21   ;;  %p4516_p0 = scmp.ge.s32.totalorder %s4833_s21, 1  ;;  %s4833_s21 = sphi %s4883_s21, %s17_s21  }
   0x2   : > { %p179_p1 = scmp.lt.s32.totalorder %s4833_s21, 3  ;;  %s4835_s23 = smov [#allocation2]  }
   0x3   : > { %s197_s24 = sshll.u32 %s4835_s23, 4  ;;  %p4752_p3 = scmp.eq.s32.totalorder %s4514_s22, 0  ;;  %s198_s24 = int_to_ptr.vmem [resolvable:$true] %s197_s24 }
   0x4   : > { %p4891_p2 = pnand %p4516_p0, %p179_p1  ;;  %s4808_s26 = scalar_lea.vmem %s198_s24, 9216 }
   0x5   : > { %p4809_p7 = scmp.ne.s32.totalorder %s198_s24, %s4808_s26  ;;  %p4816_p10 = scmp.lt.s32.totalorder %s198_s24, %s198_s24 }
   0x6   : > { %p4748_p4 = pneg %p4891_p2  ;;  %p4817_p11 = scmp.lt.s32.totalorder %s4808_s26, %s4808_s26 }
   0x8   : > { %p4749_p5 = pnand %p4752_p3, %p4748_p4  ;;  %p4818_p12 = por %p4817_p11, %p4816_p10 }
   0xa   : > { %p4799_p6 = pneg %p4749_p5 }
   0xc   : > { %p4811_p8 = pnand %p4809_p7, %p4799_p6 }
   0xe   : > { %p4812_p9 = pneg %p4811_p8 }
  0x10   : > { %p4819_p13 = pnand %p4818_p12, %p4812_p9 }
  0x12   : > { %4822 = shalt.err (!%p4819_p13)
}
  0x13   : > { %s4836_s27 = smov 128   ;;  %s4837_s28 = smov 8  }
  0x14   : > { %4751 = dma.hbm_to_vmem [thread:$0]  (!%p4749_p5), %s7822_s3, 9216, %s198_s24, [#allocation3], %s4836_s27, %s4836_s27, %s4837_s28  }
  0x15   : > { %227 = sbr.rel (%p4891_p2) target bundleno = 1227 (0x4cb), region = 44 }
  0x1a   : > { %4828 = dma.done.wait (%p4752_p3), [#allocation3], 9216  }
  0x1b   : > { %4830 = vsyncadd (%p4752_p3), [#allocation3], 4294958080  ;;  %p257_p0 = scmp.lt.s32.totalorder %s4514_s22, 1  ;;  %s4838_s11 = smov 16   ;;  %v7826_v16 = vmov 0.0   ;;  %v315_v17 = vlaneseq  ;;  %vm457_vm2 = vcmask 523264  }
  0x1c   : > { %546 = vmatprep.mubr.f32.mxu0 %v7826_v16  ;;  %683 = vmatprep.mubr.f32.mxu1 %v7826_v16  ;;  %s4840_s12 = smov 17   ;;  %s4841_s13 = smov 15   ;;  %v4525_v22 = vld [vmem:[%s7824_s5 + $0x1] ss:$8 sm:$0x3] }
  0x1d   : > { %s8020_s22 = smov (!%p257_p0, %s4514_s22), 1  ;;  %s4842_s14 = smov 1   ;;  %v337_v18 = vshrl.u32 %v315_v17, 7  ;;  %v5081_v19 = vand.u32 127, %v315_v17 }
  0x1e   : > { %s4742_s7 = sshll.u32 %s8020_s22, 7  ;;  %s4843_s17 = smov 127  }
  0x1f   : > { %s4913_s10 = scalar_lea.vmem %s7819_s0, %s4742_s7  ;;  %7882 = vst [vmem:[#allocation5_spill] sm:$0xff] %v5081_v19  ;;  %v5083_v20 = vsub.s32 1, %v337_v18  ;;  %v5085_v21 = vsub.s32 0, %v337_v18  ;;  %vm402_vm0 = vcmp.lt.s32.totalorder %v5081_v19, 16  ;;  %s4844_s18 = smov 113   ;;  %vm317_vm1 = vcmp.lt.s32.totalorder %v5081_v19, 17 }
  0x20   : > { %v4916_v0 = vld [vmem:[%s4913_s10 + $0x70] sm:$0xff]  ;;  %v4919_v1 = vld [vmem:[%s4913_s10 + $0x60] sm:$0xff]  ;;  %v4926_v2 = vld [vmem:[%s4913_s10 + $0x78] sm:$0xff]  ;;  %vm764_vm3 = vcmp.lt.s32.totalorder %v5081_v19, 15  ;;  %s4845_s27 = smov 112   ;;  %s4846_s28 = smov 111  }
  0x21   : > { %384 = vrot.lane.b32.xlu0 %v4916_v0, %s4838_s11  ;;  %382 = vrot.lane.b32.xlu1 %v4919_v1, %s4838_s11  ;;  %v4929_v3 = vld [vmem:[%s4913_s10 + $0x68] sm:$0xff]  ;;  %v4936_v4 = vld [vmem:[%s4913_s10 + $0x58] sm:$0xff]  ;;  %v5096_v25 = vrot.slane %v4525_v22, %v5083_v20  ;;  %v5099_v26 = vrot.slane %v4525_v22, %v5085_v21  ;;  %vm1004_vm4 = vcmp.lt.s32.totalorder %v5081_v19, 1  ;;  %vm1406_vm5 = vcmp.lt.s32.totalorder %v5081_v19, 127  ;;  %s7742_s23 = scalar_lea.vmem %s7825_s6, %s4742_s7 }
  0x22   : > { %v4939_v5 = vld [vmem:[%s4913_s10 + $0x50] sm:$0xff]  ;;  %v4946_v6 = vld [vmem:[%s4913_s10 + $0x48] sm:$0xff]  ;;  %v4949_v7 = vld [vmem:[%s4913_s10 + $0x40] sm:$0xff]  ;;  %vm1646_vm6 = vcmp.lt.s32.totalorder %v5081_v19, 113  ;;  %vm1886_vm7 = vcmp.lt.s32.totalorder %v5081_v19, 112  ;;  %vm2126_vm8 = vcmp.lt.s32.totalorder %v5081_v19, 111 }
  0x23   : > { %v4956_v8 = vld [vmem:[%s4913_s10 + $0x38] sm:$0xff]  ;;  %v4959_v9 = vld [vmem:[%s4913_s10 + $0x30] sm:$0xff]  ;;  %v4966_v10 = vld [vmem:[%s4913_s10 + $0x28] sm:$0xff]  ;;  %7883 = vst [vmem:[#allocation6_spill] sm:$0xff] %v5096_v25 }
  0x24   : > { %v4969_v11 = vld [vmem:[%s4913_s10 + $0x20] sm:$0xff]  ;;  %v4976_v12 = vld [vmem:[%s4913_s10 + $0x18] sm:$0xff]  ;;  %v4979_v13 = vld [vmem:[%s4913_s10 + $0x10] sm:$0xff]  ;;  %7884 = vst [vmem:[#allocation7_spill] sm:$0xff] %v5099_v26 }
  0x25   : > { %400 = vrot.lane.b32.xlu0 %v4926_v2, %s4838_s11  ;;  %398 = vrot.lane.b32.xlu1 %v4929_v3, %s4838_s11  ;;  %v4986_v14 = vld [vmem:[%s4913_s10 + $0x8] sm:$0xff]  ;;  %v4989_v15 = vld [vmem:[%s4913_s10] sm:$0xff] }
  0x29   : > { %396 = vrot.lane.b32.xlu1 %v4936_v4, %s4838_s11  ;;  %380 = vrot.lane.b32.xlu0 %v4939_v5, %s4838_s11 }
  0x2d   : > { %394 = vrot.lane.b32.xlu1 %v4946_v6, %s4838_s11  ;;  %378 = vrot.lane.b32.xlu0 %v4949_v7, %s4838_s11 }
  0x31   : > { %392 = vrot.lane.b32.xlu1 %v4956_v8, %s4838_s11  ;;  %376 = vrot.lane.b32.xlu0 %v4959_v9, %s4838_s11 }
  0x35   : > { %390 = vrot.lane.b32.xlu1 %v4966_v10, %s4838_s11  ;;  %374 = vrot.lane.b32.xlu0 %v4969_v11, %s4838_s11 }
  0x39   : > { %388 = vrot.lane.b32.xlu1 %v4976_v12, %s4838_s11  ;;  %372 = vrot.lane.b32.xlu0 %v4979_v13, %s4838_s11 }
  0x3d   : > { %386 = vrot.lane.b32.xlu1 %v4986_v14, %s4838_s11  ;;  %370 = vrot.lane.b32.xlu0 %v4989_v15, %s4838_s11 }
  0x41   : > { %313 = vrot.lane.b32.xlu1 %v4926_v2, %s4840_s12  ;;  %297 = vrot.lane.b32.xlu0 %v4916_v0, %s4840_s12 }
  0x45   : > { %311 = vrot.lane.b32.xlu1 %v4929_v3, %s4840_s12  ;;  %295 = vrot.lane.b32.xlu0 %v4919_v1, %s4840_s12 }
  0x49   : > { %762 = vrot.lane.b32.xlu1 %v4926_v2, %s4841_s13  ;;  %746 = vrot.lane.b32.xlu0 %v4916_v0, %s4841_s13 }
  0x4d   : > { %309 = vrot.lane.b32.xlu1 %v4936_v4, %s4840_s12  ;;  %293 = vrot.lane.b32.xlu0 %v4939_v5, %s4840_s12 }
  0x51   : > { %760 = vrot.lane.b32.xlu1 %v4929_v3, %s4841_s13  ;;  %744 = vrot.lane.b32.xlu0 %v4919_v1, %s4841_s13 }
  0x55   : > { %307 = vrot.lane.b32.xlu1 %v4946_v6, %s4840_s12  ;;  %291 = vrot.lane.b32.xlu0 %v4949_v7, %s4840_s12 }
  0x59   : > { %758 = vrot.lane.b32.xlu1 %v4936_v4, %s4841_s13  ;;  %742 = vrot.lane.b32.xlu0 %v4939_v5, %s4841_s13 }
  0x5d   : > { %305 = vrot.lane.b32.xlu1 %v4956_v8, %s4840_s12  ;;  %289 = vrot.lane.b32.xlu0 %v4959_v9, %s4840_s12 }
  0x61   : > { %756 = vrot.lane.b32.xlu1 %v4946_v6, %s4841_s13  ;;  %740 = vrot.lane.b32.xlu0 %v4949_v7, %s4841_s13 }
  0x65   : > { %303 = vrot.lane.b32.xlu1 %v4966_v10, %s4840_s12  ;;  %287 = vrot.lane.b32.xlu0 %v4969_v11, %s4840_s12 }
  0x69   : > { %754 = vrot.lane.b32.xlu1 %v4956_v8, %s4841_s13  ;;  %738 = vrot.lane.b32.xlu0 %v4959_v9, %s4841_s13 }
  0x6d   : > { %301 = vrot.lane.b32.xlu1 %v4976_v12, %s4840_s12  ;;  %285 = vrot.lane.b32.xlu0 %v4979_v13, %s4840_s12 }
  0x71   : > { %752 = vrot.lane.b32.xlu1 %v4966_v10, %s4841_s13  ;;  %736 = vrot.lane.b32.xlu0 %v4969_v11, %s4841_s13 }
  0x75   : > { %299 = vrot.lane.b32.xlu1 %v4986_v14, %s4840_s12  ;;  %283 = vrot.lane.b32.xlu0 %v4989_v15, %s4840_s12 }
  0x79   : > { %750 = vrot.lane.b32.xlu1 %v4976_v12, %s4841_s13  ;;  %734 = vrot.lane.b32.xlu0 %v4979_v13, %s4841_s13 }
  0x7d   : > { %748 = vrot.lane.b32.xlu1 %v4986_v14, %s4841_s13  ;;  %732 = vrot.lane.b32.xlu0 %v4989_v15, %s4841_s13 }
  0x81   : > { %1002 = vrot.lane.b32.xlu1 %v4926_v2, %s4842_s14  ;;  %986 = vrot.lane.b32.xlu0 %v4916_v0, %s4842_s14 }
  0x85   : > { %1000 = vrot.lane.b32.xlu1 %v4929_v3, %s4842_s14  ;;  %984 = vrot.lane.b32.xlu0 %v4919_v1, %s4842_s14 }
  0x89   : > { %998 = vrot.lane.b32.xlu1 %v4936_v4, %s4842_s14  ;;  %982 = vrot.lane.b32.xlu0 %v4939_v5, %s4842_s14 }
  0x8d   : > { %996 = vrot.lane.b32.xlu1 %v4946_v6, %s4842_s14  ;;  %980 = vrot.lane.b32.xlu0 %v4949_v7, %s4842_s14 }
  0x91   : > { %994 = vrot.lane.b32.xlu1 %v4956_v8, %s4842_s14  ;;  %978 = vrot.lane.b32.xlu0 %v4959_v9, %s4842_s14 }
  0x93   : > { %v385_v23 = vpop.permute.xlu0 %384  ;;  %v383_v24 = vpop.permute.xlu1 %382 }
  0x95   : > { %992 = vrot.lane.b32.xlu1 %v4966_v10, %s4842_s14  ;;  %976 = vrot.lane.b32.xlu0 %v4969_v11, %s4842_s14 }
  0x97   : > { %v401_v27 = vpop.permute.xlu0 %400  ;;  %v399_v28 = vpop.permute.xlu1 %398 }
  0x98   : > { %v409_v29 = vsel %vm402_vm0, %v383_v24, %v399_v28  ;;  %v410_v30 = vsel %vm402_vm0, %v385_v23, %v401_v27  ;;  %v418_v31 = vsel %vm402_vm0, %v401_v27, %v385_v23  ;;  %v417_v32 = vsel %vm402_vm0, %v399_v28, %v383_v24  ;;  %v334_v23 = vld [vmem:[%s7824_s5] ss:$8 sm:$0x3] }
  0x99   : > { %990 = vrot.lane.b32.xlu1 %v4976_v12, %s4842_s14  ;;  %974 = vrot.lane.b32.xlu0 %v4979_v13, %s4842_s14  ;;  %v447_v33 = vmul.f32 %v5096_v25, %v410_v30  ;;  %v446_v34 = vmul.f32 %v5099_v26, %v418_v31  ;;  %v445_v37 = vmul.f32 %v5096_v25, %v409_v29 }
  0x9a   : > { %v444_v40 = vmul.f32 %v5099_v26, %v417_v32  ;;  %v5180_v32 = vrot.slane %v334_v23, %v5083_v20 }
  0x9b   : > { %498 = vmatprep.subr.mxu0 %v447_v33  ;;  %v397_v35 = vpop.permute.xlu1 %396  ;;  %v381_v36 = vpop.permute.xlu0 %380  ;;  %v5183_v33 = vrot.slane %v334_v23, %v5085_v21 }
  0x9c   : > { %v408_v38 = vsel %vm402_vm0, %v381_v36, %v397_v35  ;;  %v416_v39 = vsel %vm402_vm0, %v397_v35, %v381_v36  ;;  %499 = vmatpush1.msra.mxu0 %v446_v34  ;;  %7885 = vst [vmem:[#allocation8_spill] sm:$0xff] %v5180_v32  ;;  %v4526_v34 = vld [vmem:[%s7820_s1 + $0x40] sm:$0xff] }
  0x9d   : > { %500 = vmatprep.subr.mxu0 %v445_v37  ;;  %988 = vrot.lane.b32.xlu1 %v4986_v14, %s4842_s14  ;;  %v443_v41 = vmul.f32 %v5096_v25, %v408_v38  ;;  %v442_v42 = vmul.f32 %v5099_v26, %v416_v39  ;;  %7886 = vst [vmem:[#allocation9_spill] sm:$0xff] %v5183_v33 }
  0x9e   : > { %972 = vrot.lane.b32.xlu0 %v4989_v15, %s4842_s14  ;;  %501 = vmatpush1.msra.mxu0 %v444_v40 }
  0x9f   : > { %502 = vmatprep.subr.mxu0 %v443_v41  ;;  %v395_v43 = vpop.permute.xlu1 %394  ;;  %v379_v44 = vpop.permute.xlu0 %378  ;;  %v4550_v41 = vld [vmem:[%s7824_s5 + $0x2] ss:$8 sm:$0x3] }
  0xa0   : > { %v407_v45 = vsel %vm402_vm0, %v379_v44, %v395_v43  ;;  %v415_v46 = vsel %vm402_vm0, %v395_v43, %v379_v44  ;;  %503 = vmatpush1.msra.mxu0 %v442_v42  ;;  %v4527_v42 = vld [vmem:[%s7820_s1 + $0x48] sm:$0xff] }
  0xa1   : > { %1404 = vrot.lane.b32.xlu1 %v4926_v2, %s4843_s17  ;;  %v441_v47 = vmul.f32 %v5096_v25, %v407_v45  ;;  %v440_v48 = vmul.f32 %v5099_v26, %v415_v46 }
  0xa2   : > { %1388 = vrot.lane.b32.xlu0 %v4916_v0, %s4843_s17 }
  0xa3   : > { %504 = vmatprep.subr.mxu0 %v441_v47  ;;  %v393_v49 = vpop.permute.xlu1 %392  ;;  %v377_v50 = vpop.permute.xlu0 %376  ;;  %v5213_v47 = vrot.slane %v4550_v41, %v5085_v21 }
  0xa4   : > { %v406_v51 = vsel %vm402_vm0, %v377_v50, %v393_v49  ;;  %v414_v52 = vsel %vm402_vm0, %v393_v49, %v377_v50  ;;  %505 = vmatpush1.msra.mxu0 %v440_v48  ;;  %v5221_v50 = vrot.slane %v4550_v41, %v5083_v20 }
  0xa5   : > { %1402 = vrot.lane.b32.xlu1 %v4929_v3, %s4843_s17  ;;  %v439_v53 = vmul.f32 %v5096_v25, %v406_v51  ;;  %v438_v54 = vmul.f32 %v5099_v26, %v414_v52  ;;  %7887 = vst [vmem:[#allocation10_spill] sm:$0xff] %v5213_v47  ;;  %v4528_v51 = vld [vmem:[%s7820_s1 + $0x50] sm:$0xff] }
  0xa6   : > { %1386 = vrot.lane.b32.xlu0 %v4919_v1, %s4843_s17  ;;  %7888 = vst [vmem:[#allocation11_spill] sm:$0xff] %v5221_v50 }
  0xa7   : > { %506 = vmatprep.subr.mxu0 %v439_v53  ;;  %v391_v55 = vpop.permute.xlu1 %390  ;;  %v375_v56 = vpop.permute.xlu0 %374 }
  0xa8   : > { %v405_v57 = vsel %vm402_vm0, %v375_v56, %v391_v55  ;;  %v413_v58 = vsel %vm402_vm0, %v391_v55, %v375_v56  ;;  %507 = vmatpush1.msra.mxu0 %v438_v54 }
  0xa9   : > { %1644 = vrot.lane.b32.xlu1 %v4926_v2, %s4844_s18  ;;  %v437_v59 = vmul.f32 %v5096_v25, %v405_v57  ;;  %v436_v60 = vmul.f32 %v5099_v26, %v413_v58  ;;  %v4529_v58 = vld [vmem:[%s7820_s1 + $0x58] sm:$0xff] }
  0xaa   : > { %1628 = vrot.lane.b32.xlu0 %v4916_v0, %s4844_s18 }
  0xab   : > { %508 = vmatprep.subr.mxu0 %v437_v59  ;;  %v389_v61 = vpop.permute.xlu1 %388  ;;  %v373_v62 = vpop.permute.xlu0 %372 }
  0xac   : > { %v404_v63 = vsel %vm402_vm0, %v373_v62, %v389_v61  ;;  %v412_v17 = vsel %vm402_vm0, %v389_v61, %v373_v62  ;;  %509 = vmatpush1.msra.mxu0 %v436_v60 }
  0xad   : > { %1400 = vrot.lane.b32.xlu1 %v4936_v4, %s4843_s17  ;;  %v435_v18 = vmul.f32 %v5096_v25, %v404_v63  ;;  %v434_v22 = vmul.f32 %v5099_v26, %v412_v17 }
  0xae   : > { %1384 = vrot.lane.b32.xlu0 %v4939_v5, %s4843_s17 }
  0xaf   : > { %510 = vmatprep.subr.mxu0 %v435_v18  ;;  %v387_v24 = vpop.permute.xlu1 %386  ;;  %v371_v27 = vpop.permute.xlu0 %370  ;;  %v4530_v18 = vld [vmem:[%s7820_s1 + $0x60] sm:$0xff] }
  0xb0   : > { %v403_v28 = vsel %vm402_vm0, %v371_v27, %v387_v24  ;;  %v411_v29 = vsel %vm402_vm0, %v387_v24, %v371_v27  ;;  %511 = vmatpush1.msra.mxu0 %v434_v22 }
  0xb1   : > { %1642 = vrot.lane.b32.xlu1 %v4929_v3, %s4844_s18  ;;  %v433_v30 = vmul.f32 %v5096_v25, %v403_v28  ;;  %v432_v31 = vmul.f32 %v5099_v26, %v411_v29 }
  0xb2   : > { %1626 = vrot.lane.b32.xlu0 %v4919_v1, %s4844_s18 }
  0xb3   : > { %v314_v35 = vpop.permute.xlu1 %313  ;;  %512 = vmatprep.subr.mxu0 %v433_v30  ;;  %v298_v36 = vpop.permute.xlu0 %297  ;;  %v4531_v30 = vld [vmem:[%s7820_s1 + $0x68] sm:$0xff] }
  0xb4   : > { %513 = vmatpush1.msra.mxu0 %v432_v31  ;;  %v325_v37 = vsel %vm317_vm1, %v298_v36, %v314_v35  ;;  %v333_v38 = vsel %vm317_vm1, %v314_v35, %v298_v36 }
  0xb5   : > { %1398 = vrot.lane.b32.xlu1 %v4946_v6, %s4843_s17  ;;  %v361_v39 = vmul.f32 %v5180_v32, %v325_v37  ;;  %v360_v40 = vmul.f32 %v5183_v33, %v333_v38  ;;  %4534 = vmatmul.mubr.msk.f32.vlgmr.msra.gmra.mxu0 %vm457_vm2, %v4526_v34 }
  0xb6   : > { %1382 = vrot.lane.b32.xlu0 %v4949_v7, %s4843_s17  ;;  %552 = vmatprep.mubr.f32.mxu0 %v7826_v16 }
  0xb7   : > { %v312_v43 = vpop.permute.xlu1 %311  ;;  %635 = vmatprep.subr.mxu1 %v361_v39  ;;  %v296_v44 = vpop.permute.xlu0 %295  ;;  %v4532_v39 = vld [vmem:[%s7820_s1 + $0x70] sm:$0xff] }
  0xb8   : > { %v324_v45 = vsel %vm317_vm1, %v296_v44, %v312_v43  ;;  %v332_v46 = vsel %vm317_vm1, %v312_v43, %v296_v44  ;;  %636 = vmatpush1.msra.mxu1 %v360_v40 }
  0xb9   : > { %1640 = vrot.lane.b32.xlu1 %v4936_v4, %s4844_s18  ;;  %v359_v48 = vmul.f32 %v5180_v32, %v324_v45  ;;  %v358_v49 = vmul.f32 %v5183_v33, %v332_v46  ;;  %4535 = vmatmul.mubr.msk.f32.gmra.mxu0 %vm457_vm2, %v4527_v42  ;;  %v4533_v46 = vld [vmem:[%s7820_s1 + $0x78] sm:$0xff] }
  0xba   : > { %1624 = vrot.lane.b32.xlu0 %v4939_v5, %s4844_s18  ;;  %558 = vmatprep.mubr.f32.mxu0 %v7826_v16 }
  0xbb   : > { %v763_v52 = vpop.permute.xlu1 %762  ;;  %637 = vmatprep.subr.mxu1 %v359_v48  ;;  %v747_v53 = vpop.permute.xlu0 %746 }
  0xbc   : > { %v772_v54 = vsel %vm764_vm3, %v747_v53, %v763_v52  ;;  %v780_v55 = vsel %vm764_vm3, %v763_v52, %v747_v53  ;;  %638 = vmatpush1.msra.mxu1 %v358_v49 }
  0xbd   : > { %v808_v56 = vmul.f32 %v5213_v47, %v780_v55  ;;  %1396 = vrot.lane.b32.xlu1 %v4956_v8, %s4843_s17  ;;  %v809_v57 = vmul.f32 %v5221_v50, %v772_v54  ;;  %4536 = vmatmul.mubr.msk.f32.gmra.mxu0 %vm457_vm2, %v4528_v51 }
  0xbe   : > { %1380 = vrot.lane.b32.xlu0 %v4959_v9, %s4843_s17  ;;  %564 = vmatprep.mubr.f32.mxu0 %v7826_v16 }
  0xbf   : > { %v310_v59 = vpop.permute.xlu1 %309  ;;  %859 = vmatprep.subr.mxu0 %v809_v57  ;;  %v294_v60 = vpop.permute.xlu0 %293 }
  0xc0   : > { %v323_v61 = vsel %vm317_vm1, %v294_v60, %v310_v59  ;;  %v331_v62 = vsel %vm317_vm1, %v310_v59, %v294_v60  ;;  %860 = vmatpush1.msra.mxu0 %v808_v56 }
  0xc1   : > { %1638 = vrot.lane.b32.xlu1 %v4946_v6, %s4844_s18  ;;  %v357_v63 = vmul.f32 %v5180_v32, %v323_v61  ;;  %v356_v17 = vmul.f32 %v5183_v33, %v331_v62  ;;  %4537 = vmatmul.mubr.msk.f32.gmra.mxu0 %vm457_vm2, %v4529_v58 }
  0xc2   : > { %1622 = vrot.lane.b32.xlu0 %v4949_v7, %s4844_s18  ;;  %570 = vmatprep.mubr.f32.mxu0 %v7826_v16 }
  0xc3   : > { %v761_v22 = vpop.permute.xlu1 %760  ;;  %639 = vmatprep.subr.mxu1 %v357_v63  ;;  %v745_v23 = vpop.permute.xlu0 %744 }
  0xc4   : > { %v771_v24 = vsel %vm764_vm3, %v745_v23, %v761_v22  ;;  %v779_v27 = vsel %vm764_vm3, %v761_v22, %v745_v23  ;;  %640 = vmatpush1.msra.mxu1 %v356_v17 }
  0xc5   : > { %v806_v28 = vmul.f32 %v5213_v47, %v779_v27  ;;  %1394 = vrot.lane.b32.xlu1 %v4966_v10, %s4843_s17  ;;  %v807_v29 = vmul.f32 %v5221_v50, %v771_v24  ;;  %4538 = vmatmul.mubr.msk.f32.gmra.mxu0 %vm457_vm2, %v4530_v18 }
  0xc6   : > { %1378 = vrot.lane.b32.xlu0 %v4969_v11, %s4843_s17  ;;  %576 = vmatprep.mubr.f32.mxu0 %v7826_v16 }
  0xc7   : > { %v308_v31 = vpop.permute.xlu1 %307  ;;  %861 = vmatprep.subr.mxu0 %v807_v29  ;;  %v292_v34 = vpop.permute.xlu0 %291 }
  0xc8   : > { %v322_v35 = vsel %vm317_vm1, %v292_v34, %v308_v31  ;;  %v330_v36 = vsel %vm317_vm1, %v308_v31, %v292_v34  ;;  %862 = vmatpush1.msra.mxu0 %v806_v28 }
  0xc9   : > { %1636 = vrot.lane.b32.xlu1 %v4956_v8, %s4844_s18  ;;  %v355_v37 = vmul.f32 %v5180_v32, %v322_v35  ;;  %v354_v38 = vmul.f32 %v5183_v33, %v330_v36  ;;  %4539 = vmatmul.mubr.msk.f32.gmra.mxu0 %vm457_vm2, %v4531_v30 }
  0xca   : > { %1620 = vrot.lane.b32.xlu0 %v4959_v9, %s4844_s18  ;;  %582 = vmatprep.mubr.f32.mxu0 %v7826_v16 }
  0xcb   : > { %v759_v40 = vpop.permute.xlu1 %758  ;;  %641 = vmatprep.subr.mxu1 %v355_v37  ;;  %v743_v41 = vpop.permute.xlu0 %742 }
  0xcc   : > { %v770_v42 = vsel %vm764_vm3, %v743_v41, %v759_v40  ;;  %v778_v43 = vsel %vm764_vm3, %v759_v40, %v743_v41  ;;  %642 = vmatpush1.msra.mxu1 %v354_v38 }
  0xcd   : > { %v804_v44 = vmul.f32 %v5213_v47, %v778_v43  ;;  %1392 = vrot.lane.b32.xlu1 %v4976_v12, %s4843_s17  ;;  %v805_v45 = vmul.f32 %v5221_v50, %v770_v42  ;;  %4540 = vmatmul.mubr.msk.f32.gmra.mxu0 %vm457_vm2, %v4532_v39 }
  0xce   : > { %1376 = vrot.lane.b32.xlu0 %v4979_v13, %s4843_s17  ;;  %588 = vmatprep.mubr.f32.mxu0 %v7826_v16 }
  0xcf   : > { %v306_v48 = vpop.permute.xlu1 %305  ;;  %863 = vmatprep.subr.mxu0 %v805_v45  ;;  %v290_v49 = vpop.permute.xlu0 %289 }
  0xd0   : > { %v321_v51 = vsel %vm317_vm1, %v290_v49, %v306_v48  ;;  %v329_v52 = vsel %vm317_vm1, %v306_v48, %v290_v49  ;;  %864 = vmatpush1.msra.mxu0 %v804_v44 }
  0xd1   : > { %1634 = vrot.lane.b32.xlu1 %v4966_v10, %s4844_s18  ;;  %v353_v53 = vmul.f32 %v5180_v32, %v321_v51  ;;  %v352_v54 = vmul.f32 %v5183_v33, %v329_v52  ;;  %4541 = vmatmul.mubr.msk.f32.gmra.mxu0 %vm457_vm2, %v4533_v46 }
  0xd2   : > { %1618 = vrot.lane.b32.xlu0 %v4969_v11, %s4844_s18  ;;  %907 = vmatprep.mubr.f32.mxu0 %v7826_v16 }
  0xd3   : > { %v757_v55 = vpop.permute.xlu1 %756  ;;  %643 = vmatprep.subr.mxu1 %v353_v53  ;;  %v741_v56 = vpop.permute.xlu0 %740  ;;  %v362_v53 = vld [vmem:[%s7820_s1] sm:$0xff] }
  0xd4   : > { %v769_v57 = vsel %vm764_vm3, %v741_v56, %v757_v55  ;;  %v777_v58 = vsel %vm764_vm3, %v757_v55, %v741_v56  ;;  %644 = vmatpush1.msra.mxu1 %v352_v54 }
  0xd5   : > { %v802_v59 = vmul.f32 %v5213_v47, %v777_v58  ;;  %1390 = vrot.lane.b32.xlu1 %v4986_v14, %s4843_s17  ;;  %v803_v60 = vmul.f32 %v5221_v50, %v769_v57 }
  0xd6   : > { %1374 = vrot.lane.b32.xlu0 %v4989_v15, %s4843_s17 }
  0xd7   : > { %v304_v61 = vpop.permute.xlu1 %303  ;;  %865 = vmatprep.subr.mxu0 %v803_v60  ;;  %v288_v62 = vpop.permute.xlu0 %287  ;;  %v4567_v60 = vld [vmem:[%s7824_s5 + $0x3] ss:$8 sm:$0x3] }
  0xd8   : > { %v320_v63 = vsel %vm317_vm1, %v288_v62, %v304_v61  ;;  %v328_v17 = vsel %vm317_vm1, %v304_v61, %v288_v62  ;;  %866 = vmatpush1.msra.mxu0 %v802_v59  ;;  %v363_v61 = vld [vmem:[%s7820_s1 + $0x8] sm:$0xff] }
  0xd9   : > { %1632 = vrot.lane.b32.xlu1 %v4976_v12, %s4844_s18  ;;  %v351_v18 = vmul.f32 %v5180_v32, %v320_v63  ;;  %v350_v22 = vmul.f32 %v5183_v33, %v328_v17 }
  0xda   : > { %1616 = vrot.lane.b32.xlu0 %v4979_v13, %s4844_s18 }
  0xdb   : > { %v755_v23 = vpop.permute.xlu1 %754  ;;  %645 = vmatprep.subr.mxu1 %v351_v18  ;;  %v739_v24 = vpop.permute.xlu0 %738 }
  0xdc   : > { %v768_v27 = vsel %vm764_vm3, %v739_v24, %v755_v23  ;;  %v776_v28 = vsel %vm764_vm3, %v755_v23, %v739_v24  ;;  %646 = vmatpush1.msra.mxu1 %v350_v22  ;;  %v5403_v22 = vrot.slane %v4567_v60, %v5085_v21 }
  0xdd   : > { %v800_v29 = vmul.f32 %v5213_v47, %v776_v28  ;;  %1630 = vrot.lane.b32.xlu1 %v4986_v14, %s4844_s18  ;;  %v801_v30 = vmul.f32 %v5221_v50, %v768_v27  ;;  %v5411_v27 = vrot.slane %v4567_v60, %v5083_v20  ;;  %v4551_v28 = vld [vmem:[%s7820_s1 + $0x80] sm:$0xff] }
  0xde   : > { %1614 = vrot.lane.b32.xlu0 %v4989_v15, %s4844_s18  ;;  %7889 = vst [vmem:[#allocation12_spill] sm:$0xff] %v5403_v22 }
  0xdf   : > { %v302_v31 = vpop.permute.xlu1 %301  ;;  %867 = vmatprep.subr.mxu0 %v801_v30  ;;  %v286_v34 = vpop.permute.xlu0 %285  ;;  %7890 = vst [vmem:[#allocation13_spill] sm:$0xff] %v5411_v27 }
  0xe0   : > { %v319_v35 = vsel %vm317_vm1, %v286_v34, %v302_v31  ;;  %v327_v36 = vsel %vm317_vm1, %v302_v31, %v286_v34  ;;  %868 = vmatpush1.msra.mxu0 %v800_v29 }
  0xe1   : > { %1884 = vrot.lane.b32.xlu1 %v4926_v2, %s4845_s27  ;;  %v349_v37 = vmul.f32 %v5180_v32, %v319_v35  ;;  %v348_v38 = vmul.f32 %v5183_v33, %v327_v36  ;;  %v364_v35 = vld [vmem:[%s7820_s1 + $0x10] sm:$0xff] }
  0xe2   : > { %1868 = vrot.lane.b32.xlu0 %v4916_v0, %s4845_s27 }
  0xe3   : > { %v753_v39 = vpop.permute.xlu1 %752  ;;  %647 = vmatprep.subr.mxu1 %v349_v37  ;;  %v737_v40 = vpop.permute.xlu0 %736 }
  0xe4   : > { %v767_v41 = vsel %vm764_vm3, %v737_v40, %v753_v39  ;;  %v775_v42 = vsel %vm764_vm3, %v753_v39, %v737_v40  ;;  %648 = vmatpush1.msra.mxu1 %v348_v38  ;;  %v4552_v38 = vld [vmem:[%s7820_s1 + $0x88] sm:$0xff] }
  0xe5   : > { %v798_v43 = vmul.f32 %v5213_v47, %v775_v42  ;;  %1882 = vrot.lane.b32.xlu1 %v4929_v3, %s4845_s27  ;;  %v799_v44 = vmul.f32 %v5221_v50, %v767_v41 }
  0xe6   : > { %1866 = vrot.lane.b32.xlu0 %v4919_v1, %s4845_s27 }
  0xe7   : > { %v300_v45 = vpop.permute.xlu1 %299  ;;  %869 = vmatprep.subr.mxu0 %v799_v44  ;;  %v284_v46 = vpop.permute.xlu0 %283 }
  0xe8   : > { %v318_v48 = vsel %vm317_vm1, %v284_v46, %v300_v45  ;;  %v326_v49 = vsel %vm317_vm1, %v300_v45, %v284_v46  ;;  %870 = vmatpush1.msra.mxu0 %v798_v43  ;;  %v365_v43 = vld [vmem:[%s7820_s1 + $0x18] sm:$0xff]  ;;  %v4553_v46 = vld [vmem:[%s7820_s1 + $0x90] sm:$0xff] }
  0xe9   : > { %2124 = vrot.lane.b32.xlu1 %v4926_v2, %s4846_s28  ;;  %v347_v51 = vmul.f32 %v5180_v32, %v318_v48  ;;  %v346_v52 = vmul.f32 %v5183_v33, %v326_v49 }
  0xea   : > { %2108 = vrot.lane.b32.xlu0 %v4916_v0, %s4846_s28 }
  0xeb   : > { %v751_v54 = vpop.permute.xlu1 %750  ;;  %649 = vmatprep.subr.mxu1 %v347_v51  ;;  %v735_v55 = vpop.permute.xlu0 %734 }
  0xec   : > { %v766_v56 = vsel %vm764_vm3, %v735_v55, %v751_v54  ;;  %v774_v57 = vsel %vm764_vm3, %v751_v54, %v735_v55  ;;  %650 = vmatpush1.msra.mxu1 %v346_v52 }
  0xed   : > { %v796_v58 = vmul.f32 %v5213_v47, %v774_v57  ;;  %1880 = vrot.lane.b32.xlu1 %v4936_v4, %s4845_s27  ;;  %v797_v59 = vmul.f32 %v5221_v50, %v766_v56  ;;  %4542 = vmatmul.mubr.msk.f32.vlgmr.msra.gmra.mxu1 %vm457_vm2, %v362_v53  ;;  %v366_v53 = vld [vmem:[%s7820_s1 + $0x20] sm:$0xff]  ;;  %v4554_v56 = vld [vmem:[%s7820_s1 + $0x98] sm:$0xff] }
  0xee   : > { %1864 = vrot.lane.b32.xlu0 %v4939_v5, %s4845_s27  ;;  %689 = vmatprep.mubr.f32.mxu1 %v7826_v16 }
  0xef   : > { %v749_v62 = vpop.permute.xlu1 %748  ;;  %871 = vmatprep.subr.mxu0 %v797_v59  ;;  %v733_v63 = vpop.permute.xlu0 %732 }
  0xf0   : > { %v765_v17 = vsel %vm764_vm3, %v733_v63, %v749_v62  ;;  %v773_v18 = vsel %vm764_vm3, %v749_v62, %v733_v63  ;;  %872 = vmatpush1.msra.mxu0 %v796_v58  ;;  %v4555_v63 = vld [vmem:[%s7820_s1 + $0xa0] sm:$0xff] }
  0xf1   : > { %v794_v23 = vmul.f32 %v5213_v47, %v773_v18  ;;  %2122 = vrot.lane.b32.xlu1 %v4929_v3, %s4846_s28  ;;  %v795_v24 = vmul.f32 %v5221_v50, %v765_v17  ;;  %4543 = vmatmul.mubr.msk.f32.gmra.mxu1 %vm457_vm2, %v363_v61  ;;  %v367_v18 = vld [vmem:[%s7820_s1 + $0x28] sm:$0xff] }
  0xf2   : > { %2106 = vrot.lane.b32.xlu0 %v4919_v1, %s4846_s28  ;;  %695 = vmatprep.mubr.f32.mxu1 %v7826_v16 }
  0xf3   : > { %v1003_v29 = vpop.permute.xlu1 %1002  ;;  %873 = vmatprep.subr.mxu0 %v795_v24  ;;  %v987_v30 = vpop.permute.xlu0 %986 }
  0xf4   : > { %v1012_v31 = vsel %vm1004_vm4, %v987_v30, %v1003_v29  ;;  %v1020_v34 = vsel %vm1004_vm4, %v1003_v29, %v987_v30  ;;  %874 = vmatpush1.msra.mxu0 %v794_v23 }
  0xf5   : > { %v1048_v36 = vmul.f32 %v5403_v22, %v1020_v34  ;;  %1878 = vrot.lane.b32.xlu1 %v4946_v6, %s4845_s27  ;;  %v1049_v37 = vmul.f32 %v5411_v27, %v1012_v31  ;;  %4559 = vmatmul.mubr.msk.f32.vlgmr.msra.gmra.mxu0 %vm457_vm2, %v4551_v28 }
  0xf6   : > { %1862 = vrot.lane.b32.xlu0 %v4949_v7, %s4845_s27  ;;  %913 = vmatprep.mubr.f32.mxu0 %v7826_v16 }
  0xf7   : > { %v1001_v39 = vpop.permute.xlu1 %1000  ;;  %1099 = vmatprep.subr.mxu1 %v1049_v37  ;;  %v985_v40 = vpop.permute.xlu0 %984  ;;  %4544 = vmatmul.mubr.msk.f32.gmra.mxu1 %vm457_vm2, %v364_v35 }
  0xf8   : > { %v1011_v41 = vsel %vm1004_vm4, %v985_v40, %v1001_v39  ;;  %v1019_v42 = vsel %vm1004_vm4, %v1001_v39, %v985_v40  ;;  %1100 = vmatpush1.msra.mxu1 %v1048_v36  ;;  %701 = vmatprep.mubr.f32.mxu1 %v7826_v16  ;;  %v368_v39 = vld [vmem:[%s7820_s1 + $0x30] sm:$0xff] }
  0xf9   : > { %v1046_v44 = vmul.f32 %v5403_v22, %v1019_v42  ;;  %2120 = vrot.lane.b32.xlu1 %v4936_v4, %s4846_s28  ;;  %v1047_v45 = vmul.f32 %v5411_v27, %v1011_v41  ;;  %4560 = vmatmul.mubr.msk.f32.gmra.mxu0 %vm457_vm2, %v4552_v38 }
  0xfa   : > { %2104 = vrot.lane.b32.xlu0 %v4939_v5, %s4846_s28  ;;  %919 = vmatprep.mubr.f32.mxu0 %v7826_v16 }
  0xfb   : > { %v999_v48 = vpop.permute.xlu1 %998  ;;  %1101 = vmatprep.subr.mxu1 %v1047_v45  ;;  %v983_v49 = vpop.permute.xlu0 %982  ;;  %4545 = vmatmul.mubr.msk.f32.gmra.mxu1 %vm457_vm2, %v365_v43  ;;  %v4557_v43 = vld [vmem:[%s7820_s1 + $0xb0] sm:$0xff] }
  0xfc   : > { %v1010_v51 = vsel %vm1004_vm4, %v983_v49, %v999_v48  ;;  %v1018_v52 = vsel %vm1004_vm4, %v999_v48, %v983_v49  ;;  %1102 = vmatpush1.msra.mxu1 %v1046_v44  ;;  %707 = vmatprep.mubr.f32.mxu1 %v7826_v16 }
  0xfd   : > { %v1044_v54 = vmul.f32 %v5403_v22, %v1018_v52  ;;  %1876 = vrot.lane.b32.xlu1 %v4956_v8, %s4845_s27  ;;  %v1045_v55 = vmul.f32 %v5411_v27, %v1010_v51  ;;  %4561 = vmatmul.mubr.msk.f32.gmra.mxu0 %vm457_vm2, %v4553_v46 }
  0xfe   : > { %1860 = vrot.lane.b32.xlu0 %v4959_v9, %s4845_s27  ;;  %925 = vmatprep.mubr.f32.mxu0 %v7826_v16 }
  0xff   : > { %v997_v57 = vpop.permute.xlu1 %996  ;;  %1103 = vmatprep.subr.mxu1 %v1045_v55  ;;  %v981_v58 = vpop.permute.xlu0 %980  ;;  %4546 = vmatmul.mubr.msk.f32.gmra.mxu1 %vm457_vm2, %v366_v53 }
 0x100   : > { %v1009_v59 = vsel %vm1004_vm4, %v981_v58, %v997_v57  ;;  %v1017_v60 = vsel %vm1004_vm4, %v997_v57, %v981_v58  ;;  %1104 = vmatpush1.msra.mxu1 %v1044_v54  ;;  %1261 = vmatprep.subr.mxu0 %v4926_v2  ;;  %v4558_v54 = vld [vmem:[%s7820_s1 + $0xb8] sm:$0xff] }
 0x101   : > { %v1042_v61 = vmul.f32 %v5403_v22, %v1017_v60  ;;  %2118 = vrot.lane.b32.xlu1 %v4946_v6, %s4846_s28  ;;  %v1043_v62 = vmul.f32 %v5411_v27, %v1009_v59  ;;  %4562 = vmatmul.mubr.msk.f32.gmra.mxu0 %vm457_vm2, %v4554_v56 }
 0x102   : > { %2102 = vrot.lane.b32.xlu0 %v4949_v7, %s4846_s28  ;;  %931 = vmatprep.mubr.f32.mxu0 %v7826_v16 }
 0x103   : > { %v995_v17 = vpop.permute.xlu1 %994  ;;  %1105 = vmatprep.subr.mxu1 %v1043_v62  ;;  %v979_v2 = vpop.permute.xlu0 %978  ;;  %713 = vmatprep.mubr.f32.mxu1 %v7826_v16 }
 0x104   : > { %v1008_v23 = vsel %vm1004_vm4, %v979_v2, %v995_v17  ;;  %v1016_v24 = vsel %vm1004_vm4, %v995_v17, %v979_v2  ;;  %1106 = vmatpush1.msra.mxu1 %v1042_v61  ;;  %1262 = vmatpush1.msra.mxu0 %v4916_v0  ;;  %v4556_v0 = vld [vmem:[%s7820_s1 + $0xa8] sm:$0xff] }
 0x105   : > { %v1040_v28 = vmul.f32 %v5403_v22, %v1016_v24  ;;  %1874 = vrot.lane.b32.xlu1 %v4966_v10, %s4845_s27  ;;  %v1041_v29 = vmul.f32 %v5411_v27, %v1008_v23  ;;  %4563 = vmatmul.mubr.msk.f32.gmra.mxu0 %vm457_vm2, %v4555_v63  ;;  %v4569_v2 = vld [vmem:[%s7820_s1 + $0xc8] sm:$0xff]  ;;  %v4778_v23 = vld [vmem:[%s4913_s10 + $0x10] sm:$0xff] }
 0x106   : > { %1858 = vrot.lane.b32.xlu0 %v4969_v11, %s4845_s27  ;;  %4547 = vmatmul.mubr.msk.f32.gmra.mxu1 %vm457_vm2, %v367_v18 }
 0x107   : > { %v993_v30 = vpop.permute.xlu1 %992  ;;  %1107 = vmatprep.subr.mxu1 %v1041_v29  ;;  %v977_v31 = vpop.permute.xlu0 %976  ;;  %1263 = vmatprep.subr.mxu0 %v4929_v3 }
 0x108   : > { %v1007_v34 = vsel %vm1004_vm4, %v977_v31, %v993_v30  ;;  %v1015_v35 = vsel %vm1004_vm4, %v993_v30, %v977_v31  ;;  %1108 = vmatpush1.msra.mxu1 %v1040_v28  ;;  %937 = vmatprep.mubr.f32.mxu0 %v7826_v16  ;;  %v4585_v28 = vld [vmem:[%s7820_s1 + $0x108] sm:$0xff] }
 0x109   : > { %v1038_v36 = vmul.f32 %v5403_v22, %v1015_v35  ;;  %2116 = vrot.lane.b32.xlu1 %v4956_v8, %s4846_s28  ;;  %v1039_v3 = vmul.f32 %v5411_v27, %v1007_v34  ;;  %1264 = vmatpush1.msra.mxu0 %v4919_v1  ;;  %v4779_v34 = vld [vmem:[%s4913_s10 + $0x8] sm:$0xff]  ;;  %v4570_v35 = vld [vmem:[%s7820_s1 + $0xd0] sm:$0xff] }
 0x10a   : > { %2100 = vrot.lane.b32.xlu0 %v4959_v9, %s4846_s28  ;;  %4564 = vmatmul.mubr.msk.f32.gmra.mxu0 %vm457_vm2, %v4556_v0 }
 0x10b   : > { %v991_v37 = vpop.permute.xlu1 %990  ;;  %1109 = vmatprep.subr.mxu1 %v1039_v3  ;;  %v975_v38 = vpop.permute.xlu0 %974  ;;  %1265 = vmatprep.subr.mxu0 %v4936_v4 }
 0x10c   : > { %v1006_v40 = vsel %vm1004_vm4, %v975_v38, %v991_v37  ;;  %v1014_v1 = vsel %vm1004_vm4, %v991_v37, %v975_v38  ;;  %1110 = vmatpush1.msra.mxu1 %v1038_v36  ;;  %719 = vmatprep.mubr.f32.mxu1 %v7826_v16  ;;  %v4780_v37 = vld [vmem:[%s4913_s10] sm:$0xff] }
 0x10d   : > { %v1036_v41 = vmul.f32 %v5403_v22, %v1014_v1  ;;  %1872 = vrot.lane.b32.xlu1 %v4976_v12, %s4845_s27  ;;  %1266 = vmatpush1.msra.mxu0 %v4939_v5  ;;  %v1037_v4 = vmul.f32 %v5411_v27, %v1006_v40  ;;  %v4600_v5 = vld [vmem:[%s7824_s5 + $0x5] ss:$8 sm:$0x3]  ;;  %v4586_v40 = vld [vmem:[%s7820_s1 + $0x110] sm:$0xff] }
 0x10e   : > { %1856 = vrot.lane.b32.xlu0 %v4979_v13, %s4845_s27  ;;  %4548 = vmatmul.mubr.msk.f32.gmra.mxu1 %vm457_vm2, %v368_v39  ;;  %v5573_v51 = vrot.slane %v4600_v5, %v5083_v20  ;;  %v5579_v53 = vrot.slane %v4600_v5, %v5085_v21 }
 0x10f   : > { %v989_v42 = vpop.permute.xlu1 %988  ;;  %1111 = vmatprep.subr.mxu1 %v1037_v4  ;;  %1267 = vmatprep.subr.mxu0 %v4946_v6  ;;  %v369_v6 = vld [vmem:[%s7820_s1 + $0x38] sm:$0xff] }
 0x110   : > { %v973_v44 = vpop.permute.xlu0 %972  ;;  %943 = vmatprep.mubr.f32.mxu0 %v7826_v16  ;;  %1112 = vmatpush1.msra.mxu1 %v1036_v41  ;;  %7891 = vst [vmem:[#allocation14_spill] sm:$0xff] %v5573_v51  ;;  %7892 = vst [vmem:[#allocation15_spill] sm:$0xff] %v5579_v53  ;;  %v4571_v4 = vld [vmem:[%s7820_s1 + $0xd8] sm:$0xff] }
 0x111   : > { %v1005_v45 = vsel %vm1004_vm4, %v973_v44, %v989_v42  ;;  %v1013_v46 = vsel %vm1004_vm4, %v989_v42, %v973_v44  ;;  %1268 = vmatpush1.msra.mxu0 %v4949_v7  ;;  %2114 = vrot.lane.b32.xlu1 %v4966_v10, %s4846_s28 }
 0x112   : > { %v1034_v48 = vmul.f32 %v5403_v22, %v1013_v46  ;;  %2098 = vrot.lane.b32.xlu0 %v4969_v11, %s4846_s28  ;;  %4565 = vmatmul.mubr.msk.f32.gmra.mxu0 %vm457_vm2, %v4557_v43  ;;  %v1035_v49 = vmul.f32 %v5411_v27, %v1005_v45  ;;  %v4587_v45 = vld [vmem:[%s7820_s1 + $0x118] sm:$0xff] }
 0x113   : > { %1269 = vmatprep.subr.mxu0 %v4956_v8  ;;  %725 = vmatprep.mubr.f32.mxu1 %v7826_v16  ;;  %v1405_v7 = vpop.permute.xlu1 %1404 }
 0x114   : > { %1270 = vmatpush1.msra.mxu0 %v4959_v9  ;;  %4549 = vmatmul.mubr.msk.f32.gmra.mxu1 %vm457_vm2, %v369_v6  ;;  %v1389_v52 = vpop.permute.xlu0 %1388 }
 0x115   : > { %1113 = vmatprep.subr.mxu1 %v1035_v49  ;;  %1271 = vmatprep.subr.mxu0 %v4966_v10  ;;  %v1422_v8 = vsel %vm1406_vm5, %v1405_v7, %v1389_v52  ;;  %v1414_v55 = vsel %vm1406_vm5, %v1389_v52, %v1405_v7  ;;  %v4568_v10 = vld [vmem:[%s7820_s1 + $0xc0] sm:$0xff] }
 0x116   : > { %949 = vmatprep.mubr.f32.mxu0 %v7826_v16  ;;  %1114 = vmatpush1.msra.mxu1 %v1034_v48  ;;  %v1451_v56 = vmul.f32 %v5573_v51, %v1422_v8  ;;  %v1450_v58 = vmul.f32 %v5579_v53, %v1414_v55  ;;  %v4572_v48 = vld [vmem:[%s7820_s1 + $0xe0] sm:$0xff] }
 0x117   : > { %1272 = vmatpush1.msra.mxu0 %v4969_v11  ;;  %1870 = vrot.lane.b32.xlu1 %v4986_v14, %s4845_s27  ;;  %v1403_v9 = vpop.permute.xlu1 %1402  ;;  %v4617_v11 = vld [vmem:[%s7824_s5 + $0x6] ss:$8 sm:$0x3] }
 0x118   : > { %1854 = vrot.lane.b32.xlu0 %v4989_v15, %s4845_s27  ;;  %4566 = vmatmul.mubr.msk.f32.gmra.mxu0 %vm457_vm2, %v4558_v54  ;;  %v1387_v57 = vpop.permute.xlu0 %1386  ;;  %v5618_v63 = vrot.slane %v4617_v11, %v5083_v20  ;;  %v5629_v18 = vrot.slane %v4617_v11, %v5085_v21  ;;  %v4588_v54 = vld [vmem:[%s7820_s1 + $0x120] sm:$0xff] }
 0x119   : > { %1273 = vmatprep.subr.mxu0 %v4976_v12  ;;  %1147 = vmatprep.mubr.f32.mxu1 %v7826_v16  ;;  %v1421_v59 = vsel %vm1406_vm5, %v1403_v9, %v1387_v57  ;;  %v1413_v60 = vsel %vm1406_vm5, %v1387_v57, %v1403_v9  ;;  %v4584_v12 = vld [vmem:[%s7820_s1 + $0x100] sm:$0xff] }
 0x11a   : > { %1274 = vmatpush1.msra.mxu0 %v4979_v13  ;;  %4576 = vmatmul.mubr.msk.f32.vlgmr.msra.gmra.mxu1 %vm457_vm2, %v4568_v10  ;;  %v1449_v62 = vmul.f32 %v5573_v51, %v1421_v59  ;;  %7893 = vst [vmem:[#allocation16_spill] sm:$0xff] %v5618_v63  ;;  %v1448_v17 = vmul.f32 %v5579_v53, %v1413_v60  ;;  %7894 = vst [vmem:[#allocation17_spill] sm:$0xff] %v5629_v18  ;;  %v4573_v10 = vld [vmem:[%s7820_s1 + $0xe8] sm:$0xff] }
 0x11b   : > { %1275 = vmatprep.subr.mxu0 %v4986_v14  ;;  %1501 = vmatprep.subr.mxu1 %v1451_v56  ;;  %v1645_v61 = vpop.permute.xlu1 %1644  ;;  %v4777_v14 = vld [vmem:[%s4913_s10 + $0x18] sm:$0xff]  ;;  %v4589_v59 = vld [vmem:[%s7820_s1 + $0x128] sm:$0xff] }
 0x11c   : > { %1276 = vmatpush1.msra.mxu0 %v4989_v15  ;;  %1309 = vmatprep.mubr.f32.mxu0 %v7826_v16  ;;  %v1629_v13 = vpop.permute.xlu0 %1628 }
 0x11d   : > { %1502 = vmatpush1.msra.mxu1 %v1450_v58  ;;  %2112 = vrot.lane.b32.xlu1 %v4777_v14, %s4846_s28  ;;  %v1662_v15 = vsel %vm1646_vm6, %v1645_v61, %v1629_v13  ;;  %v1654_v24 = vsel %vm1646_vm6, %v1629_v13, %v1645_v61  ;;  %v4574_v61 = vld [vmem:[%s7820_s1 + $0xf0] sm:$0xff] }
 0x11e   : > { %2096 = vrot.lane.b32.xlu0 %v4778_v23, %s4846_s28  ;;  %4592 = vmatmul.mubr.msk.f32.vlgmr.msra.gmra.mxu0 %vm457_vm2, %v4584_v12  ;;  %v1691_v30 = vmul.f32 %v5618_v63, %v1662_v15  ;;  %v1690_v0 = vmul.f32 %v5629_v18, %v1654_v24  ;;  %v4575_v24 = vld [vmem:[%s7820_s1 + $0xf8] sm:$0xff] }
 0x11f   : > { %1153 = vmatprep.mubr.f32.mxu1 %v7826_v16  ;;  %1503 = vmatprep.subr.mxu1 %v1449_v62  ;;  %v1401_v29 = vpop.permute.xlu1 %1400 }
 0x120   : > { %4577 = vmatmul.mubr.msk.f32.gmra.mxu1 %vm457_vm2, %v4569_v2  ;;  %1315 = vmatprep.mubr.f32.mxu0 %v7826_v16  ;;  %v1385_v31 = vpop.permute.xlu0 %1384  ;;  %v4590_v2 = vld [vmem:[%s7820_s1 + $0x130] sm:$0xff] }
 0x121   : > { %1504 = vmatpush1.msra.mxu1 %v1448_v17  ;;  %2110 = vrot.lane.b32.xlu1 %v4779_v34, %s4846_s28  ;;  %v1412_v36 = vsel %vm1406_vm5, %v1385_v31, %v1401_v29  ;;  %v1420_v3 = vsel %vm1406_vm5, %v1401_v29, %v1385_v31 }
 0x122   : > { %2094 = vrot.lane.b32.xlu0 %v4780_v37, %s4846_s28  ;;  %4593 = vmatmul.mubr.msk.f32.gmra.mxu0 %vm457_vm2, %v4585_v28  ;;  %v1447_v38 = vmul.f32 %v5573_v51, %v1420_v3  ;;  %v1446_v39 = vmul.f32 %v5579_v53, %v1412_v36 }
 0x123   : > { %1159 = vmatprep.mubr.f32.mxu1 %v7826_v16  ;;  %1741 = vmatprep.subr.mxu0 %v1691_v30  ;;  %v1643_v1 = vpop.permute.xlu1 %1642 }
 0x124   : > { %4578 = vmatmul.mubr.msk.f32.gmra.mxu1 %vm457_vm2, %v4570_v35  ;;  %1321 = vmatprep.mubr.f32.mxu0 %v7826_v16  ;;  %v1627_v41 = vpop.permute.xlu0 %1626 }
 0x125   : > { %1742 = vmatpush1.msra.mxu0 %v1690_v0  ;;  %1165 = vmatprep.mubr.f32.mxu1 %v7826_v16  ;;  %v1653_v42 = vsel %vm1646_vm6, %v1627_v41, %v1643_v1  ;;  %v1661_v43 = vsel %vm1646_vm6, %v1643_v1, %v1627_v41  ;;  %v4591_v0 = vld [vmem:[%s7820_s1 + $0x138] sm:$0xff] }
 0x126   : > { %4594 = vmatmul.mubr.msk.f32.gmra.mxu0 %vm457_vm2, %v4586_v40  ;;  %1505 = vmatprep.subr.mxu1 %v1447_v38  ;;  %v1688_v44 = vmul.f32 %v5629_v18, %v1653_v42  ;;  %v1689_v5 = vmul.f32 %v5618_v63, %v1661_v43 }
 0x127   : > { %1327 = vmatprep.mubr.f32.mxu0 %v7826_v16  ;;  %1506 = vmatpush1.msra.mxu1 %v1446_v39  ;;  %v1399_v46 = vpop.permute.xlu1 %1398 }
 0x128   : > { %4579 = vmatmul.mubr.msk.f32.gmra.mxu1 %vm457_vm2, %v4571_v4  ;;  %1743 = vmatprep.subr.mxu0 %v1689_v5  ;;  %v1383_v6 = vpop.permute.xlu0 %1382 }
 0x129   : > { %1171 = vmatprep.mubr.f32.mxu1 %v7826_v16  ;;  %v1411_v49 = vsel %vm1406_vm5, %v1383_v6, %v1399_v46  ;;  %v1419_v7 = vsel %vm1406_vm5, %v1399_v46, %v1383_v6  ;;  %1744 = vmatpush1.msra.mxu0 %v1688_v44  ;;  %v4847_v46 = vmov 0  }
 0x12a   : > { %4595 = vmatmul.mubr.msk.f32.gmra.mxu0 %vm457_vm2, %v4587_v45  ;;  %v1444_v52 = vmul.f32 %v5579_v53, %v1411_v49  ;;  %v1445_v8 = vmul.f32 %v5573_v51, %v1419_v7  ;;  %4775 = vset.pattern.permute.xlu0 %v4847_v46  ;;  %v2341_v49 = vld [vmem:[%s7821_s2 + $0x38] sm:$0xff] }
 0x12b   : > { %1333 = vmatprep.mubr.f32.mxu0 %v7826_v16  ;;  %v1641_v55 = vpop.permute.xlu1 %1640  ;;  %4776 = vset.pattern.permute.xlu1 %v4847_v46  ;;  %v4619_v46 = vld [vmem:[%s7820_s1 + $0x188] sm:$0xff] }
 0x12c   : > { %4580 = vmatmul.mubr.msk.f32.gmra.mxu1 %vm457_vm2, %v4572_v48  ;;  %1507 = vmatprep.subr.mxu1 %v1445_v8  ;;  %v1625_v9 = vpop.permute.xlu0 %1624 }
 0x12d   : > { %1177 = vmatprep.mubr.f32.mxu1 %v7826_v16  ;;  %v1652_v56 = vsel %vm1646_vm6, %v1625_v9, %v1641_v55  ;;  %v1660_v57 = vsel %vm1646_vm6, %v1641_v55, %v1625_v9  ;;  %1508 = vmatpush1.msra.mxu1 %v1444_v52 }
 0x12e   : > { %4596 = vmatmul.mubr.msk.f32.gmra.mxu0 %vm457_vm2, %v4588_v54  ;;  %v1686_v11 = vmul.f32 %v5629_v18, %v1652_v56  ;;  %v1687_v58 = vmul.f32 %v5618_v63, %v1660_v57  ;;  %2379 = vperm.xlu0 %4775, %v2341_v49  }
 0x12f   : > { %1339 = vmatprep.mubr.f32.mxu0 %v7826_v16  ;;  %v1397_v60 = vpop.permute.xlu1 %1396 }
 0x130   : > { %4581 = vmatmul.mubr.msk.f32.gmra.mxu1 %vm457_vm2, %v4573_v10  ;;  %1745 = vmatprep.subr.mxu0 %v1687_v58  ;;  %v1381_v12 = vpop.permute.xlu0 %1380  ;;  %v2338_v10 = vld [vmem:[%s7821_s2 + $0x20] sm:$0xff] }
 0x131   : > { %1183 = vmatprep.mubr.f32.mxu1 %v7826_v16  ;;  %v1410_v62 = vsel %vm1406_vm5, %v1381_v12, %v1397_v60  ;;  %v1418_v13 = vsel %vm1406_vm5, %v1397_v60, %v1381_v12  ;;  %1746 = vmatpush1.msra.mxu0 %v1686_v11 }
 0x132   : > { %4597 = vmatmul.mubr.msk.f32.gmra.mxu0 %vm457_vm2, %v4589_v59  ;;  %v1442_v17 = vmul.f32 %v5579_v53, %v1410_v62  ;;  %v1443_v14 = vmul.f32 %v5573_v51, %v1418_v13  ;;  %2364 = vperm.xlu0 %4775, %v2338_v10   ;;  %v2336_v62 = vld [vmem:[%s7821_s2 + $0x10] sm:$0xff] }
 0x133   : > { %1345 = vmatprep.mubr.f32.mxu0 %v7826_v16  ;;  %v1639_v15 = vpop.permute.xlu1 %1638  ;;  %v4620_v10 = vld [vmem:[%s7820_s1 + $0x190] sm:$0xff] }
 0x134   : > { %4582 = vmatmul.mubr.msk.f32.gmra.mxu1 %vm457_vm2, %v4574_v61  ;;  %1509 = vmatprep.subr.mxu1 %v1443_v14  ;;  %v1623_v23 = vpop.permute.xlu0 %1622  ;;  %v4601_v61 = vld [vmem:[%s7820_s1 + $0x140] sm:$0xff] }
 0x135   : > { %1189 = vmatprep.mubr.f32.mxu1 %v7826_v16  ;;  %v1651_v28 = vsel %vm1646_vm6, %v1623_v23, %v1639_v15  ;;  %v1659_v29 = vsel %vm1646_vm6, %v1639_v15, %v1623_v23  ;;  %1510 = vmatpush1.msra.mxu1 %v1442_v17 }
 0x136   : > { %4598 = vmatmul.mubr.msk.f32.gmra.mxu0 %vm457_vm2, %v4590_v2  ;;  %v1684_v30 = vmul.f32 %v5629_v18, %v1651_v28  ;;  %v1685_v31 = vmul.f32 %v5618_v63, %v1659_v29  ;;  %2354 = vperm.xlu0 %4775, %v2336_v62   ;;  %v4634_v28 = vld [vmem:[%s7824_s5 + $0x7] ss:$8 sm:$0x3] }
 0x137   : > { %1351 = vmatprep.mubr.f32.mxu0 %v7826_v16  ;;  %v1395_v34 = vpop.permute.xlu1 %1394 }
 0x138   : > { %4583 = vmatmul.mubr.msk.f32.gmra.mxu1 %vm457_vm2, %v4575_v24  ;;  %1747 = vmatprep.subr.mxu0 %v1685_v31  ;;  %v1379_v35 = vpop.permute.xlu0 %1378  ;;  %v4602_v24 = vld [vmem:[%s7820_s1 + $0x148] sm:$0xff] }
 0x139   : > { %v1409_v36 = vsel %vm1406_vm5, %v1379_v35, %v1395_v34  ;;  %v1417_v3 = vsel %vm1406_vm5, %v1395_v34, %v1379_v35  ;;  %1748 = vmatpush1.msra.mxu0 %v1684_v30  ;;  %1549 = vmatprep.mubr.f32.mxu1 %v7826_v16  ;;  %v5814_v35 = vrot.slane %v4634_v28, %v5085_v21 }
 0x13a   : > { %4599 = vmatmul.mubr.msk.f32.gmra.mxu0 %vm457_vm2, %v4591_v0  ;;  %v1440_v37 = vmul.f32 %v5579_v53, %v1409_v36  ;;  %v1441_v38 = vmul.f32 %v5573_v51, %v1417_v3  ;;  %v4603_v36 = vld [vmem:[%s7820_s1 + $0x150] sm:$0xff]  ;;  %v5820_v3 = vrot.slane %v4634_v28, %v5083_v20  ;;  %v4622_v28 = vld [vmem:[%s7820_s1 + $0x1a0] sm:$0xff] }
 0x13b   : > { %v1637_v39 = vpop.permute.xlu1 %1636  ;;  %1789 = vmatprep.mubr.f32.mxu0 %v7826_v16  ;;  %7895 = vst [vmem:[#allocation18_spill] sm:$0xff] %v5814_v35 }
 0x13c   : > { %1511 = vmatprep.subr.mxu1 %v1441_v38  ;;  %v1621_v40 = vpop.permute.xlu0 %1620  ;;  %7896 = vst [vmem:[#allocation19_spill] sm:$0xff] %v5820_v3  ;;  %v4618_v38 = vld [vmem:[%s7820_s1 + $0x180] sm:$0xff] }
 0x13d   : > { %v1650_v1 = vsel %vm1646_vm6, %v1621_v40, %v1637_v39  ;;  %v1658_v41 = vsel %vm1646_vm6, %v1637_v39, %v1621_v40  ;;  %1512 = vmatpush1.msra.mxu1 %v1440_v37  ;;  %v2340_v39 = vld [vmem:[%s7821_s2 + $0x30] sm:$0xff]  ;;  %v2334_v40 = vld [vmem:[%s7821_s2] sm:$0xff] }
 0x13e   : > { %v1682_v4 = vmul.f32 %v5629_v18, %v1650_v1  ;;  %v1683_v42 = vmul.f32 %v5618_v63, %v1658_v41  ;;  %2374 = vperm.xlu1 %4776, %v2340_v39   ;;  %2344 = vperm.xlu0 %4775, %v2334_v40  }
 0x13f   : > { %v1393_v43 = vpop.permute.xlu1 %1392 }
 0x140   : > { %1749 = vmatprep.subr.mxu0 %v1683_v42  ;;  %v1377_v44 = vpop.permute.xlu0 %1376 }
 0x141   : > { %v1408_v5 = vsel %vm1406_vm5, %v1377_v44, %v1393_v43  ;;  %v1416_v45 = vsel %vm1406_vm5, %v1393_v43, %v1377_v44  ;;  %1750 = vmatpush1.msra.mxu0 %v1682_v4  ;;  %v4651_v44 = vld [vmem:[%s7824_s5 + $0x10] ss:$8 sm:$0x3] }
 0x142   : > { %v1438_v6 = vmul.f32 %v5579_v53, %v1408_v5  ;;  %v1439_v48 = vmul.f32 %v5573_v51, %v1416_v45  ;;  %v4604_v45 = vld [vmem:[%s7820_s1 + $0x158] sm:$0xff] }
 0x143   : > { %v1635_v7 = vpop.permute.xlu1 %1634 }
 0x144   : > { %1513 = vmatprep.subr.mxu1 %v1439_v48  ;;  %v1619_v52 = vpop.permute.xlu0 %1618 }
 0x145   : > { %v1649_v8 = vsel %vm1646_vm6, %v1619_v52, %v1635_v7  ;;  %v1657_v54 = vsel %vm1646_vm6, %v1635_v7, %v1619_v52  ;;  %1514 = vmatpush1.msra.mxu1 %v1438_v6  ;;  %v5856_v7 = vrot.slane %v4651_v44, %v5085_v21  ;;  %v2339_v52 = vld [vmem:[%s7821_s2 + $0x28] sm:$0xff]  ;;  %v4605_v21 = vld [vmem:[%s7820_s1 + $0x160] sm:$0xff] }
 0x146   : > { %v1680_v55 = vmul.f32 %v5629_v18, %v1649_v8  ;;  %v1681_v9 = vmul.f32 %v5618_v63, %v1657_v54  ;;  %2369 = vperm.xlu1 %4776, %v2339_v52  }
 0x147   : > { %v1391_v56 = vpop.permute.xlu1 %1390  ;;  %7897 = vst [vmem:[#allocation20_spill] sm:$0xff] %v5856_v7 }
 0x148   : > { %1751 = vmatprep.subr.mxu0 %v1681_v9  ;;  %v1375_v57 = vpop.permute.xlu0 %1374 }
 0x149   : > { %v1407_v11 = vsel %vm1406_vm5, %v1375_v57, %v1391_v56  ;;  %v1415_v58 = vsel %vm1406_vm5, %v1391_v56, %v1375_v57  ;;  %1752 = vmatpush1.msra.mxu0 %v1680_v55  ;;  %v5867_v55 = vrot.slane %v4651_v44, %v5083_v20 }
 0x14a   : > { %v1436_v59 = vmul.f32 %v5579_v53, %v1407_v11  ;;  %v1437_v60 = vmul.f32 %v5573_v51, %v1415_v58 }
 0x14b   : > { %v1633_v12 = vpop.permute.xlu1 %1632  ;;  %7898 = vst [vmem:[#allocation21_spill] sm:$0xff] %v5867_v55 }
 0x14c   : > { %1515 = vmatprep.subr.mxu1 %v1437_v60  ;;  %v1617_v13 = vpop.permute.xlu0 %1616 }
 0x14d   : > { %v1648_v17 = vsel %vm1646_vm6, %v1617_v13, %v1633_v12  ;;  %v1656_v14 = vsel %vm1646_vm6, %v1633_v12, %v1617_v13  ;;  %1516 = vmatpush1.msra.mxu1 %v1436_v59  ;;  %v2337_v59 = vld [vmem:[%s7821_s2 + $0x18] sm:$0xff]  ;;  %v4606_v12 = vld [vmem:[%s7820_s1 + $0x168] sm:$0xff] }
 0x14e   : > { %v1678_v2 = vmul.f32 %v5629_v18, %v1648_v17  ;;  %4609 = vmatmul.mubr.msk.f32.vlgmr.msra.gmra.mxu1 %vm457_vm2, %v4601_v61  ;;  %v1679_v15 = vmul.f32 %v5618_v63, %v1656_v14  ;;  %v4621_v61 = vld [vmem:[%s7820_s1 + $0x198] sm:$0xff]  ;;  %2359 = vperm.xlu1 %4776, %v2337_v59  }
 0x14f   : > { %v1631_v23 = vpop.permute.xlu1 %1630  ;;  %1555 = vmatprep.mubr.f32.mxu1 %v7826_v16 }
 0x150   : > { %1753 = vmatprep.subr.mxu0 %v1679_v15  ;;  %v1615_v29 = vpop.permute.xlu0 %1614  ;;  %v2335_v15 = vld [vmem:[%s7821_s2 + $0x8] sm:$0xff] }
 0x151   : > { %v1647_v30 = vsel %vm1646_vm6, %v1615_v29, %v1631_v23  ;;  %v1655_v31 = vsel %vm1646_vm6, %v1631_v23, %v1615_v29  ;;  %1754 = vmatpush1.msra.mxu0 %v1678_v2 }
 0x152   : > { %v1676_v0 = vmul.f32 %v5629_v18, %v1647_v30  ;;  %4610 = vmatmul.mubr.msk.f32.gmra.mxu1 %vm457_vm2, %v4602_v24  ;;  %v1677_v34 = vmul.f32 %v5618_v63, %v1655_v31  ;;  %v4607_v24 = vld [vmem:[%s7820_s1 + $0x170] sm:$0xff]  ;;  %2349 = vperm.xlu1 %4776, %v2335_v15  }
 0x153   : > { %v1885_v37 = vpop.permute.xlu1 %1884  ;;  %1561 = vmatprep.mubr.f32.mxu1 %v7826_v16 }
 0x154   : > { %1755 = vmatprep.subr.mxu0 %v1677_v34  ;;  %v1869_v1 = vpop.permute.xlu0 %1868 }
 0x155   : > { %v1894_v41 = vsel %vm1886_vm7, %v1869_v1, %v1885_v37  ;;  %v1902_v4 = vsel %vm1886_vm7, %v1885_v37, %v1869_v1  ;;  %1756 = vmatpush1.msra.mxu0 %v1676_v0  ;;  %v4608_v37 = vld [vmem:[%s7820_s1 + $0x178] sm:$0xff] }
 0x156   : > { %v1930_v42 = vmul.f32 %v5814_v35, %v1894_v41  ;;  %4611 = vmatmul.mubr.msk.f32.gmra.mxu1 %vm457_vm2, %v4603_v36  ;;  %4626 = vmatmul.mubr.msk.f32.vlgmr.msra.gmra.mxu0 %vm457_vm2, %v4618_v38  ;;  %v1931_v43 = vmul.f32 %v5820_v3, %v1902_v4  ;;  %v4623_v38 = vld [vmem:[%s7820_s1 + $0x1a8] sm:$0xff] }
 0x157   : > { %v1883_v5 = vpop.permute.xlu1 %1882  ;;  %1567 = vmatprep.mubr.f32.mxu1 %v7826_v16  ;;  %1795 = vmatprep.mubr.f32.mxu0 %v7826_v16 }
 0x158   : > { %1981 = vmatprep.subr.mxu1 %v1931_v43  ;;  %v1867_v6 = vpop.permute.xlu0 %1866  ;;  %v4624_v43 = vld [vmem:[%s7820_s1 + $0x1b0] sm:$0xff] }
 0x159   : > { %v1893_v48 = vsel %vm1886_vm7, %v1867_v6, %v1883_v5  ;;  %v1901_v49 = vsel %vm1886_vm7, %v1883_v5, %v1867_v6  ;;  %1982 = vmatpush1.msra.mxu1 %v1930_v42 }
 0x15a   : > { %v1928_v8 = vmul.f32 %v5814_v35, %v1893_v48  ;;  %4612 = vmatmul.mubr.msk.f32.gmra.mxu1 %vm457_vm2, %v4604_v45  ;;  %4627 = vmatmul.mubr.msk.f32.gmra.mxu0 %vm457_vm2, %v4619_v46  ;;  %v1929_v54 = vmul.f32 %v5820_v3, %v1901_v49  ;;  %v4625_v49 = vld [vmem:[%s7820_s1 + $0x1b8] sm:$0xff] }
 0x15b   : > { %v2125_v9 = vpop.permute.xlu1 %2124  ;;  %1573 = vmatprep.mubr.f32.mxu1 %v7826_v16  ;;  %1801 = vmatprep.mubr.f32.mxu0 %v7826_v16 }
 0x15c   : > { %1983 = vmatprep.subr.mxu1 %v1929_v54  ;;  %v2109_v56 = vpop.permute.xlu0 %2108 }
 0x15d   : > { %v2134_v20 = vsel %vm2126_vm8, %v2109_v56, %v2125_v9  ;;  %v2142_v57 = vsel %vm2126_vm8, %v2125_v9, %v2109_v56  ;;  %1984 = vmatpush1.msra.mxu1 %v1928_v8 }
 0x15e   : > { %v2170_v11 = vmul.f32 %v5856_v7, %v2134_v20  ;;  %4613 = vmatmul.mubr.msk.f32.gmra.mxu1 %vm457_vm2, %v4605_v21  ;;  %4628 = vmatmul.mubr.msk.f32.gmra.mxu0 %vm457_vm2, %v4620_v10  ;;  %v2171_v58 = vmul.f32 %v5867_v55, %v2142_v57 }
 0x15f   : > { %v1881_v60 = vpop.permute.xlu1 %1880  ;;  %1579 = vmatprep.mubr.f32.mxu1 %v7826_v16  ;;  %1807 = vmatprep.mubr.f32.mxu0 %v7826_v16 }
 0x160   : > { %2221 = vmatprep.subr.mxu0 %v2171_v58  ;;  %v1865_v62 = vpop.permute.xlu0 %1864 }
 0x161   : > { %v1892_v13 = vsel %vm1886_vm7, %v1865_v62, %v1881_v60  ;;  %v1900_v17 = vsel %vm1886_vm7, %v1881_v60, %v1865_v62  ;;  %2222 = vmatpush1.msra.mxu0 %v2170_v11 }
 0x162   : > { %v1926_v14 = vmul.f32 %v5814_v35, %v1892_v13  ;;  %4614 = vmatmul.mubr.msk.f32.gmra.mxu1 %vm457_vm2, %v4606_v12  ;;  %4629 = vmatmul.mubr.msk.f32.gmra.mxu0 %vm457_vm2, %v4621_v61  ;;  %v1927_v2 = vmul.f32 %v5820_v3, %v1900_v17 }
 0x163   : > { %v2123_v23 = vpop.permute.xlu1 %2122  ;;  %1585 = vmatprep.mubr.f32.mxu1 %v7826_v16  ;;  %1813 = vmatprep.mubr.f32.mxu0 %v7826_v16 }
 0x164   : > { %1985 = vmatprep.subr.mxu1 %v1927_v2  ;;  %v2107_v29 = vpop.permute.xlu0 %2106 }
 0x165   : > { %v2133_v30 = vsel %vm2126_vm8, %v2107_v29, %v2123_v23  ;;  %v2141_v31 = vsel %vm2126_vm8, %v2123_v23, %v2107_v29  ;;  %1986 = vmatpush1.msra.mxu1 %v1926_v14 }
 0x166   : > { %v2168_v0 = vmul.f32 %v5856_v7, %v2133_v30  ;;  %4615 = vmatmul.mubr.msk.f32.gmra.mxu1 %vm457_vm2, %v4607_v24  ;;  %4630 = vmatmul.mubr.msk.f32.gmra.mxu0 %vm457_vm2, %v4622_v28  ;;  %v2169_v34 = vmul.f32 %v5867_v55, %v2141_v31 }
 0x167   : > { %v1879_v36 = vpop.permute.xlu1 %1878  ;;  %1591 = vmatprep.mubr.f32.mxu1 %v7826_v16  ;;  %1819 = vmatprep.mubr.f32.mxu0 %v7826_v16 }
 0x168   : > { %2223 = vmatprep.subr.mxu0 %v2169_v34  ;;  %v1863_v39 = vpop.permute.xlu0 %1862 }
 0x169   : > { %v1891_v40 = vsel %vm1886_vm7, %v1863_v39, %v1879_v36  ;;  %v1899_v1 = vsel %vm1886_vm7, %v1879_v36, %v1863_v39  ;;  %2224 = vmatpush1.msra.mxu0 %v2168_v0 }
 0x16a   : > { %v1924_v41 = vmul.f32 %v5814_v35, %v1891_v40  ;;  %4616 = vmatmul.mubr.msk.f32.gmra.mxu1 %vm457_vm2, %v4608_v37  ;;  %4631 = vmatmul.mubr.msk.f32.gmra.mxu0 %vm457_vm2, %v4623_v38  ;;  %v1925_v4 = vmul.f32 %v5820_v3, %v1899_v1 }
 0x16b   : > { %v2121_v42 = vpop.permute.xlu1 %2120  ;;  %1825 = vmatprep.mubr.f32.mxu0 %v7826_v16  ;;  %2029 = vmatprep.mubr.f32.mxu1 %v7826_v16 }
 0x16c   : > { %1987 = vmatprep.subr.mxu1 %v1925_v4  ;;  %v2105_v44 = vpop.permute.xlu0 %2104 }
 0x16d   : > { %v2132_v5 = vsel %vm2126_vm8, %v2105_v44, %v2121_v42  ;;  %v2140_v45 = vsel %vm2126_vm8, %v2121_v42, %v2105_v44  ;;  %1988 = vmatpush1.msra.mxu1 %v1924_v41 }
 0x16e   : > { %v2166_v46 = vmul.f32 %v5856_v7, %v2132_v5  ;;  %4632 = vmatmul.mubr.msk.f32.gmra.mxu0 %vm457_vm2, %v4624_v43  ;;  %v2167_v6 = vmul.f32 %v5867_v55, %v2140_v45 }
 0x16f   : > { %v1877_v48 = vpop.permute.xlu1 %1876  ;;  %1831 = vmatprep.mubr.f32.mxu0 %v7826_v16 }
 0x170   : > { %2225 = vmatprep.subr.mxu0 %v2167_v6  ;;  %v1861_v52 = vpop.permute.xlu0 %1860 }
 0x171   : > { %v1890_v8 = vsel %vm1886_vm7, %v1861_v52, %v1877_v48  ;;  %v1898_v54 = vsel %vm1886_vm7, %v1877_v48, %v1861_v52  ;;  %2226 = vmatpush1.msra.mxu0 %v2166_v46 }
 0x172   : > { %v1922_v9 = vmul.f32 %v5814_v35, %v1890_v8  ;;  %4633 = vmatmul.mubr.msk.f32.gmra.mxu0 %vm457_vm2, %v4625_v49  ;;  %v1923_v21 = vmul.f32 %v5820_v3, %v1898_v54  ;;  %v4635_v8 = vld [vmem:[%s7820_s1 + $0x1c0] sm:$0xff] }
 0x173   : > { %v2119_v10 = vpop.permute.xlu1 %2118  ;;  %2269 = vmatprep.mubr.f32.mxu0 %v7826_v16 }
 0x174   : > { %1989 = vmatprep.subr.mxu1 %v1923_v21  ;;  %v2103_v56 = vpop.permute.xlu0 %2102 }
 0x175   : > { %v2131_v20 = vsel %vm2126_vm8, %v2103_v56, %v2119_v10  ;;  %v2139_v57 = vsel %vm2126_vm8, %v2119_v10, %v2103_v56  ;;  %1990 = vmatpush1.msra.mxu1 %v1922_v9  ;;  %v5967_v11 = vpop.f32.mrf.mxu0 }
 0x176   : > { %v2164_v58 = vmul.f32 %v5856_v7, %v2131_v20  ;;  %v2165_v59 = vmul.f32 %v5867_v55, %v2139_v57  ;;  %v4636_v20 = vld [vmem:[%s7820_s1 + $0x1c8] sm:$0xff] }
 0x177   : > { %v1875_v60 = vpop.permute.xlu1 %1874  ;;  %v5975_v13 = vpop.f32.mrf.mxu0 }
 0x178   : > { %2227 = vmatprep.subr.mxu0 %v2165_v59  ;;  %v1859_v12 = vpop.permute.xlu0 %1858 }
 0x179   : > { %v1889_v61 = vsel %vm1886_vm7, %v1859_v12, %v1875_v60  ;;  %v1897_v62 = vsel %vm1886_vm7, %v1875_v60, %v1859_v12  ;;  %2228 = vmatpush1.msra.mxu0 %v2164_v58  ;;  %v5983_v28 = vpop.f32.mrf.mxu0 }
 0x17a   : > { %v1920_v17 = vmul.f32 %v5814_v35, %v1889_v61  ;;  %v1921_v14 = vmul.f32 %v5820_v3, %v1897_v62 }
 0x17b   : > { %v2117_v2 = vpop.permute.xlu1 %2116  ;;  %v5991_v37 = vpop.f32.mrf.mxu0 }
 0x17c   : > { %1991 = vmatprep.subr.mxu1 %v1921_v14  ;;  %v2101_v15 = vpop.permute.xlu0 %2100 }
 0x17d   : > { %v2130_v23 = vsel %vm2126_vm8, %v2101_v15, %v2117_v2  ;;  %v2138_v24 = vsel %vm2126_vm8, %v2117_v2, %v2101_v15  ;;  %1992 = vmatpush1.msra.mxu1 %v1920_v17  ;;  %v5999_v42 = vpop.f32.mrf.mxu0  ;;  %v4637_v17 = vld [vmem:[%s7820_s1 + $0x1d0] sm:$0xff] }
 0x17e   : > { %v2162_v29 = vmul.f32 %v5856_v7, %v2130_v23  ;;  %v2163_v30 = vmul.f32 %v5867_v55, %v2138_v24  ;;  %v4652_v23 = vld [vmem:[%s7820_s1 + $0x200] sm:$0xff]  ;;  %v4638_v24 = vld [vmem:[%s7820_s1 + $0x1d8] sm:$0xff] }
 0x17f   : > { %v1873_v31 = vpop.permute.xlu1 %1872  ;;  %v6003_v45 = vpop.f32.mrf.mxu0 }
 0x180   : > { %2229 = vmatprep.subr.mxu0 %v2163_v30  ;;  %v1857_v0 = vpop.permute.xlu0 %1856  ;;  %v4653_v30 = vld [vmem:[%s7820_s1 + $0x208] sm:$0xff] }
 0x181   : > { %v1888_v34 = vsel %vm1886_vm7, %v1857_v0, %v1873_v31  ;;  %v1896_v36 = vsel %vm1886_vm7, %v1873_v31, %v1857_v0  ;;  %2230 = vmatpush1.msra.mxu0 %v2162_v29  ;;  %v6014_v54 = vpop.f32.mrf.mxu0  ;;  %v4639_v31 = vld [vmem:[%s7820_s1 + $0x1e0] sm:$0xff] }
 0x182   : > { %v1918_v38 = vmul.f32 %v5814_v35, %v1888_v34  ;;  %v1919_v39 = vmul.f32 %v5820_v3, %v1896_v36  ;;  %v4654_v34 = vld [vmem:[%s7820_s1 + $0x210] sm:$0xff]  ;;  %v4640_v36 = vld [vmem:[%s7820_s1 + $0x1e8] sm:$0xff] }
 0x183   : > { %v2115_v40 = vpop.permute.xlu1 %2114  ;;  %v6025_v57 = vpop.f32.mrf.mxu0 }
 0x184   : > { %1993 = vmatprep.subr.mxu1 %v1919_v39  ;;  %v2099_v1 = vpop.permute.xlu0 %2098  ;;  %7899 = vst [vmem:[#allocation22_spill] sm:$0xff] %v6025_v57  ;;  %v4655_v39 = vld [vmem:[%s7820_s1 + $0x218] sm:$0xff] }
 0x185   : > { %v2129_v41 = vsel %vm2126_vm8, %v2099_v1, %v2115_v40  ;;  %v2137_v4 = vsel %vm2126_vm8, %v2115_v40, %v2099_v1  ;;  %1994 = vmatpush1.msra.mxu1 %v1918_v38  ;;  %v6038_v14 = vpop.f32.mrf.mxu0  ;;  %v4641_v40 = vld [vmem:[%s7820_s1 + $0x1f0] sm:$0xff] }
 0x186   : > { %v2160_v43 = vmul.f32 %v5856_v7, %v2129_v41  ;;  %v2161_v44 = vmul.f32 %v5867_v55, %v2137_v4  ;;  %v4656_v41 = vld [vmem:[%s7820_s1 + $0x220] sm:$0xff]  ;;  %v4642_v4 = vld [vmem:[%s7820_s1 + $0x1f8] sm:$0xff] }
 0x187   : > { %v6050_v29 = vpop.f32.mrf.mxu0 }
 0x188   : > { %2231 = vmatprep.subr.mxu0 %v2161_v44  ;;  %v4657_v44 = vld [vmem:[%s7820_s1 + $0x228] sm:$0xff] }
 0x189   : > { %v1871_v5 = vpop.permute.xlu1 %1870  ;;  %2232 = vmatpush1.msra.mxu0 %v2160_v43  ;;  %v6062_v0 = vpop.f32.mrf.mxu0 }
 0x18a   : > { %v1855_v46 = vpop.permute.xlu0 %1854 }
 0x18b   : > { %v1887_v6 = vsel %vm1886_vm7, %v1855_v46, %v1871_v5  ;;  %v1895_v48 = vsel %vm1886_vm7, %v1871_v5, %v1855_v46  ;;  %v6074_v38 = vpop.f32.mrf.mxu0 }
 0x18c   : > { %v1916_v49 = vmul.f32 %v5814_v35, %v1887_v6  ;;  %v1917_v52 = vmul.f32 %v5820_v3, %v1895_v48  ;;  %v4658_v48 = vld [vmem:[%s7820_s1 + $0x230] sm:$0xff] }
 0x18d   : > { %v584_v1 = vpop.f32.mrf.mxu0 }
 0x18e   : > { %1995 = vmatprep.subr.mxu1 %v1917_v52 }
 0x18f   : > { %v2113_v9 = vpop.permute.xlu1 %2112  ;;  %1996 = vmatpush1.msra.mxu1 %v1916_v49  ;;  %v6096_v43 = vpop.f32.mrf.mxu0 }
 0x190   : > { %v2097_v21 = vpop.permute.xlu0 %2096  ;;  %4643 = vmatmul.mubr.msk.f32.vlgmr.msra.gmra.mxu1 %vm457_vm2, %v4635_v8 }
 0x191   : > { %v2128_v10 = vsel %vm2126_vm8, %v2097_v21, %v2113_v9  ;;  %v2136_v56 = vsel %vm2126_vm8, %v2113_v9, %v2097_v21  ;;  %2035 = vmatprep.mubr.f32.mxu1 %v7826_v16  ;;  %v590_v5 = vpop.f32.mrf.mxu0 }
 0x192   : > { %v2158_v58 = vmul.f32 %v5856_v7, %v2128_v10  ;;  %v2159_v59 = vmul.f32 %v5867_v55, %v2136_v56 }
 0x193   : > { %v2111_v60 = vpop.permute.xlu1 %2110  ;;  %v6113_v52 = vpop.f32.mrf.mxu0 }
 0x194   : > { %2233 = vmatprep.subr.mxu0 %v2159_v59  ;;  %v2095_v12 = vpop.permute.xlu0 %2094  ;;  %4644 = vmatmul.mubr.msk.f32.gmra.mxu1 %vm457_vm2, %v4636_v20 }
 0x195   : > { %v2127_v61 = vsel %vm2126_vm8, %v2095_v12, %v2111_v60  ;;  %v2135_v62 = vsel %vm2126_vm8, %v2111_v60, %v2095_v12  ;;  %2234 = vmatpush1.msra.mxu0 %v2158_v58  ;;  %2041 = vmatprep.mubr.f32.mxu1 %v7826_v16 }
 0x196   : > { %v2156_v2 = vmul.f32 %v5856_v7, %v2127_v61  ;;  %v2157_v15 = vmul.f32 %v5867_v55, %v2135_v62 }
 0x198   : > { %2235 = vmatprep.subr.mxu0 %v2157_v15  ;;  %4645 = vmatmul.mubr.msk.f32.gmra.mxu1 %vm457_vm2, %v4637_v17 }
 0x199   : > { %2236 = vmatpush1.msra.mxu0 %v2156_v2  ;;  %2047 = vmatprep.mubr.f32.mxu1 %v7826_v16 }
 0x19a   : > { %4660 = vmatmul.mubr.msk.f32.vlgmr.msra.gmra.mxu0 %vm457_vm2, %v4652_v23 }
 0x19b   : > { %2275 = vmatprep.mubr.f32.mxu0 %v7826_v16 }
 0x19c   : > { %4646 = vmatmul.mubr.msk.f32.gmra.mxu1 %vm457_vm2, %v4638_v24 }
 0x19d   : > { %2053 = vmatprep.mubr.f32.mxu1 %v7826_v16 }
 0x19e   : > { %4661 = vmatmul.mubr.msk.f32.gmra.mxu0 %vm457_vm2, %v4653_v30 }
 0x19f   : > { %2281 = vmatprep.mubr.f32.mxu0 %v7826_v16 }
 0x1a0   : > { %4647 = vmatmul.mubr.msk.f32.gmra.mxu1 %vm457_vm2, %v4639_v31 }
 0x1a1   : > { %2059 = vmatprep.mubr.f32.mxu1 %v7826_v16 }
 0x1a2   : > { %4662 = vmatmul.mubr.msk.f32.gmra.mxu0 %vm457_vm2, %v4654_v34 }
 0x1a3   : > { %2287 = vmatprep.mubr.f32.mxu0 %v7826_v16 }
 0x1a4   : > { %4648 = vmatmul.mubr.msk.f32.gmra.mxu1 %vm457_vm2, %v4640_v36 }
 0x1a5   : > { %2065 = vmatprep.mubr.f32.mxu1 %v7826_v16 }
 0x1a6   : > { %4663 = vmatmul.mubr.msk.f32.gmra.mxu0 %vm457_vm2, %v4655_v39 }
 0x1a7   : > { %2293 = vmatprep.mubr.f32.mxu0 %v7826_v16 }
 0x1a8   : > { %4649 = vmatmul.mubr.msk.f32.gmra.mxu1 %vm457_vm2, %v4641_v40 }
 0x1a9   : > { %2071 = vmatprep.mubr.f32.mxu1 %v7826_v16 }
 0x1aa   : > { %4664 = vmatmul.mubr.msk.f32.gmra.mxu0 %vm457_vm2, %v4656_v41 }
 0x1ab   : > { %2299 = vmatprep.mubr.f32.mxu0 %v7826_v16 }
 0x1ac   : > { %4650 = vmatmul.mubr.msk.f32.gmra.mxu1 %vm457_vm2, %v4642_v4 }
 0x1ad   : > { %v685_v46 = vpop.f32.mrf.mxu1  ;;  %2647 = vmatprep.mubr.f32.mxu1 %v7826_v16 }
 0x1ae   : > { %4665 = vmatmul.mubr.msk.f32.gmra.mxu0 %vm457_vm2, %v4657_v44  ;;  %v686_v6 = vadd.f32 %v685_v46, %v5967_v11  ;;  %v4659_v11 = vld [vmem:[%s7820_s1 + $0x238] sm:$0xff] }
 0x1af   : > { %2305 = vmatprep.mubr.f32.mxu0 %v7826_v16  ;;  %v6111_v49 = vpop.f32.mrf.mxu1 }
 0x1b1   : > { %v691_v8 = vpop.f32.mrf.mxu1 }
 0x1b2   : > { %4666 = vmatmul.mubr.msk.f32.gmra.mxu0 %vm457_vm2, %v4658_v48  ;;  %v692_v9 = vadd.f32 %v691_v8, %v5983_v28 }
 0x1b3   : > { %2311 = vmatprep.mubr.f32.mxu0 %v7826_v16  ;;  %v6121_v21 = vpop.f32.mrf.mxu1 }
 0x1b5   : > { %v909_v10 = vpop.f32.mrf.mxu0 }
 0x1b6   : > { %4667 = vmatmul.mubr.msk.f32.gmra.mxu0 %vm457_vm2, %v4659_v11  ;;  %v6124_v56 = vadd.f32 %v909_v10, %v686_v6 }
 0x1b7   : > { %v6126_v20 = vpop.f32.mrf.mxu0  ;;  %v697_v58 = vpop.f32.mrf.mxu1  ;;  %2784 = vmatprep.mubr.f32.mxu0 %v7826_v16 }
 0x1b8   : > { %v698_v28 = vadd.f32 %v697_v58, %v5999_v42 }
 0x1b9   : > { %v915_v59 = vpop.f32.mrf.mxu0  ;;  %v6130_v60 = vpop.f32.mrf.mxu1 }
 0x1ba   : > { %v958_v12 = vadd.f32 %v915_v59, %v692_v9 }
 0x1bb   : > { %v6132_v61 = vpop.f32.mrf.mxu0  ;;  %v703_v62 = vpop.f32.mrf.mxu1 }
 0x1bc   : > { %v704_v17 = vadd.f32 %v703_v62, %v6014_v54 }
 0x1bd   : > { %v921_v2 = vpop.f32.mrf.mxu0  ;;  %v6135_v15 = vpop.f32.mrf.mxu1 }
 0x1be   : > { %7900 = vst [vmem:[#allocation23_spill] sm:$0xff] %v6135_v15  ;;  %v960_v23 = vadd.f32 %v921_v2, %v698_v28 }
 0x1bf   : > { %v6137_v24 = vpop.f32.mrf.mxu0  ;;  %v709_v30 = vpop.f32.mrf.mxu1 }
 0x1c0   : > { %v710_v31 = vadd.f32 %v709_v30, %v6038_v14 }
 0x1c1   : > { %v927_v34 = vpop.f32.mrf.mxu0  ;;  %v6140_v36 = vpop.f32.mrf.mxu1 }
 0x1c2   : > { %v962_v42 = vadd.f32 %v927_v34, %v704_v17 }
 0x1c3   : > { %v6142_v39 = vpop.f32.mrf.mxu0 }
 0x1c4   : > { %7901 = vst [vmem:[#allocation24_spill] sm:$0xff] %v6142_v39 }
 0x1c5   : > { %v933_v40 = vpop.f32.mrf.mxu0 }
 0x1c6   : > { %v964_v41 = vadd.f32 %v933_v40, %v710_v31  ;;  %v715_v4 = vpop.f32.mrf.mxu1 }
 0x1c7   : > { %v716_v54 = vadd.f32 %v715_v4, %v6062_v0  ;;  %v6145_v44 = vpop.f32.mrf.mxu0 }
 0x1c8   : > { %v6147_v46 = vpop.f32.mrf.mxu1 }
 0x1ca   : > { %v939_v6 = vpop.f32.mrf.mxu0 }
 0x1cb   : > { %v966_v48 = vadd.f32 %v939_v6, %v716_v54 }
 0x1cc   : > { %v6149_v9 = vpop.f32.mrf.mxu0 }
 0x1ce   : > { %v721_v8 = vpop.f32.mrf.mxu1 }
 0x1cf   : > { %v722_v14 = vadd.f32 %v721_v8, %v584_v1 }
 0x1d0   : > { %v6151_v11 = vpop.f32.mrf.mxu1 }
 0x1d2   : > { %v945_v10 = vpop.f32.mrf.mxu0 }
 0x1d3   : > { %v968_v58 = vadd.f32 %v945_v10, %v722_v14 }
 0x1d4   : > { %v727_v28 = vpop.f32.mrf.mxu1  ;;  %v6153_v59 = vpop.f32.mrf.mxu0 }
 0x1d5   : > { %v728_v62 = vadd.f32 %v727_v28, %v590_v5 }
 0x1d6   : > { %v6155_v17 = vpop.f32.mrf.mxu1 }
 0x1d8   : > { %v951_v0 = vpop.f32.mrf.mxu0 }
 0x1d9   : > { %v970_v2 = vadd.f32 %v951_v0, %v728_v62 }
 0x1da   : > { %v6157_v30 = vpop.f32.mrf.mxu0  ;;  %v6159_v31 = vpop.f32.mrf.mxu1 }
 0x1dc   : > { %v6161_v34 = vpop.f32.mrf.mxu1 }
 0x1de   : > { %v6163_v40 = vpop.f32.mrf.mxu0 }
 0x1e0   : > { %v1155_v1 = vpop.f32.mrf.mxu1  ;;  %v6165_v4 = vpop.f32.mrf.mxu0 }
 0x1e1   : > { %v1198_v54 = vadd.f32 %v1155_v1, %v958_v12 }
 0x1e2   : > { %v6167_v6 = vpop.f32.mrf.mxu1  ;;  %v1317_v8 = vpop.f32.mrf.mxu0 }
 0x1e3   : > { %v6169_v5 = vadd.f32 %v1317_v8, %v1198_v54 }
 0x1e4   : > { %v1161_v14 = vpop.f32.mrf.mxu1  ;;  %v6171_v10 = vpop.f32.mrf.mxu0 }
 0x1e5   : > { %v1200_v28 = vadd.f32 %v1161_v14, %v960_v23 }
 0x1e6   : > { %v6173_v62 = vpop.f32.mrf.mxu1  ;;  %v1323_v0 = vpop.f32.mrf.mxu0 }
 0x1e7   : > { %v6175_v16 = vadd.f32 %v1323_v0, %v1200_v28 }
 0x1e8   : > { %v1167_v7 = vpop.f32.mrf.mxu1  ;;  %v6177_v35 = vpop.f32.mrf.mxu0 }
 0x1e9   : > { %v1202_v55 = vadd.f32 %v1167_v7, %v962_v42 }
 0x1ea   : > { %v6179_v3 = vpop.f32.mrf.mxu1  ;;  %v1329_v12 = vpop.f32.mrf.mxu0 }
 0x1eb   : > { %7902 = vst [vmem:[#allocation25_spill] sm:$0xff] %v6179_v3  ;;  %v6181_v1 = vadd.f32 %v1329_v12, %v1202_v55 }
 0x1ec   : > { %v1173_v54 = vpop.f32.mrf.mxu1  ;;  %v6183_v8 = vpop.f32.mrf.mxu0 }
 0x1ed   : > { %7903 = vst [vmem:[#allocation26_spill] sm:$0xff] %v6181_v1  ;;  %7904 = vst [vmem:[#allocation27_spill] sm:$0xff] %v6183_v8  ;;  %v1204_v18 = vadd.f32 %v1173_v54, %v964_v41  ;;  %v730_v8 = vadd.f32 %v6155_v17, %v6113_v52 }
 0x1ee   : > { %v1175_v63 = vpop.f32.mrf.mxu1  ;;  %v1335_v23 = vpop.f32.mrf.mxu0 }
 0x1ef   : > { %v1366_v14 = vadd.f32 %v1335_v23, %v1204_v18 }
 0x1f0   : > { %v1179_v51 = vpop.f32.mrf.mxu1  ;;  %v1337_v53 = vpop.f32.mrf.mxu0 }
 0x1f1   : > { %v1206_v28 = vadd.f32 %v1179_v51, %v966_v48 }
 0x1f2   : > { %v1181_v0 = vpop.f32.mrf.mxu1  ;;  %v1341_v22 = vpop.f32.mrf.mxu0 }
 0x1f3   : > { %v1368_v27 = vadd.f32 %v1341_v22, %v1206_v28  ;;  %v712_v22 = vadd.f32 %v6140_v36, %v6050_v29  ;;  %v724_v28 = vadd.f32 %v6151_v11, %v6096_v43 }
 0x1f4   : > { %v1185_v47 = vpop.f32.mrf.mxu1  ;;  %v1343_v7 = vpop.f32.mrf.mxu0 }
 0x1f5   : > { %v1208_v42 = vadd.f32 %v1185_v47, %v968_v58 }
 0x1f6   : > { %v1187_v50 = vpop.f32.mrf.mxu1  ;;  %v1347_v32 = vpop.f32.mrf.mxu0 }
 0x1f7   : > { %v1370_v55 = vadd.f32 %v1347_v32, %v1208_v42 }
 0x1f8   : > { %v1191_v12 = vpop.f32.mrf.mxu1  ;;  %v1349_v33 = vpop.f32.mrf.mxu0 }
 0x1f9   : > { %v1210_v25 = vadd.f32 %v1191_v12, %v970_v2  ;;  %v965_v2 = vadd.f32 %v6145_v44, %v712_v22 }
 0x1fa   : > { %v1353_v26 = vpop.f32.mrf.mxu0  ;;  %v1193_v54 = vpop.f32.mrf.mxu1 }
 0x1fb   : > { %v1372_v41 = vadd.f32 %v1353_v26, %v1210_v25  ;;  %v718_v25 = vadd.f32 %v6147_v46, %v6074_v38  ;;  %v1205_v12 = vadd.f32 %v1175_v63, %v965_v2  ;;  %v969_v38 = vadd.f32 %v6153_v59, %v724_v28 }
 0x1fc   : > { %v1355_v48 = vpop.f32.mrf.mxu0 }
 0x1fd   : > { %v967_v42 = vadd.f32 %v6149_v9, %v718_v25  ;;  %v1367_v43 = vadd.f32 %v1337_v53, %v1205_v12  ;;  %v971_v25 = vadd.f32 %v6157_v30, %v730_v8  ;;  %v1209_v59 = vadd.f32 %v1187_v50, %v969_v38 }
 0x1ff   : > { %v1207_v11 = vadd.f32 %v1181_v0, %v967_v42  ;;  %v1371_v17 = vadd.f32 %v1349_v33, %v1209_v59 }
 0x20e   : > { %v6185_v19 = vpop.f32.mrf.mxu1 }
 0x210   : > { %v6187_v18 = vpop.f32.mrf.mxu1 }
 0x212   : > { %v6189_v51 = vpop.f32.mrf.mxu1 }
 0x214   : > { %v6193_v47 = vpop.f32.mrf.mxu1 }
 0x216   : > { %v6195_v58 = vpop.f32.mrf.mxu1  ;;  %v6197_v32 = vpop.f32.mrf.mxu0 }
 0x218   : > { %v6202_v26 = vpop.f32.mrf.mxu1  ;;  %v6204_v23 = vpop.f32.mrf.mxu0 }
 0x21a   : > { %v6208_v29 = vpop.f32.mrf.mxu1  ;;  %v6210_v36 = vpop.f32.mrf.mxu0 }
 0x21b   : > { %7905 = vst [vmem:[#allocation28_spill] sm:$0xff] %v6208_v29 }
 0x21c   : > { %v6213_v1 = vpop.f32.mrf.mxu1  ;;  %v6215_v44 = vpop.f32.mrf.mxu0 }
 0x21d   : > { %7906 = vst [vmem:[#allocation29_spill] sm:$0xff] %v6213_v1  ;;  %v1369_v1 = vadd.f32 %v1343_v7, %v1207_v11 }
 0x21e   : > { %v1575_v46 = vpop.f32.mrf.mxu1  ;;  %v6218_v22 = vpop.f32.mrf.mxu0 }
 0x21f   : > { %7907 = vst [vmem:[#allocation30_spill] sm:$0xff] %v6218_v22  ;;  %v1606_v29 = vadd.f32 %v1575_v46, %v1366_v14  ;;  %v1211_v14 = vadd.f32 %v1193_v54, %v971_v25 }
 0x220   : > { %v1577_v3 = vpop.f32.mrf.mxu1  ;;  %v6222_v39 = vpop.f32.mrf.mxu0 }
 0x221   : > { %v1607_v9 = vadd.f32 %v1577_v3, %v1367_v43  ;;  %v1373_v50 = vadd.f32 %v1355_v48, %v1211_v14  ;;  %v6247_v48 = vpop.permute.xlu0 %2379 }
 0x222   : > { %v1581_v63 = vpop.f32.mrf.mxu1  ;;  %v6224_v2 = vpop.f32.mrf.mxu0 }
 0x223   : > { %v1608_v28 = vadd.f32 %v1581_v63, %v1368_v27 }
 0x224   : > { %v1583_v15 = vpop.f32.mrf.mxu1  ;;  %v6227_v57 = vpop.f32.mrf.mxu0 }
 0x225   : > { %v1609_v22 = vadd.f32 %v1583_v15, %v1369_v1 }
 0x226   : > { %v1587_v52 = vpop.f32.mrf.mxu1  ;;  %v1815_v53 = vpop.f32.mrf.mxu0 }
 0x227   : > { %v1610_v0 = vadd.f32 %v1587_v52, %v1370_v55  ;;  %v6229_v42 = vadd.f32 %v1815_v53, %v1606_v29  ;;  %v6252_v52 = vpop.permute.xlu0 %2364  ;;  %v694_v53 = vadd.f32 %v6121_v21, %v5991_v37 }
 0x228   : > { %v1589_v3 = vpop.f32.mrf.mxu1  ;;  %v1817_v12 = vpop.f32.mrf.mxu0 }
 0x229   : > { %v1611_v46 = vadd.f32 %v1589_v3, %v1371_v17  ;;  %v6231_v43 = vadd.f32 %v1817_v12, %v1607_v9 }
 0x22a   : > { %v1593_v30 = vpop.f32.mrf.mxu1  ;;  %v1821_v8 = vpop.f32.mrf.mxu0 }
 0x22b   : > { %v1612_v27 = vadd.f32 %v1593_v30, %v1372_v41  ;;  %v6233_v7 = vadd.f32 %v1821_v8, %v1608_v28  ;;  %v688_v41 = vadd.f32 %v6111_v49, %v5975_v13  ;;  %v1196_v28 = vadd.f32 %v6159_v31, %v6124_v56  ;;  %v6263_v12 = vpop.permute.xlu0 %2354 }
 0x22c   : > { %v1595_v38 = vpop.f32.mrf.mxu1  ;;  %v1823_v15 = vpop.f32.mrf.mxu0  ;;  %v959_v13 = vadd.f32 %v6132_v61, %v694_v53 }
 0x22d   : > { %v1613_v1 = vadd.f32 %v1595_v38, %v1373_v50  ;;  %v6235_v11 = vadd.f32 %v1823_v15, %v1609_v22  ;;  %v957_v22 = vadd.f32 %v6126_v20, %v688_v41  ;;  %v1358_v14 = vadd.f32 %v6163_v40, %v1196_v28 }
 0x22e   : > { %v1827_v33 = vpop.f32.mrf.mxu0  ;;  %v1199_v21 = vadd.f32 %v6167_v6, %v959_v13 }
 0x22f   : > { %v6237_v55 = vadd.f32 %v1827_v33, %v1610_v0  ;;  %v1197_v17 = vadd.f32 %v6161_v34, %v957_v22  ;;  %v6258_v0 = vpop.permute.xlu1 %2374  ;;  %v1598_v20 = vadd.f32 %v6185_v19, %v1358_v14  ;;  %v2345_v61 = vpop.permute.xlu0 %2344 }
 0x230   : > { %v1829_v54 = vpop.f32.mrf.mxu0 }
 0x231   : > { %v6239_v29 = vadd.f32 %v1829_v54, %v1611_v46  ;;  %v1359_v49 = vadd.f32 %v6165_v4, %v1197_v17  ;;  %v1838_v31 = vadd.f32 %v6197_v32, %v1598_v20  ;;  %v7908_v20 = vld [vmem:[#allocation30_spill] sm:$0xff] }
 0x232   : > { %v1833_v63 = vpop.f32.mrf.mxu0 }
 0x233   : > { %v6241_v9 = vadd.f32 %v1833_v63, %v1612_v27  ;;  %v1599_v56 = vadd.f32 %v6187_v18, %v1359_v49  ;;  %v6269_v46 = vpop.permute.xlu1 %2369  ;;  %v1361_v27 = vadd.f32 %v6171_v10, %v1199_v21  ;;  %v1600_v18 = vadd.f32 %v6189_v51, %v6169_v5  ;;  %v7910_v21 = vld [vmem:[#allocation23_spill] sm:$0xff] }
 0x234   : > { %v1835_v25 = vpop.f32.mrf.mxu0 }
 0x235   : > { %v6243_v59 = vadd.f32 %v1835_v25, %v1613_v1  ;;  %v1839_v34 = vadd.f32 %v6204_v23, %v1599_v56  ;;  %v1601_v6 = vadd.f32 %v6193_v47, %v1361_v27  ;;  %v1840_v23 = vadd.f32 %v6210_v36, %v1600_v18 }
 0x236   : > { %v700_v25 = vadd.f32 %v6130_v60, %v6003_v45 }
 0x237   : > { %v6278_v63 = vpop.permute.xlu1 %2359  ;;  %v1841_v10 = vadd.f32 %v6215_v44, %v1601_v6  ;;  %v7915_v6 = vld [vmem:[#allocation28_spill] sm:$0xff] }
 0x238   : > { %v961_v22 = vadd.f32 %v6137_v24, %v700_v25 }
 0x23a   : > { %v1201_v44 = vadd.f32 %v6173_v62, %v961_v22 }
 0x23b   : > { %v2350_v45 = vpop.permute.xlu1 %2349 }
 0x23c   : > { %v1363_v14 = vadd.f32 %v6177_v35, %v1201_v44 }
 0x23e   : > { %v1603_v49 = vadd.f32 %v6202_v26, %v1363_v14  ;;  %v7911_v26 = vld [vmem:[#allocation24_spill] sm:$0xff] }
 0x250   : > { %v2031_v3 = vpop.f32.mrf.mxu1 }
 0x251   : > { %v2078_v40 = vadd.f32 %v2031_v3, %v1838_v31  ;;  %v1602_v3 = vadd.f32 %v6195_v58, %v6175_v16 }
 0x252   : > { %v2033_v37 = vpop.f32.mrf.mxu1 }
 0x253   : > { %v2079_v8 = vadd.f32 %v2033_v37, %v1839_v34  ;;  %v1842_v56 = vadd.f32 %v7908_v20, %v1602_v3  ;;  %v7909_v37 = vld [vmem:[#allocation22_spill] sm:$0xff]  ;;  %v1843_v34 = vadd.f32 %v6222_v39, %v1603_v49  ;;  %v7912_v39 = vld [vmem:[#allocation25_spill] sm:$0xff] }
 0x254   : > { %v2037_v50 = vpop.f32.mrf.mxu1  ;;  %v706_v35 = vadd.f32 %v7910_v21, %v7909_v37 }
 0x255   : > { %v2080_v41 = vadd.f32 %v2037_v50, %v1840_v23 }
 0x256   : > { %v2039_v54 = vpop.f32.mrf.mxu1 }
 0x257   : > { %v2081_v47 = vadd.f32 %v2039_v54, %v1841_v10  ;;  %v7916_v54 = vld [vmem:[#allocation29_spill] sm:$0xff] }
 0x258   : > { %v2043_v24 = vpop.f32.mrf.mxu1 }
 0x259   : > { %v2082_v16 = vadd.f32 %v2043_v24, %v1842_v56 }
 0x25a   : > { %v2271_v30 = vpop.f32.mrf.mxu0  ;;  %v2045_v31 = vpop.f32.mrf.mxu1 }
 0x25b   : > { %v2318_v4 = vadd.f32 %v2271_v30, %v2078_v40  ;;  %v2083_v40 = vadd.f32 %v2045_v31, %v1843_v34 }
 0x25c   : > { %v2273_v19 = vpop.f32.mrf.mxu0  ;;  %v2049_v18 = vpop.f32.mrf.mxu1 }
 0x25d   : > { %v2382_v32 = vadd.f32 %v2345_v61, %v2318_v4  ;;  %v2319_v38 = vadd.f32 %v2273_v19, %v2079_v8 }
 0x25e   : > { %v2277_v15 = vpop.f32.mrf.mxu0 }
 0x25f   : > { %v6276_v1 = vmax.f32 %v2382_v32, 0.0  ;;  %v2383_v33 = vadd.f32 %v2345_v61, %v2319_v38  ;;  %v2320_v36 = vadd.f32 %v2277_v15, %v2080_v41  ;;  %v963_v61 = vadd.f32 %v7911_v26, %v706_v35  ;;  %v7913_v32 = vld [vmem:[#allocation27_spill] sm:$0xff]  ;;  %v7914_v15 = vld [vmem:[#allocation26_spill] sm:$0xff]  ;;  %v2051_v41 = vpop.f32.mrf.mxu1 }
 0x260   : > { %v2279_v51 = vpop.f32.mrf.mxu0  ;;  %v1604_v23 = vadd.f32 %v7915_v6, %v7914_v15 }
 0x261   : > { %v6283_v5 = vmax.f32 %v2383_v33, 0.0  ;;  %2486 = vrot.lane.b32.xlu1 %v6276_v1, %s4838_s11  ;;  %v2321_v28 = vadd.f32 %v2279_v51, %v2081_v47  ;;  %v2384_v60 = vadd.f32 %v2350_v45, %v2320_v36  ;;  %v1203_v50 = vadd.f32 %v7912_v39, %v963_v61  ;;  %v2055_v44 = vpop.f32.mrf.mxu1 }
 0x262   : > { %v2283_v62 = vpop.f32.mrf.mxu0  ;;  %v1844_v10 = vadd.f32 %v6224_v2, %v1604_v23 }
 0x263   : > { %2502 = vrot.lane.b32.xlu0 %v6283_v5, %s4838_s11  ;;  %v2385_v53 = vadd.f32 %v2350_v45, %v2321_v28  ;;  %v6297_v17 = vmax.f32 %v2384_v60, 0.0  ;;  %v2322_v30 = vadd.f32 %v2283_v62, %v2082_v16  ;;  %v1365_v38 = vadd.f32 %v7913_v32, %v1203_v50  ;;  %v2057_v14 = vpop.f32.mrf.mxu1 }
 0x264   : > { %v2285_v58 = vpop.f32.mrf.mxu0  ;;  %v2084_v47 = vadd.f32 %v2049_v18, %v1844_v10  ;;  %v2087_v62 = vadd.f32 %v2057_v14, %v6231_v43 }
 0x265   : > { %2414 = vrot.lane.b32.xlu1 %v6276_v1, %s4840_s12  ;;  %v6304_v13 = vmax.f32 %v2385_v53, 0.0  ;;  %v2323_v8 = vadd.f32 %v2285_v58, %v2083_v40  ;;  %v2386_v4 = vadd.f32 %v6263_v12, %v2322_v30  ;;  %v1605_v25 = vadd.f32 %v7916_v54, %v1365_v38  ;;  %v2061_v43 = vpop.f32.mrf.mxu1 }
 0x267   : > { %2430 = vrot.lane.b32.xlu0 %v6283_v5, %s4840_s12  ;;  %v2387_v19 = vadd.f32 %v6263_v12, %v2323_v8  ;;  %v6329_v27 = vmax.f32 %v2386_v4, 0.0  ;;  %v2289_v12 = vpop.f32.mrf.mxu0  ;;  %v1845_v51 = vadd.f32 %v6227_v57, %v1605_v25  ;;  %v2063_v35 = vpop.f32.mrf.mxu1 }
 0x268   : > { %v2324_v28 = vadd.f32 %v2289_v12, %v2084_v47  ;;  %v2089_v16 = vadd.f32 %v2063_v35, %v6235_v11 }
 0x269   : > { %2833 = vrot.lane.b32.xlu1 %v6276_v1, %s4841_s13  ;;  %v6336_v33 = vmax.f32 %v2387_v19, 0.0  ;;  %v2291_v36 = vpop.f32.mrf.mxu0  ;;  %v2085_v22 = vadd.f32 %v2051_v41, %v1845_v51  ;;  %v2067_v11 = vpop.f32.mrf.mxu1 }
 0x26a   : > { %v2388_v2 = vadd.f32 %v6278_v63, %v2324_v28 }
 0x26b   : > { %2849 = vrot.lane.b32.xlu0 %v6283_v5, %s4841_s13  ;;  %v2325_v45 = vadd.f32 %v2291_v36, %v2085_v22  ;;  %v2295_v24 = vpop.f32.mrf.mxu0  ;;  %v2069_v4 = vpop.f32.mrf.mxu1 }
 0x26c   : > { %v6357_v60 = vmax.f32 %v2388_v2, 0.0  ;;  %v2091_v50 = vadd.f32 %v2069_v4, %v6239_v29 }
 0x26d   : > { %2488 = vrot.lane.b32.xlu1 %v6297_v17, %s4838_s11  ;;  %v2389_v57 = vadd.f32 %v6278_v63, %v2325_v45  ;;  %v2086_v63 = vadd.f32 %v2055_v44, %v6229_v42  ;;  %v2297_v3 = vpop.f32.mrf.mxu0  ;;  %v2073_v29 = vpop.f32.mrf.mxu1 }
 0x26e   : > { %v2327_v20 = vadd.f32 %v2297_v3, %v2087_v62 }
 0x26f   : > { %2504 = vrot.lane.b32.xlu0 %v6304_v13, %s4838_s11  ;;  %v6361_v53 = vmax.f32 %v2389_v57, 0.0  ;;  %v2326_v49 = vadd.f32 %v2295_v24, %v2086_v63  ;;  %v2301_v21 = vpop.f32.mrf.mxu0  ;;  %v2075_v23 = vpop.f32.mrf.mxu1 }
 0x270   : > { %v2391_v42 = vadd.f32 %v6252_v52, %v2327_v20  ;;  %v2093_v54 = vadd.f32 %v2075_v23, %v6243_v59 }
 0x271   : > { %2416 = vrot.lane.b32.xlu1 %v6297_v17, %s4840_s12  ;;  %v2390_v56 = vadd.f32 %v6252_v52, %v2326_v49  ;;  %v2088_v52 = vadd.f32 %v2061_v43, %v6233_v7  ;;  %v2303_v34 = vpop.f32.mrf.mxu0 }
 0x272   : > { %v6385_v37 = vmax.f32 %v2391_v42, 0.0  ;;  %v2329_v40 = vadd.f32 %v2303_v34, %v2089_v16 }
 0x273   : > { %2432 = vrot.lane.b32.xlu0 %v6304_v13, %s4840_s12  ;;  %v6381_v31 = vmax.f32 %v2390_v56, 0.0  ;;  %v2328_v58 = vadd.f32 %v2301_v21, %v2088_v52  ;;  %v2307_v8 = vpop.f32.mrf.mxu0 }
 0x274   : > { %v2393_v7 = vadd.f32 %v6269_v46, %v2329_v40 }
 0x275   : > { %2835 = vrot.lane.b32.xlu1 %v6297_v17, %s4841_s13  ;;  %7917 = vst [vmem:[#allocation30_spill] sm:$0xff] %v6381_v31  ;;  %v2392_v30 = vadd.f32 %v6269_v46, %v2328_v58  ;;  %v2090_v46 = vadd.f32 %v2067_v11, %v6237_v55  ;;  %v2309_v39 = vpop.f32.mrf.mxu0 }
 0x276   : > { %v6409_v61 = vmax.f32 %v2393_v7, 0.0  ;;  %v2331_v18 = vadd.f32 %v2309_v39, %v2091_v50 }
 0x277   : > { %2851 = vrot.lane.b32.xlu0 %v6304_v13, %s4841_s13  ;;  %v6405_v26 = vmax.f32 %v2392_v30, 0.0  ;;  %v2330_v19 = vadd.f32 %v2307_v8, %v2090_v46  ;;  %v2313_v6 = vpop.f32.mrf.mxu0 }
 0x278   : > { %7919 = vst [vmem:[#allocation23_spill] sm:$0xff] %v6409_v61  ;;  %v2395_v55 = vadd.f32 %v6258_v0, %v2331_v18 }
 0x279   : > { %3061 = vrot.lane.b32.xlu1 %v6297_v17, %s4842_s14  ;;  %7918 = vst [vmem:[#allocation22_spill] sm:$0xff] %v6405_v26  ;;  %v2394_v32 = vadd.f32 %v6258_v0, %v2330_v19  ;;  %v2092_v0 = vadd.f32 %v2073_v29, %v6241_v9  ;;  %v2315_v12 = vpop.f32.mrf.mxu0 }
 0x27a   : > { %v6433_v15 = vmax.f32 %v2395_v55, 0.0  ;;  %v2333_v10 = vadd.f32 %v2315_v12, %v2093_v54 }
 0x27b   : > { %3077 = vrot.lane.b32.xlu0 %v6304_v13, %s4842_s14  ;;  %v6429_v38 = vmax.f32 %v2394_v32, 0.0  ;;  %v2332_v25 = vadd.f32 %v2313_v6, %v2092_v0 }
 0x27c   : > { %7921 = vst [vmem:[#allocation25_spill] sm:$0xff] %v6433_v15  ;;  %v2397_v9 = vadd.f32 %v6247_v48, %v2333_v10 }
 0x27d   : > { %2490 = vrot.lane.b32.xlu1 %v6329_v27, %s4838_s11  ;;  %7920 = vst [vmem:[#allocation24_spill] sm:$0xff] %v6429_v38  ;;  %v2396_v41 = vadd.f32 %v6247_v48, %v2332_v25  ;;  %v3518_v25 = vld [vmem:[#allocation2 + $0x170] sm:$0xff] }
 0x27e   : > { %v6457_v59 = vmax.f32 %v2397_v9, 0.0 }
 0x27f   : > { %2506 = vrot.lane.b32.xlu0 %v6336_v33, %s4838_s11  ;;  %v6453_v51 = vmax.f32 %v2396_v41, 0.0 }
 0x280   : > { %7923 = vst [vmem:[#allocation26_spill] sm:$0xff] %v6457_v59 }
 0x281   : > { %2418 = vrot.lane.b32.xlu1 %v6329_v27, %s4840_s12  ;;  %7922 = vst [vmem:[#allocation27_spill] sm:$0xff] %v6453_v51 }
 0x283   : > { %2434 = vrot.lane.b32.xlu0 %v6336_v33, %s4840_s12 }
 0x285   : > { %2837 = vrot.lane.b32.xlu1 %v6329_v27, %s4841_s13 }
 0x287   : > { %2853 = vrot.lane.b32.xlu0 %v6336_v33, %s4841_s13 }
 0x289   : > { %3063 = vrot.lane.b32.xlu1 %v6329_v27, %s4842_s14 }
 0x28b   : > { %3079 = vrot.lane.b32.xlu0 %v6336_v33, %s4842_s14 }
 0x28d   : > { %2492 = vrot.lane.b32.xlu1 %v6357_v60, %s4838_s11 }
 0x28f   : > { %2508 = vrot.lane.b32.xlu0 %v6361_v53, %s4838_s11 }
 0x291   : > { %2420 = vrot.lane.b32.xlu1 %v6357_v60, %s4840_s12 }
 0x293   : > { %2436 = vrot.lane.b32.xlu0 %v6361_v53, %s4840_s12 }
 0x295   : > { %2839 = vrot.lane.b32.xlu1 %v6357_v60, %s4841_s13 }
 0x297   : > { %2855 = vrot.lane.b32.xlu0 %v6361_v53, %s4841_s13 }
 0x299   : > { %3065 = vrot.lane.b32.xlu1 %v6357_v60, %s4842_s14 }
 0x29b   : > { %3081 = vrot.lane.b32.xlu0 %v6361_v53, %s4842_s14 }
 0x29d   : > { %2494 = vrot.lane.b32.xlu1 %v6381_v31, %s4838_s11 }
 0x29f   : > { %2510 = vrot.lane.b32.xlu0 %v6385_v37, %s4838_s11 }
 0x2a1   : > { %2422 = vrot.lane.b32.xlu1 %v6381_v31, %s4840_s12 }
 0x2a3   : > { %2438 = vrot.lane.b32.xlu0 %v6385_v37, %s4840_s12 }
 0x2a5   : > { %2841 = vrot.lane.b32.xlu1 %v6381_v31, %s4841_s13 }
 0x2a7   : > { %2857 = vrot.lane.b32.xlu0 %v6385_v37, %s4841_s13 }
 0x2a9   : > { %3067 = vrot.lane.b32.xlu1 %v6381_v31, %s4842_s14 }
 0x2ab   : > { %3083 = vrot.lane.b32.xlu0 %v6385_v37, %s4842_s14 }
 0x2ad   : > { %2496 = vrot.lane.b32.xlu1 %v6405_v26, %s4838_s11 }
 0x2af   : > { %2512 = vrot.lane.b32.xlu0 %v6409_v61, %s4838_s11 }
 0x2b1   : > { %2424 = vrot.lane.b32.xlu1 %v6405_v26, %s4840_s12 }
 0x2b3   : > { %2440 = vrot.lane.b32.xlu0 %v6409_v61, %s4840_s12 }
 0x2b5   : > { %2843 = vrot.lane.b32.xlu1 %v6405_v26, %s4841_s13 }
 0x2b7   : > { %2859 = vrot.lane.b32.xlu0 %v6409_v61, %s4841_s13 }
 0x2b9   : > { %3069 = vrot.lane.b32.xlu1 %v6405_v26, %s4842_s14 }
 0x2bb   : > { %3085 = vrot.lane.b32.xlu0 %v6409_v61, %s4842_s14 }
 0x2bd   : > { %2498 = vrot.lane.b32.xlu1 %v6429_v38, %s4838_s11 }
 0x2bf   : > { %2514 = vrot.lane.b32.xlu0 %v6433_v15, %s4838_s11 }
 0x2c1   : > { %2426 = vrot.lane.b32.xlu1 %v6429_v38, %s4840_s12 }
 0x2c3   : > { %2442 = vrot.lane.b32.xlu0 %v6433_v15, %s4840_s12 }
 0x2c5   : > { %2845 = vrot.lane.b32.xlu1 %v6429_v38, %s4841_s13 }
 0x2c7   : > { %2861 = vrot.lane.b32.xlu0 %v6433_v15, %s4841_s13 }
 0x2c9   : > { %3071 = vrot.lane.b32.xlu1 %v6429_v38, %s4842_s14 }
 0x2cb   : > { %3087 = vrot.lane.b32.xlu0 %v6433_v15, %s4842_s14 }
 0x2cd   : > { %2500 = vrot.lane.b32.xlu1 %v6453_v51, %s4838_s11 }
 0x2cf   : > { %2516 = vrot.lane.b32.xlu0 %v6457_v59, %s4838_s11 }
 0x2d1   : > { %3059 = vrot.lane.b32.xlu1 %v6276_v1, %s4842_s14 }
 0x2d3   : > { %3075 = vrot.lane.b32.xlu0 %v6283_v5, %s4842_s14  ;;  %v6467_v48 = vpop.permute.xlu1 %2486 }
 0x2d5   : > { %v6469_v47 = vpop.permute.xlu0 %2502  ;;  %2428 = vrot.lane.b32.xlu1 %v6453_v51, %s4840_s12 }
 0x2d7   : > { %3475 = vrot.lane.b32.xlu0 %v6433_v15, %s4843_s17  ;;  %v6475_v36 = vpop.permute.xlu1 %2414 }
 0x2d9   : > { %v6477_v22 = vpop.permute.xlu0 %2430  ;;  %2847 = vrot.lane.b32.xlu1 %v6453_v51, %s4841_s13 }
 0x2db   : > { %3473 = vrot.lane.b32.xlu0 %v6409_v61, %s4843_s17  ;;  %v6483_v28 = vpop.permute.xlu1 %2833 }
 0x2dc   : > { %7924 = vst [vmem:[#allocation28_spill] sm:$0xff] %v6483_v28 }
 0x2dd   : > { %v6485_v45 = vpop.permute.xlu0 %2849  ;;  %3073 = vrot.lane.b32.xlu1 %v6453_v51, %s4842_s14 }
 0x2de   : > { %7925 = vst [vmem:[#allocation29_spill] sm:$0xff] %v6485_v45 }
 0x2df   : > { %3701 = vrot.lane.b32.xlu0 %v6433_v15, %s4844_s18  ;;  %v6491_v2 = vpop.permute.xlu1 %2488 }
 0x2e1   : > { %v6493_v57 = vpop.permute.xlu0 %2504  ;;  %3461 = vrot.lane.b32.xlu1 %v6453_v51, %s4843_s17 }
 0x2e3   : > { %3471 = vrot.lane.b32.xlu0 %v6385_v37, %s4843_s17  ;;  %v6499_v44 = vpop.permute.xlu1 %2416 }
 0x2e5   : > { %v6501_v24 = vpop.permute.xlu0 %2432  ;;  %3459 = vrot.lane.b32.xlu1 %v6429_v38, %s4843_s17 }
 0x2e7   : > { %3699 = vrot.lane.b32.xlu0 %v6409_v61, %s4844_s18  ;;  %v6507_v14 = vpop.permute.xlu1 %2835 }
 0x2e9   : > { %v6509_v63 = vpop.permute.xlu0 %2851  ;;  %3687 = vrot.lane.b32.xlu1 %v6453_v51, %s4844_s18 }
 0x2eb   : > { %2444 = vrot.lane.b32.xlu0 %v6457_v59, %s4840_s12  ;;  %v6515_v3 = vpop.permute.xlu1 %3061 }
 0x2ec   : > { %7926 = vst [vmem:[#allocation31_spill] sm:$0xff] %v6515_v3 }
 0x2ed   : > { %v6517_v62 = vpop.permute.xlu0 %3077  ;;  %3457 = vrot.lane.b32.xlu1 %v6405_v26, %s4843_s17 }
 0x2ee   : > { %7927 = vst [vmem:[#allocation32_spill] sm:$0xff] %v6517_v62 }
 0x2ef   : > { %2863 = vrot.lane.b32.xlu0 %v6457_v59, %s4841_s13  ;;  %v6523_v49 = vpop.permute.xlu1 %2490 }
 0x2f1   : > { %v6525_v20 = vpop.permute.xlu0 %2506  ;;  %3685 = vrot.lane.b32.xlu1 %v6429_v38, %s4844_s18 }
 0x2f3   : > { %3469 = vrot.lane.b32.xlu0 %v6361_v53, %s4843_s17  ;;  %v6531_v56 = vpop.permute.xlu1 %2418 }
 0x2f5   : > { %v6533_v42 = vpop.permute.xlu0 %2434  ;;  %3455 = vrot.lane.b32.xlu1 %v6381_v31, %s4843_s17 }
 0x2f7   : > { %3697 = vrot.lane.b32.xlu0 %v6385_v37, %s4844_s18  ;;  %v6539_v43 = vpop.permute.xlu1 %2837 }
 0x2f9   : > { %v6541_v21 = vpop.permute.xlu0 %2853  ;;  %3683 = vrot.lane.b32.xlu1 %v6405_v26, %s4844_s18 }
 0x2fb   : > { %3467 = vrot.lane.b32.xlu0 %v6336_v33, %s4843_s17  ;;  %v6547_v35 = vpop.permute.xlu1 %3063 }
 0x2fc   : > { %7928 = vst [vmem:[#allocation33_spill] sm:$0xff] %v6547_v35 }
 0x2fd   : > { %v6549_v52 = vpop.permute.xlu0 %3079  ;;  %3453 = vrot.lane.b32.xlu1 %v6357_v60, %s4843_s17 }
 0x2fe   : > { %7929 = vst [vmem:[#allocation34_spill] sm:$0xff] %v6549_v52 }
 0x2ff   : > { %3695 = vrot.lane.b32.xlu0 %v6361_v53, %s4844_s18  ;;  %v6555_v34 = vpop.permute.xlu1 %2492 }
 0x301   : > { %v6557_v16 = vpop.permute.xlu0 %2508  ;;  %3681 = vrot.lane.b32.xlu1 %v6381_v31, %s4844_s18 }
 0x303   : > { %3465 = vrot.lane.b32.xlu0 %v6304_v13, %s4843_s17  ;;  %v6563_v58 = vpop.permute.xlu1 %2420 }
 0x305   : > { %v6565_v40 = vpop.permute.xlu0 %2436  ;;  %3451 = vrot.lane.b32.xlu1 %v6329_v27, %s4843_s17 }
 0x307   : > { %3693 = vrot.lane.b32.xlu0 %v6336_v33, %s4844_s18  ;;  %v6571_v30 = vpop.permute.xlu1 %2839 }
 0x309   : > { %v6573_v7 = vpop.permute.xlu0 %2855  ;;  %3679 = vrot.lane.b32.xlu1 %v6357_v60, %s4844_s18 }
 0x30b   : > { %3463 = vrot.lane.b32.xlu0 %v6283_v5, %s4843_s17  ;;  %v6579_v11 = vpop.permute.xlu1 %3065 }
 0x30c   : > { %7930 = vst [vmem:[#allocation35_spill] sm:$0xff] %v6579_v11 }
 0x30d   : > { %v6581_v8 = vpop.permute.xlu0 %3081  ;;  %3449 = vrot.lane.b32.xlu1 %v6297_v17, %s4843_s17 }
 0x30e   : > { %7931 = vst [vmem:[#allocation36_spill] sm:$0xff] %v6581_v8 }
 0x30f   : > { %3089 = vrot.lane.b32.xlu0 %v6457_v59, %s4842_s14  ;;  %v6587_v4 = vpop.permute.xlu1 %2494 }
 0x311   : > { %v6589_v46 = vpop.permute.xlu0 %2510  ;;  %3677 = vrot.lane.b32.xlu1 %v6329_v27, %s4844_s18 }
 0x313   : > { %3691 = vrot.lane.b32.xlu0 %v6304_v13, %s4844_s18  ;;  %v6595_v39 = vpop.permute.xlu1 %2422 }
 0x315   : > { %v6597_v50 = vpop.permute.xlu0 %2438  ;;  %3447 = vrot.lane.b32.xlu1 %v6276_v1, %s4843_s17 }
 0x317   : > { %3689 = vrot.lane.b32.xlu0 %v6283_v5, %s4844_s18  ;;  %v6603_v19 = vpop.permute.xlu1 %2841 }
 0x319   : > { %v6605_v18 = vpop.permute.xlu0 %2857  ;;  %3675 = vrot.lane.b32.xlu1 %v6297_v17, %s4844_s18 }
 0x31b   : > { %3927 = vrot.lane.b32.xlu0 %v6433_v15, %s4845_s27  ;;  %v6611_v32 = vpop.permute.xlu1 %3067 }
 0x31c   : > { %7932 = vst [vmem:[#allocation37_spill] sm:$0xff] %v6611_v32 }
 0x31d   : > { %v6613_v55 = vpop.permute.xlu0 %3083  ;;  %3673 = vrot.lane.b32.xlu1 %v6276_v1, %s4844_s18 }
 0x31e   : > { %7933 = vst [vmem:[#allocation38_spill] sm:$0xff] %v6613_v55 }
 0x31f   : > { %3925 = vrot.lane.b32.xlu0 %v6409_v61, %s4845_s27  ;;  %v2497_v29 = vpop.permute.xlu1 %2496 }
 0x321   : > { %v2513_v6 = vpop.permute.xlu0 %2512  ;;  %3913 = vrot.lane.b32.xlu1 %v6453_v51, %s4845_s27 }
 0x322   : > { %v2531_v28 = vsel %vm402_vm0, %v2513_v6, %v2497_v29 }
 0x323   : > { %4153 = vrot.lane.b32.xlu0 %v6433_v15, %s4846_s28  ;;  %v6623_v23 = vpop.permute.xlu1 %2424  ;;  %v7940_v15 = vld [vmem:[#allocation6_spill] sm:$0xff] }
 0x325   : > { %v6625_v0 = vpop.permute.xlu0 %2440  ;;  %3911 = vrot.lane.b32.xlu1 %v6429_v38, %s4845_s27 }
 0x327   : > { %3923 = vrot.lane.b32.xlu0 %v6385_v37, %s4845_s27  ;;  %v2844_v12 = vpop.permute.xlu1 %2843 }
 0x329   : > { %v2860_v54 = vpop.permute.xlu0 %2859  ;;  %4139 = vrot.lane.b32.xlu1 %v6453_v51, %s4846_s28 }
 0x32a   : > { %v6635_v10 = vsel %vm764_vm3, %v2844_v12, %v2860_v54  ;;  %v6639_v41 = vsel %vm764_vm3, %v2860_v54, %v2844_v12 }
 0x32b   : > { %3477 = vrot.lane.b32.xlu0 %v6457_v59, %s4843_s17  ;;  %v3070_v9 = vpop.permute.xlu1 %3069 }
 0x32d   : > { %v3086_v3 = vpop.permute.xlu0 %3085  ;;  %3909 = vrot.lane.b32.xlu1 %v6405_v26, %s4845_s27 }
 0x32e   : > { %v6647_v62 = vsel %vm1004_vm4, %v3070_v9, %v3086_v3  ;;  %v6651_v35 = vsel %vm1004_vm4, %v3086_v3, %v3070_v9 }
 0x32f   : > { %7935 = vst [vmem:[#allocation5_spill] sm:$0xff] %v6647_v62  ;;  %7936 = vst [vmem:[#allocation39_spill] sm:$0xff] %v6651_v35  ;;  %3703 = vrot.lane.b32.xlu0 %v6457_v59, %s4844_s18  ;;  %v2499_v12 = vpop.permute.xlu1 %2498 }
 0x331   : > { %v2515_v54 = vpop.permute.xlu0 %2514  ;;  %4137 = vrot.lane.b32.xlu1 %v6429_v38, %s4846_s28 }
 0x333   : > { %4151 = vrot.lane.b32.xlu0 %v6409_v61, %s4846_s28  ;;  %v6659_v52 = vpop.permute.xlu1 %2426  ;;  %v2524_v61 = vsel %vm402_vm0, %v2499_v12, %v2515_v54 }
 0x334   : > { %v2547_v45 = vmul.f32 %v2524_v61, %v7940_v15  ;;  %v2530_v61 = vsel %vm402_vm0, %v6589_v46, %v6587_v4 }
 0x335   : > { %v6661_v11 = vpop.permute.xlu0 %2442  ;;  %3907 = vrot.lane.b32.xlu1 %v6381_v31, %s4845_s27 }
 0x337   : > { %3921 = vrot.lane.b32.xlu0 %v6361_v53, %s4845_s27  ;;  %v6667_v3 = vpop.permute.xlu1 %2845 }
 0x339   : > { %v6669_v9 = vpop.permute.xlu0 %2861  ;;  %4135 = vrot.lane.b32.xlu1 %v6405_v26, %s4846_s28 }
 0x33b   : > { %3929 = vrot.lane.b32.xlu0 %v6457_v59, %s4845_s27  ;;  %v3072_v35 = vpop.permute.xlu1 %3071 }
 0x33d   : > { %v3088_v8 = vpop.permute.xlu0 %3087  ;;  %3905 = vrot.lane.b32.xlu1 %v6357_v60, %s4845_s27 }
 0x33e   : > { %v6679_v62 = vsel %vm1004_vm4, %v3072_v35, %v3088_v8  ;;  %v6683_v32 = vsel %vm1004_vm4, %v3088_v8, %v3072_v35  ;;  %v2532_v35 = vsel %vm402_vm0, %v2515_v54, %v2499_v12  ;;  %v7939_v8 = vld [vmem:[#allocation7_spill] sm:$0xff]  ;;  %v2519_v54 = vsel %vm402_vm0, %v6491_v2, %v6493_v57 }
 0x33f   : > { %7937 = vst [vmem:[#allocation40_spill] sm:$0xff] %v6679_v62  ;;  %7938 = vst [vmem:[#allocation41_spill] sm:$0xff] %v6683_v32  ;;  %4155 = vrot.lane.b32.xlu0 %v6457_v59, %s4846_s28  ;;  %v2501_v55 = vpop.permute.xlu1 %2500  ;;  %v2523_v59 = vsel %vm402_vm0, %v2497_v29, %v2513_v6 }
 0x341   : > { %v2517_v26 = vpop.permute.xlu0 %2516  ;;  %4133 = vrot.lane.b32.xlu1 %v6381_v31, %s4846_s28 }
 0x342   : > { %v2525_v38 = vsel %vm402_vm0, %v2501_v55, %v2517_v26  ;;  %v2533_v62 = vsel %vm402_vm0, %v2517_v26, %v2501_v55 }
 0x343   : > { %v2548_v32 = vmul.f32 %v2533_v62, %v7939_v8  ;;  %v2549_v51 = vmul.f32 %v2525_v38, %v7940_v15  ;;  %4149 = vrot.lane.b32.xlu0 %v6385_v37, %s4846_s28  ;;  %v3060_v31 = vpop.permute.xlu1 %3059  ;;  %v2522_v38 = vsel %vm402_vm0, %v6587_v4, %v6589_v46  ;;  %v2546_v62 = vmul.f32 %v2532_v35, %v7939_v8 }
 0x344   : > { %v2529_v4 = vsel %vm402_vm0, %v6557_v16, %v6555_v34  ;;  %v2520_v46 = vsel %vm402_vm0, %v6523_v49, %v6525_v20 }
 0x345   : > { %v3076_v26 = vpop.permute.xlu0 %3075  ;;  %3903 = vrot.lane.b32.xlu1 %v6329_v27, %s4845_s27  ;;  %2599 = vmatprep.subr.mxu1 %v2549_v51  ;;  %v2545_v51 = vmul.f32 %v2523_v59, %v7940_v15  ;;  %v2540_v35 = vmul.f32 %v2529_v4, %v7939_v8 }
 0x346   : > { %v6715_v55 = vsel %vm1004_vm4, %v3060_v31, %v3076_v26  ;;  %v6719_v29 = vsel %vm1004_vm4, %v3076_v26, %v3060_v31  ;;  %2600 = vmatpush1.msra.mxu1 %v2548_v32  ;;  %v2521_v31 = vsel %vm402_vm0, %v6555_v34, %v6557_v16  ;;  %v2544_v32 = vmul.f32 %v2531_v28, %v7939_v8 }
 0x347   : > { %3919 = vrot.lane.b32.xlu0 %v6336_v33, %s4845_s27  ;;  %2601 = vmatprep.subr.mxu1 %v2547_v45  ;;  %v6728_v6 = vpop.permute.xlu1 %2428  ;;  %v2543_v45 = vmul.f32 %v2522_v38, %v7940_v15  ;;  %v2542_v28 = vmul.f32 %v2530_v61, %v7939_v8  ;;  %v2528_v34 = vsel %vm402_vm0, %v6525_v20, %v6523_v49 }
 0x348   : > { %2602 = vmatpush1.msra.mxu1 %v2546_v62  ;;  %v2541_v12 = vmul.f32 %v2521_v31, %v7940_v15  ;;  %v2527_v49 = vsel %vm402_vm0, %v6493_v57, %v6491_v2  ;;  %v2539_v26 = vmul.f32 %v2520_v46, %v7940_v15  ;;  %v2518_v38 = vsel %vm402_vm0, %v6467_v48, %v6469_v47 }
 0x349   : > { %v3476_v59 = vpop.permute.xlu0 %3475  ;;  %4131 = vrot.lane.b32.xlu1 %v6357_v60, %s4846_s28  ;;  %2603 = vmatprep.subr.mxu1 %v2545_v51  ;;  %v2538_v62 = vmul.f32 %v2528_v34, %v7939_v8  ;;  %v2526_v2 = vsel %vm402_vm0, %v6469_v47, %v6467_v48  ;;  %v2537_v61 = vmul.f32 %v2519_v54, %v7940_v15  ;;  %v2551_v47 = vld [vmem:[#allocation2 + $0x40] sm:$0xff]  ;;  %v7942_v46 = vmov 0.0   ;;  %v2553_v54 = vld [vmem:[#allocation2 + $0x50] sm:$0xff] }
 0x34a   : > { %2604 = vmatpush1.msra.mxu1 %v2544_v32  ;;  %v2536_v51 = vmul.f32 %v2527_v49, %v7939_v8  ;;  %v2535_v32 = vmul.f32 %v2518_v38, %v7940_v15  ;;  %v2534_v48 = vmul.f32 %v2526_v2, %v7939_v8  ;;  %v2552_v15 = vld [vmem:[#allocation2 + $0x48] sm:$0xff]  ;;  %v4351_v38 = vld [vmem:[%s7823_s4] sm:$0xff]  ;;  %v2452_v2 = vsel %vm317_vm1, %v6659_v52, %v6661_v11 }
 0x34b   : > { %4147 = vrot.lane.b32.xlu0 %v6361_v53, %s4846_s28  ;;  %2605 = vmatprep.subr.mxu1 %v2543_v45  ;;  %v6753_v16 = vpop.permute.xlu1 %2847 }
 0x34c   : > { %2606 = vmatpush1.msra.mxu1 %v2542_v28 }
 0x34d   : > { %v6765_v20 = vpop.permute.xlu0 %3473  ;;  %3901 = vrot.lane.b32.xlu1 %v6297_v17, %s4845_s27  ;;  %2607 = vmatprep.subr.mxu1 %v2541_v12 }
 0x34e   : > { %2608 = vmatpush1.msra.mxu1 %v2540_v35 }
 0x34f   : > { %3917 = vrot.lane.b32.xlu0 %v6304_v13, %s4845_s27  ;;  %2609 = vmatprep.subr.mxu1 %v2539_v26  ;;  %v6781_v57 = vpop.permute.xlu1 %3073 }
 0x350   : > { %2610 = vmatpush1.msra.mxu1 %v2538_v62  ;;  %v2554_v62 = vld [vmem:[#allocation2 + $0x58] sm:$0xff] }
 0x351   : > { %v6785_v31 = vpop.permute.xlu0 %3701  ;;  %4129 = vrot.lane.b32.xlu1 %v6329_v27, %s4846_s28  ;;  %2611 = vmatprep.subr.mxu1 %v2537_v61  ;;  %v7944_v61 = vld [vmem:[#allocation9_spill] sm:$0xff] }
 0x352   : > { %2612 = vmatpush1.msra.mxu1 %v2536_v51 }
 0x353   : > { %4145 = vrot.lane.b32.xlu0 %v6336_v33, %s4846_s28  ;;  %2613 = vmatprep.subr.mxu1 %v2535_v32  ;;  %v6793_v4 = vpop.permute.xlu1 %3461  ;;  %v7945_v32 = vld [vmem:[#allocation8_spill] sm:$0xff] }
 0x354   : > { %2614 = vmatpush1.msra.mxu1 %v2534_v48 }
 0x355   : > { %v6795_v45 = vpop.permute.xlu0 %3471  ;;  %3899 = vrot.lane.b32.xlu1 %v6276_v1, %s4845_s27  ;;  %4668 = vmatmul.mubr.msk.f32.vlgmr.msra.gmra.mxu1 %vm457_vm2, %v2551_v47  ;;  %v2460_v47 = vsel %vm317_vm1, %v6661_v11, %v6659_v52  ;;  %v2475_v52 = vmul.f32 %v2452_v2, %v7945_v32 }
 0x356   : > { %7941 = vst [vmem:[#allocation7_spill] sm:$0xff] %v6795_v45  ;;  %2653 = vmatprep.mubr.f32.mxu1 %v7942_v46 }
 0x357   : > { %3915 = vrot.lane.b32.xlu0 %v6283_v5, %s4845_s27  ;;  %v3460_v8 = vpop.permute.xlu1 %3459 }
 0x358   : > { %v6805_v28 = vsel %vm1406_vm5, %v3460_v8, %v3476_v59  ;;  %v6809_v34 = vsel %vm1406_vm5, %v3476_v59, %v3460_v8  ;;  %v2451_v8 = vsel %vm317_vm1, %v6623_v23, %v6625_v0 }
 0x359   : > { %v6811_v12 = vpop.permute.xlu0 %3699  ;;  %4127 = vrot.lane.b32.xlu1 %v6297_v17, %s4846_s28  ;;  %4669 = vmatmul.mubr.msk.f32.gmra.mxu1 %vm457_vm2, %v2552_v15  ;;  %v4352_v15 = vld [vmem:[%s7823_s4 + $0x8] sm:$0xff] }
 0x35a   : > { %7943 = vst [vmem:[#allocation6_spill] sm:$0xff] %v6811_v12  ;;  %2659 = vmatprep.mubr.f32.mxu1 %v7942_v46  ;;  %v7947_v12 = vld [vmem:[#allocation10_spill] sm:$0xff] }
 0x35b   : > { %4143 = vrot.lane.b32.xlu0 %v6304_v13, %s4846_s28  ;;  %v6819_v35 = vpop.permute.xlu1 %3687 }
 0x35d   : > { %v2445_v49 = vpop.permute.xlu0 %2444  ;;  %4125 = vrot.lane.b32.xlu1 %v6276_v1, %s4846_s28  ;;  %4670 = vmatmul.mubr.msk.f32.gmra.mxu1 %vm457_vm2, %v2553_v54  ;;  %v2459_v54 = vsel %vm317_vm1, %v6625_v0, %v6623_v23  ;;  %v4353_v23 = vld [vmem:[%s7823_s4 + $0x10] sm:$0xff]  ;;  %v2450_v0 = vsel %vm317_vm1, %v6595_v39, %v6597_v50 }
 0x35e   : > { %v2453_v59 = vsel %vm317_vm1, %v6728_v6, %v2445_v49  ;;  %v2461_v26 = vsel %vm317_vm1, %v2445_v49, %v6728_v6  ;;  %2665 = vmatprep.mubr.f32.mxu1 %v7942_v46 }
 0x35f   : > { %v2476_v51 = vmul.f32 %v2461_v26, %v7944_v61  ;;  %v2477_v48 = vmul.f32 %v2453_v59, %v7945_v32  ;;  %4141 = vrot.lane.b32.xlu0 %v6283_v5, %s4846_s28  ;;  %v6842_v6 = vpop.permute.xlu1 %3457  ;;  %v2474_v26 = vmul.f32 %v2460_v47, %v7944_v61 }
 0x361   : > { %v2864_v49 = vpop.permute.xlu0 %2863  ;;  %4361 = vperm.xlu1 %4776, %v4351_v38   ;;  %4671 = vmatmul.mubr.msk.f32.gmra.mxu1 %vm457_vm2, %v2554_v62  ;;  %v7946_v38 = vld [vmem:[#allocation11_spill] sm:$0xff] }
 0x362   : > { %v2872_v11 = vsel %vm764_vm3, %v6753_v16, %v2864_v49  ;;  %v2880_v59 = vsel %vm764_vm3, %v2864_v49, %v6753_v16  ;;  %2736 = vmatprep.subr.mxu0 %v2477_v48  ;;  %2671 = vmatprep.mubr.f32.mxu1 %v7942_v46  ;;  %v2555_v16 = vld [vmem:[#allocation2 + $0x60] sm:$0xff]  ;;  %v2473_v48 = vmul.f32 %v2451_v8, %v7945_v32 }
 0x363   : > { %v2896_v62 = vmul.f32 %v2872_v11, %v7946_v38  ;;  %2737 = vmatpush1.msra.mxu0 %v2476_v51  ;;  %4366 = vperm.xlu0 %4775, %v4352_v15   ;;  %v6877_v2 = vpop.permute.xlu1 %3685  ;;  %v2871_v49 = vsel %vm764_vm3, %v6667_v3, %v6669_v9  ;;  %v2895_v45 = vmul.f32 %v2880_v59, %v7947_v12 }
 0x364   : > { %2738 = vmatprep.subr.mxu0 %v2475_v52  ;;  %v6889_v47 = vsel %vm1646_vm6, %v6877_v2, %v6785_v31  ;;  %v2458_v51 = vsel %vm317_vm1, %v6597_v50, %v6595_v39  ;;  %v2472_v15 = vmul.f32 %v2459_v54, %v7944_v61  ;;  %v4354_v52 = vld [vmem:[%s7823_s4 + $0x18] sm:$0xff]  ;;  %v2879_v11 = vsel %vm764_vm3, %v6669_v9, %v6667_v3 }
 0x365   : > { %2739 = vmatpush1.msra.mxu0 %v2474_v26  ;;  %v6896_v8 = vpop.permute.xlu0 %3469  ;;  %4371 = vperm.xlu1 %4776, %v4353_v23   ;;  %v2449_v39 = vsel %vm317_vm1, %v6563_v58, %v6565_v40  ;;  %v2894_v50 = vmul.f32 %v2871_v49, %v7946_v38  ;;  %v2471_v54 = vmul.f32 %v2450_v0, %v7945_v32  ;;  %v4355_v23 = vld [vmem:[%s7823_s4 + $0x20] sm:$0xff] }
 0x366   : > { %4672 = vmatmul.mubr.msk.f32.gmra.mxu1 %vm457_vm2, %v2555_v16  ;;  %2740 = vmatprep.subr.mxu0 %v2473_v48  ;;  %v2457_v3 = vsel %vm317_vm1, %v6565_v40, %v6563_v58  ;;  %v2470_v9 = vmul.f32 %v2458_v51, %v7944_v61  ;;  %v2893_v26 = vmul.f32 %v2879_v11, %v7947_v12  ;;  %v4356_v51 = vld [vmem:[%s7823_s4 + $0x28] sm:$0xff] }
 0x367   : > { %2946 = vmatprep.subr.mxu1 %v2896_v62  ;;  %2741 = vmatpush1.msra.mxu0 %v2472_v15  ;;  %v6912_v59 = vpop.permute.xlu1 %3455  ;;  %v2556_v62 = vld [vmem:[#allocation2 + $0x68] sm:$0xff]  ;;  %v2448_v58 = vsel %vm317_vm1, %v6531_v56, %v6533_v42  ;;  %v2869_v40 = vsel %vm764_vm3, %v6603_v19, %v6605_v18  ;;  %v2456_v16 = vsel %vm317_vm1, %v6533_v42, %v6531_v56 }
 0x368   : > { %2947 = vmatpush1.msra.mxu1 %v2895_v45  ;;  %4376 = vperm.xlu0 %4775, %v4354_v52   ;;  %v2469_v45 = vmul.f32 %v2449_v39, %v7945_v32  ;;  %v2468_v48 = vmul.f32 %v2457_v3, %v7944_v61  ;;  %v2892_v49 = vmul.f32 %v6635_v10, %v7946_v38 }
 0x369   : > { %2742 = vmatprep.subr.mxu0 %v2471_v54  ;;  %2948 = vmatprep.subr.mxu1 %v2894_v50  ;;  %v6923_v0 = vpop.permute.xlu0 %3697  ;;  %v2877_v52 = vsel %vm764_vm3, %v6605_v18, %v6603_v19  ;;  %v2891_v56 = vmul.f32 %v6639_v41, %v7947_v12  ;;  %v2447_v42 = vsel %vm317_vm1, %v6499_v44, %v6501_v24  ;;  %v4357_v50 = vld [vmem:[%s7823_s4 + $0x30] sm:$0xff] }
 0x36a   : > { %2677 = vmatprep.mubr.f32.mxu1 %v7942_v46  ;;  %2743 = vmatpush1.msra.mxu0 %v2470_v9  ;;  %v2467_v10 = vmul.f32 %v2448_v58, %v7945_v32  ;;  %v2890_v11 = vmul.f32 %v2869_v40, %v7946_v38  ;;  %v2455_v19 = vsel %vm317_vm1, %v6501_v24, %v6499_v44  ;;  %v2557_v24 = vld [vmem:[#allocation2 + $0x70] sm:$0xff]  ;;  %v4358_v58 = vld [vmem:[%s7823_s4 + $0x38] sm:$0xff] }
 0x36b   : > { %2949 = vmatpush1.msra.mxu1 %v2893_v26  ;;  %4381 = vperm.xlu1 %4776, %v4355_v23   ;;  %v6945_v15 = vpop.permute.xlu1 %3683  ;;  %v2466_v18 = vmul.f32 %v2456_v16, %v7944_v61  ;;  %v2868_v41 = vsel %vm764_vm3, %v6571_v30, %v6573_v7  ;;  %v2876_v54 = vsel %vm764_vm3, %v6573_v7, %v6571_v30 }
 0x36c   : > { %4673 = vmatmul.mubr.msk.f32.gmra.mxu1 %vm457_vm2, %v2556_v62  ;;  %2744 = vmatprep.subr.mxu0 %v2469_v45  ;;  %v2889_v44 = vmul.f32 %v2877_v52, %v7947_v12  ;;  %v2446_v9 = vsel %vm317_vm1, %v6475_v36, %v6477_v22  ;;  %v2867_v23 = vsel %vm764_vm3, %v6539_v43, %v6541_v21  ;;  %v7948_v52 = vld [vmem:[#allocation29_spill] sm:$0xff] }
 0x36d   : > { %2950 = vmatprep.subr.mxu1 %v2892_v49  ;;  %2745 = vmatpush1.msra.mxu0 %v2468_v48  ;;  %v6960_v39 = vpop.permute.xlu0 %3467  ;;  %v2465_v30 = vmul.f32 %v2447_v42, %v7945_v32  ;;  %v2454_v7 = vsel %vm317_vm1, %v6477_v22, %v6475_v36  ;;  %v2464_v26 = vmul.f32 %v2455_v19, %v7944_v61 }
 0x36e   : > { %2951 = vmatpush1.msra.mxu1 %v2891_v56  ;;  %4386 = vperm.xlu0 %4775, %v4356_v51   ;;  %v2888_v62 = vmul.f32 %v2868_v41, %v7946_v38  ;;  %v2875_v45 = vsel %vm764_vm3, %v6541_v21, %v6539_v43  ;;  %v2887_v16 = vmul.f32 %v2876_v54, %v7947_v12  ;;  %v2478_v51 = vld [vmem:[#allocation2] sm:$0xff]  ;;  %v7949_v56 = vld [vmem:[#allocation28_spill] sm:$0xff]  ;;  %v2479_v41 = vld [vmem:[#allocation2 + $0x8] sm:$0xff] }
 0x36f   : > { %2746 = vmatprep.subr.mxu0 %v2467_v10  ;;  %2952 = vmatprep.subr.mxu1 %v2890_v11  ;;  %v6979_v3 = vpop.permute.xlu1 %3453  ;;  %v2866_v36 = vsel %vm764_vm3, %v6507_v14, %v6509_v63  ;;  %v2463_v22 = vmul.f32 %v2446_v9, %v7945_v32  ;;  %v2886_v48 = vmul.f32 %v2867_v23, %v7946_v38  ;;  %v2558_v10 = vld [vmem:[#allocation2 + $0x78] sm:$0xff]  ;;  %v2898_v54 = vld [vmem:[#allocation2 + $0x80] sm:$0xff]  ;;  %v2480_v9 = vld [vmem:[#allocation2 + $0x10] sm:$0xff] }
 0x370   : > { %2683 = vmatprep.mubr.f32.mxu1 %v7942_v46  ;;  %2747 = vmatpush1.msra.mxu0 %v2466_v18  ;;  %v2462_v43 = vmul.f32 %v2454_v7, %v7944_v61  ;;  %v2874_v21 = vsel %vm764_vm3, %v6509_v63, %v6507_v14  ;;  %v2865_v42 = vsel %vm764_vm3, %v7949_v56, %v7948_v52  ;;  %v2899_v23 = vld [vmem:[#allocation2 + $0x88] sm:$0xff]  ;;  %v7952_v7 = vld [vmem:[#allocation25_spill] sm:$0xff] }
 0x371   : > { %2953 = vmatpush1.msra.mxu1 %v2889_v44  ;;  %4391 = vperm.xlu1 %4776, %v4357_v50   ;;  %v7000_v40 = vpop.permute.xlu0 %3695  ;;  %v2885_v32 = vmul.f32 %v2875_v45, %v7947_v12  ;;  %v2873_v14 = vsel %vm764_vm3, %v7948_v52, %v7949_v56  ;;  %v2884_v63 = vmul.f32 %v2866_v36, %v7946_v38  ;;  %v2481_v45 = vld [vmem:[#allocation2 + $0x18] sm:$0xff]  ;;  %v2900_v36 = vld [vmem:[#allocation2 + $0x90] sm:$0xff]  ;;  %v7957_v56 = vld [vmem:[#allocation13_spill] sm:$0xff] }
 0x372   : > { %4674 = vmatmul.mubr.msk.f32.gmra.mxu1 %vm457_vm2, %v2557_v24  ;;  %2748 = vmatprep.subr.mxu0 %v2465_v30  ;;  %v2883_v61 = vmul.f32 %v2874_v21, %v7947_v12  ;;  %v2882_v18 = vmul.f32 %v2865_v42, %v7946_v38  ;;  %v2881_v50 = vmul.f32 %v2873_v14, %v7947_v12  ;;  %v7950_v38 = vld [vmem:[#allocation26_spill] sm:$0xff]  ;;  %v7951_v12 = vld [vmem:[#allocation27_spill] sm:$0xff]  ;;  %v2482_v21 = vld [vmem:[#allocation2 + $0x20] sm:$0xff] }
 0x373   : > { %2954 = vmatprep.subr.mxu1 %v2888_v62  ;;  %2749 = vmatpush1.msra.mxu0 %v2464_v26  ;;  %v7014_v49 = vpop.permute.xlu1 %3681  ;;  %v7953_v26 = vld [vmem:[#allocation24_spill] sm:$0xff] }
 0x374   : > { %2955 = vmatpush1.msra.mxu1 %v2887_v16  ;;  %4396 = vperm.xlu0 %4775, %v4358_v58   ;;  %v7954_v58 = vld [vmem:[#allocation23_spill] sm:$0xff]  ;;  %v7955_v16 = vld [vmem:[#allocation22_spill] sm:$0xff] }
 0x375   : > { %2750 = vmatprep.subr.mxu0 %v2463_v22  ;;  %2956 = vmatprep.subr.mxu1 %v2886_v48  ;;  %v7026_v11 = vpop.permute.xlu0 %3465  ;;  %v7956_v48 = vld [vmem:[#allocation30_spill] sm:$0xff] }
 0x376   : > { %2689 = vmatprep.mubr.f32.mxu1 %v7942_v46  ;;  %2751 = vmatpush1.msra.mxu0 %v2462_v43 }
 0x377   : > { %2957 = vmatpush1.msra.mxu1 %v2885_v32  ;;  %4676 = vmatmul.mubr.msk.f32.vlgmr.msra.gmra.mxu0 %vm457_vm2, %v2478_v51  ;;  %v7036_v19 = vpop.permute.xlu1 %3451  ;;  %v2901_v51 = vld [vmem:[#allocation2 + $0x98] sm:$0xff]  ;;  %v2483_v32 = vld [vmem:[#allocation2 + $0x28] sm:$0xff] }
 0x378   : > { %4675 = vmatmul.mubr.msk.f32.gmra.mxu1 %vm457_vm2, %v2558_v10  ;;  %2958 = vmatprep.subr.mxu1 %v2884_v63 }
 0x379   : > { %2959 = vmatpush1.msra.mxu1 %v2883_v61  ;;  %2790 = vmatprep.mubr.f32.mxu0 %v7942_v46  ;;  %v7042_v44 = vpop.permute.xlu0 %3693 }
 0x37a   : > { %2960 = vmatprep.subr.mxu1 %v2882_v18  ;;  %2994 = vmatprep.mubr.f32.mxu1 %v7942_v46  ;;  %v2903_v18 = vld [vmem:[#allocation2 + $0xa8] sm:$0xff] }
 0x37b   : > { %2961 = vmatpush1.msra.mxu1 %v2881_v50  ;;  %4677 = vmatmul.mubr.msk.f32.gmra.mxu0 %vm457_vm2, %v2479_v41  ;;  %v7046_v24 = vpop.permute.xlu1 %3679  ;;  %v7962_v50 = vld [vmem:[#allocation37_spill] sm:$0xff] }
 0x37c   : > { %4684 = vmatmul.mubr.msk.f32.vlgmr.msra.gmra.mxu1 %vm457_vm2, %v2898_v54  ;;  %3334 = vmatprep.subr.mxu1 %v7950_v38 }
 0x37d   : > { %3335 = vmatpush1.msra.mxu1 %v7951_v12  ;;  %2796 = vmatprep.mubr.f32.mxu0 %v7942_v46  ;;  %v7052_v30 = vpop.permute.xlu0 %3463 }
 0x37e   : > { %3336 = vmatprep.subr.mxu1 %v7952_v7  ;;  %3000 = vmatprep.mubr.f32.mxu1 %v7942_v46  ;;  %v7964_v7 = vld [vmem:[#allocation36_spill] sm:$0xff] }
 0x37f   : > { %3337 = vmatpush1.msra.mxu1 %v7953_v26  ;;  %4678 = vmatmul.mubr.msk.f32.gmra.mxu0 %vm457_vm2, %v2480_v9  ;;  %v7058_v62 = vpop.permute.xlu1 %3449  ;;  %v7963_v9 = vld [vmem:[#allocation5_spill] sm:$0xff]  ;;  %v7965_v26 = vld [vmem:[#allocation35_spill] sm:$0xff] }
 0x380   : > { %4685 = vmatmul.mubr.msk.f32.gmra.mxu1 %vm457_vm2, %v2899_v23  ;;  %3338 = vmatprep.subr.mxu1 %v7954_v58  ;;  %v3118_v12 = vmul.f32 %v7963_v9, %v7957_v56  ;;  %v3094_v58 = vsel %vm1004_vm4, %v7965_v26, %v7964_v7 }
 0x381   : > { %3339 = vmatpush1.msra.mxu1 %v7955_v16  ;;  %2802 = vmatprep.mubr.f32.mxu0 %v7942_v46  ;;  %v3090_v22 = vpop.permute.xlu0 %3089 }
 0x382   : > { %3340 = vmatprep.subr.mxu1 %v6385_v37  ;;  %3006 = vmatprep.mubr.f32.mxu1 %v7942_v46  ;;  %v3098_v37 = vsel %vm1004_vm4, %v6781_v57, %v3090_v22 }
 0x383   : > { %3341 = vmatpush1.msra.mxu1 %v7956_v48  ;;  %4679 = vmatmul.mubr.msk.f32.gmra.mxu0 %vm457_vm2, %v2481_v45  ;;  %v7068_v43 = vpop.permute.xlu1 %3677  ;;  %v3122_v42 = vmul.f32 %v3098_v37, %v7957_v56  ;;  %v7966_v45 = vld [vmem:[#allocation39_spill] sm:$0xff]  ;;  %v7967_v37 = vld [vmem:[#allocation34_spill] sm:$0xff] }
 0x384   : > { %4686 = vmatmul.mubr.msk.f32.gmra.mxu1 %vm457_vm2, %v2900_v36  ;;  %3342 = vmatprep.subr.mxu1 %v6361_v53  ;;  %v3106_v53 = vsel %vm1004_vm4, %v3090_v22, %v6781_v57  ;;  %v2902_v57 = vld [vmem:[#allocation2 + $0xa0] sm:$0xff]  ;;  %v3102_v36 = vsel %vm1004_vm4, %v7964_v7, %v7965_v26  ;;  %v2904_v48 = vld [vmem:[#allocation2 + $0xb0] sm:$0xff]  ;;  %v3108_v26 = vmul.f32 %v6715_v55, %v7957_v56  ;;  %v3287_v55 = vld [vmem:[#allocation2 + $0x108] sm:$0xff] }
 0x385   : > { %3343 = vmatpush1.msra.mxu1 %v6357_v60  ;;  %2808 = vmatprep.mubr.f32.mxu0 %v7942_v46  ;;  %v7077_v52 = vpop.permute.xlu0 %3691 }
 0x386   : > { %3344 = vmatprep.subr.mxu1 %v6336_v33  ;;  %3012 = vmatprep.mubr.f32.mxu1 %v7942_v46  ;;  %v7958_v33 = vld [vmem:[#allocation12_spill] sm:$0xff] }
 0x387   : > { %3345 = vmatpush1.msra.mxu1 %v6329_v27  ;;  %4680 = vmatmul.mubr.msk.f32.gmra.mxu0 %vm457_vm2, %v2482_v21  ;;  %v7086_v60 = vpop.permute.xlu1 %3447  ;;  %v3121_v10 = vmul.f32 %v3106_v53, %v7958_v33  ;;  %v3117_v16 = vmul.f32 %v7966_v45, %v7958_v33 }
 0x388   : > { %4687 = vmatmul.mubr.msk.f32.gmra.mxu1 %vm457_vm2, %v2901_v51  ;;  %3346 = vmatprep.subr.mxu1 %v6304_v13  ;;  %v7959_v13 = vld [vmem:[#allocation40_spill] sm:$0xff]  ;;  %v7968_v51 = vld [vmem:[#allocation33_spill] sm:$0xff] }
 0x389   : > { %3347 = vmatpush1.msra.mxu1 %v6297_v17  ;;  %2814 = vmatprep.mubr.f32.mxu0 %v7942_v46  ;;  %v7094_v14 = vpop.permute.xlu0 %3689  ;;  %v3120_v63 = vmul.f32 %v7959_v13, %v7957_v56  ;;  %v7960_v17 = vld [vmem:[#allocation41_spill] sm:$0xff]  ;;  %v3093_v53 = vsel %vm1004_vm4, %v7968_v51, %v7967_v37 }
 0x38a   : > { %3348 = vmatprep.subr.mxu1 %v6283_v5  ;;  %3018 = vmatprep.mubr.f32.mxu1 %v7942_v46  ;;  %v3119_v61 = vmul.f32 %v7960_v17, %v7958_v33  ;;  %v2484_v5 = vld [vmem:[#allocation2 + $0x30] sm:$0xff] }
 0x38b   : > { %3349 = vmatpush1.msra.mxu1 %v6276_v1  ;;  %4681 = vmatmul.mubr.msk.f32.gmra.mxu0 %vm457_vm2, %v2483_v32  ;;  %v7100_v27 = vpop.permute.xlu1 %3675  ;;  %v7961_v1 = vld [vmem:[#allocation38_spill] sm:$0xff]  ;;  %v2485_v32 = vld [vmem:[#allocation2 + $0x38] sm:$0xff]  ;;  %v7970_v17 = vld [vmem:[#allocation31_spill] sm:$0xff] }
 0x38c   : > { %4688 = vmatmul.mubr.msk.f32.gmra.mxu1 %vm457_vm2, %v2902_v57  ;;  %3172 = vmatprep.subr.mxu0 %v3122_v42  ;;  %v3095_v54 = vsel %vm1004_vm4, %v7962_v50, %v7961_v1  ;;  %v3103_v38 = vsel %vm1004_vm4, %v7961_v1, %v7962_v50  ;;  %v3114_v57 = vmul.f32 %v3094_v58, %v7957_v56  ;;  %v2905_v50 = vld [vmem:[#allocation2 + $0xb8] sm:$0xff]  ;;  %v3286_v58 = vld [vmem:[#allocation2 + $0x100] sm:$0xff] }
 0x38d   : > { %3173 = vmatpush1.msra.mxu0 %v3121_v10  ;;  %2820 = vmatprep.mubr.f32.mxu0 %v7942_v46  ;;  %v7108_v41 = vpop.permute.xlu0 %3927  ;;  %v3116_v22 = vmul.f32 %v3095_v54, %v7957_v56  ;;  %v3115_v42 = vmul.f32 %v3103_v38, %v7958_v33  ;;  %v3101_v10 = vsel %vm1004_vm4, %v7967_v37, %v7968_v51  ;;  %v7971_v37 = vld [vmem:[#allocation15_spill] sm:$0xff] }
 0x38e   : > { %3174 = vmatprep.subr.mxu0 %v3120_v63  ;;  %3024 = vmatprep.mubr.f32.mxu1 %v7942_v46  ;;  %v7969_v63 = vld [vmem:[#allocation32_spill] sm:$0xff]  ;;  %v3112_v1 = vmul.f32 %v3093_v53, %v7957_v56  ;;  %v3111_v38 = vmul.f32 %v3101_v10, %v7958_v33  ;;  %v7972_v53 = vld [vmem:[#allocation14_spill] sm:$0xff] }
 0x38f   : > { %3175 = vmatpush1.msra.mxu0 %v3119_v61  ;;  %v7121_v23 = vpop.permute.xlu1 %3673  ;;  %v3092_v61 = vsel %vm1004_vm4, %v7970_v17, %v7969_v63  ;;  %v3508_v10 = vmul.f32 %v6809_v34, %v7972_v53 }
 0x390   : > { %4682 = vmatmul.mubr.msk.f32.gmra.mxu0 %vm457_vm2, %v2484_v5  ;;  %4689 = vmatmul.mubr.msk.f32.gmra.mxu1 %vm457_vm2, %v2903_v18  ;;  %v3113_v5 = vmul.f32 %v3102_v36, %v7958_v33  ;;  %v3100_v18 = vsel %vm1004_vm4, %v7969_v63, %v7970_v17  ;;  %v3110_v9 = vmul.f32 %v3092_v61, %v7957_v56  ;;  %v3124_v36 = vld [vmem:[#allocation2 + $0xc0] sm:$0xff]  ;;  %v3126_v61 = vld [vmem:[#allocation2 + $0xd0] sm:$0xff] }
 0x391   : > { %3176 = vmatprep.subr.mxu0 %v3118_v12  ;;  %2826 = vmatprep.mubr.f32.mxu0 %v7942_v46  ;;  %v7137_v21 = vpop.permute.xlu0 %3925  ;;  %v3109_v7 = vmul.f32 %v3100_v18, %v7958_v33  ;;  %v3492_v17 = vsel %vm1406_vm5, %v6765_v20, %v6842_v6  ;;  %v7973_v18 = vld [vmem:[#allocation16_spill] sm:$0xff] }
 0x392   : > { %3177 = vmatpush1.msra.mxu0 %v3117_v16  ;;  %3030 = vmatprep.mubr.f32.mxu1 %v7942_v46  ;;  %v3107_v16 = vmul.f32 %v6719_v29, %v7958_v33 }
 0x393   : > { %3178 = vmatprep.subr.mxu0 %v3116_v22  ;;  %v7150_v13 = vpop.permute.xlu1 %3913 }
 0x394   : > { %3179 = vmatpush1.msra.mxu0 %v3115_v42  ;;  %4690 = vmatmul.mubr.msk.f32.gmra.mxu1 %vm457_vm2, %v2904_v48  ;;  %v3125_v48 = vld [vmem:[#allocation2 + $0xc8] sm:$0xff] }
 0x395   : > { %4683 = vmatmul.mubr.msk.f32.gmra.mxu0 %vm457_vm2, %v2485_v32  ;;  %3180 = vmatprep.subr.mxu0 %v3114_v57  ;;  %v7164_v54 = vpop.permute.xlu0 %4153  ;;  %v3288_v57 = vld [vmem:[#allocation2 + $0x110] sm:$0xff] }
 0x396   : > { %3181 = vmatpush1.msra.mxu0 %v3113_v5  ;;  %3036 = vmatprep.mubr.f32.mxu1 %v7942_v46 }
 0x397   : > { %3182 = vmatprep.subr.mxu0 %v3112_v1  ;;  %3220 = vmatprep.mubr.f32.mxu0 %v7942_v46  ;;  %v7170_v12 = vpop.permute.xlu1 %3911 }
 0x398   : > { %3183 = vmatpush1.msra.mxu0 %v3111_v38  ;;  %4691 = vmatmul.mubr.msk.f32.gmra.mxu1 %vm457_vm2, %v2905_v50  ;;  %v3506_v38 = vmul.f32 %v3492_v17, %v7972_v53 }
 0x399   : > { %3184 = vmatprep.subr.mxu0 %v3110_v9  ;;  %3382 = vmatprep.mubr.f32.mxu1 %v7942_v46  ;;  %v7177_v45 = vpop.permute.xlu0 %3923 }
 0x39a   : > { %3185 = vmatpush1.msra.mxu0 %v3109_v7  ;;  %v3719_v7 = vsel %vm1646_vm6, %v6785_v31, %v6877_v2 }
 0x39b   : > { %3186 = vmatprep.subr.mxu0 %v3108_v26  ;;  %v7181_v22 = vpop.permute.xlu1 %4139  ;;  %v3734_v31 = vmul.f32 %v3719_v7, %v7973_v18 }
 0x39c   : > { %3187 = vmatpush1.msra.mxu0 %v3107_v16  ;;  %4700 = vmatmul.mubr.msk.f32.vlgmr.msra.gmra.mxu1 %vm457_vm2, %v3286_v58  ;;  %v7975_v58 = vld [vmem:[#allocation17_spill] sm:$0xff] }
 0x39d   : > { %4692 = vmatmul.mubr.msk.f32.vlgmr.msra.gmra.mxu0 %vm457_vm2, %v3124_v36  ;;  %3388 = vmatprep.mubr.f32.mxu1 %v7942_v46  ;;  %v3478_v56 = vpop.permute.xlu0 %3477  ;;  %v3127_v36 = vld [vmem:[#allocation2 + $0xd8] sm:$0xff] }
 0x39e   : > { %3226 = vmatprep.mubr.f32.mxu0 %v7942_v46  ;;  %v3486_v29 = vsel %vm1406_vm5, %v6793_v4, %v3478_v56  ;;  %v3494_v33 = vsel %vm1406_vm5, %v3478_v56, %v6793_v4  ;;  %v3484_v4 = vsel %vm1406_vm5, %v6842_v6, %v6765_v20  ;;  %v3507_v20 = vmul.f32 %v6805_v28, %v7971_v37  ;;  %v7974_v28 = vld [vmem:[#allocation7_spill] sm:$0xff] }
 0x39f   : > { %v3509_v51 = vmul.f32 %v3486_v29, %v7971_v37  ;;  %v3510_v42 = vmul.f32 %v3494_v33, %v7972_v53  ;;  %v7195_v32 = vpop.permute.xlu1 %3909  ;;  %v3505_v6 = vmul.f32 %v3484_v4, %v7971_v37  ;;  %v3491_v26 = vsel %vm1406_vm5, %v7974_v28, %v6912_v59 }
 0x3a0   : > { %4701 = vmatmul.mubr.msk.f32.gmra.mxu1 %vm457_vm2, %v3287_v55  ;;  %v3483_v55 = vsel %vm1406_vm5, %v6912_v59, %v7974_v28  ;;  %v3504_v2 = vmul.f32 %v3491_v26, %v7972_v53  ;;  %v3290_v59 = vld [vmem:[#allocation2 + $0x120] sm:$0xff] }
 0x3a1   : > { %4693 = vmatmul.mubr.msk.f32.gmra.mxu0 %vm457_vm2, %v3125_v48  ;;  %3394 = vmatprep.mubr.f32.mxu1 %v7942_v46  ;;  %v3704_v63 = vpop.permute.xlu0 %3703  ;;  %v7976_v48 = vld [vmem:[#allocation6_spill] sm:$0xff] }
 0x3a2   : > { %3232 = vmatprep.mubr.f32.mxu0 %v7942_v46  ;;  %v3720_v34 = vsel %vm1646_vm6, %v3704_v63, %v6819_v35  ;;  %3560 = vmatprep.subr.mxu0 %v3510_v42  ;;  %v3712_v5 = vsel %vm1646_vm6, %v6819_v35, %v3704_v63  ;;  %v3289_v35 = vld [vmem:[#allocation2 + $0x118] sm:$0xff]  ;;  %v3718_v29 = vsel %vm1646_vm6, %v7976_v48, %v6945_v15 }
 0x3a3   : > { %v3736_v1 = vmul.f32 %v3720_v34, %v7973_v18  ;;  %3561 = vmatpush1.msra.mxu0 %v3509_v51  ;;  %v7218_v50 = vpop.permute.xlu1 %4137  ;;  %v3735_v16 = vmul.f32 %v3712_v5, %v7975_v58  ;;  %v3503_v51 = vmul.f32 %v3483_v55, %v7971_v37  ;;  %v3490_v42 = vsel %vm1406_vm5, %v6896_v8, %v6979_v3  ;;  %v3130_v55 = vld [vmem:[#allocation2 + $0xf0] sm:$0xff] }
 0x3a4   : > { %4702 = vmatmul.mubr.msk.f32.gmra.mxu1 %vm457_vm2, %v3288_v57  ;;  %3562 = vmatprep.subr.mxu0 %v3508_v10  ;;  %v3128_v10 = vld [vmem:[#allocation2 + $0xe0] sm:$0xff]  ;;  %v3733_v57 = vmul.f32 %v6889_v47, %v7975_v58  ;;  %v3482_v63 = vsel %vm1406_vm5, %v6979_v3, %v6896_v8  ;;  %v3710_v17 = vsel %vm1646_vm6, %v6945_v15, %v7976_v48  ;;  %v3291_v15 = vld [vmem:[#allocation2 + $0x128] sm:$0xff] }
 0x3a5   : > { %4694 = vmatmul.mubr.msk.f32.gmra.mxu0 %vm457_vm2, %v3126_v61  ;;  %3400 = vmatprep.mubr.f32.mxu1 %v7942_v46  ;;  %v7227_v9 = vpop.permute.xlu0 %4151  ;;  %v3732_v61 = vmul.f32 %v3718_v29, %v7973_v18  ;;  %v3502_v47 = vmul.f32 %v3490_v42, %v7972_v53  ;;  %v3717_v8 = vsel %vm1646_vm6, %v6923_v0, %v7014_v49 }
 0x3a6   : > { %3238 = vmatprep.mubr.f32.mxu0 %v7942_v46  ;;  %3563 = vmatpush1.msra.mxu0 %v3507_v20  ;;  %v3489_v3 = vsel %vm1406_vm5, %v6960_v39, %v7036_v19  ;;  %v3501_v5 = vmul.f32 %v3482_v63, %v7971_v37  ;;  %v3129_v20 = vld [vmem:[#allocation2 + $0xe8] sm:$0xff]  ;;  %v3730_v7 = vmul.f32 %v3717_v8, %v7973_v18 }
 0x3a7   : > { %3564 = vmatprep.subr.mxu0 %v3506_v38  ;;  %3786 = vmatprep.subr.mxu1 %v3736_v1  ;;  %v7243_v56 = vpop.permute.xlu1 %3907  ;;  %v3481_v1 = vsel %vm1406_vm5, %v7036_v19, %v6960_v39  ;;  %v3709_v38 = vsel %vm1646_vm6, %v7014_v49, %v6923_v0  ;;  %v3500_v39 = vmul.f32 %v3489_v3, %v7972_v53 }
 0x3a8   : > { %4703 = vmatmul.mubr.msk.f32.gmra.mxu1 %vm457_vm2, %v3289_v35  ;;  %3565 = vmatpush1.msra.mxu0 %v3505_v6  ;;  %v3731_v6 = vmul.f32 %v3710_v17, %v7975_v58  ;;  %v3488_v19 = vsel %vm1406_vm5, %v7026_v11, %v7058_v62  ;;  %v3499_v28 = vmul.f32 %v3481_v1, %v7971_v37 }
 0x3a9   : > { %4695 = vmatmul.mubr.msk.f32.gmra.mxu0 %vm457_vm2, %v3127_v36  ;;  %3406 = vmatprep.mubr.f32.mxu1 %v7942_v46  ;;  %v7254_v33 = vpop.permute.xlu0 %3921  ;;  %v3708_v0 = vsel %vm1646_vm6, %v7046_v24, %v7000_v40  ;;  %v3716_v49 = vsel %vm1646_vm6, %v7000_v40, %v7046_v24  ;;  %v3480_v36 = vsel %vm1406_vm5, %v7058_v62, %v7026_v11 }
 0x3aa   : > { %3244 = vmatprep.mubr.f32.mxu0 %v7942_v46  ;;  %3787 = vmatpush1.msra.mxu1 %v3735_v16  ;;  %v3729_v16 = vmul.f32 %v3709_v38, %v7975_v58  ;;  %v3715_v40 = vsel %vm1646_vm6, %v7042_v44, %v7068_v43  ;;  %v3487_v24 = vsel %vm1406_vm5, %v7052_v30, %v7086_v60 }
 0x3ab   : > { %3566 = vmatprep.subr.mxu0 %v3504_v2  ;;  %3788 = vmatprep.subr.mxu1 %v3734_v31  ;;  %v7268_v4 = vpop.permute.xlu1 %4135  ;;  %v3498_v31 = vmul.f32 %v3488_v19, %v7972_v53  ;;  %v3292_v2 = vld [vmem:[#allocation2 + $0x130] sm:$0xff]  ;;  %v3727_v62 = vmul.f32 %v3708_v0, %v7975_v58  ;;  %v3728_v48 = vmul.f32 %v3716_v49, %v7973_v18  ;;  %v7979_v19 = vld [vmem:[#allocation18_spill] sm:$0xff]  ;;  %v7980_v0 = vld [vmem:[#allocation20_spill] sm:$0xff] }
 0x3ac   : > { %4704 = vmatmul.mubr.msk.f32.gmra.mxu1 %vm457_vm2, %v3290_v59  ;;  %3567 = vmatpush1.msra.mxu0 %v3503_v51  ;;  %v3479_v29 = vsel %vm1406_vm5, %v7086_v60, %v7052_v30  ;;  %v3497_v59 = vmul.f32 %v3480_v36, %v7971_v37  ;;  %v3707_v51 = vsel %vm1646_vm6, %v7068_v43, %v7042_v44  ;;  %v3131_v43 = vld [vmem:[#allocation2 + $0xf8] sm:$0xff] }
 0x3ad   : > { %4696 = vmatmul.mubr.msk.f32.gmra.mxu0 %vm457_vm2, %v3128_v10  ;;  %3789 = vmatpush1.msra.mxu1 %v3733_v57  ;;  %v7286_v34 = vpop.permute.xlu0 %3929  ;;  %v3726_v30 = vmul.f32 %v3715_v40, %v7973_v18  ;;  %v3496_v60 = vmul.f32 %v3487_v24, %v7972_v53  ;;  %v3714_v57 = vsel %vm1646_vm6, %v7077_v52, %v7100_v27 }
 0x3ae   : > { %3250 = vmatprep.mubr.f32.mxu0 %v7942_v46  ;;  %3412 = vmatprep.mubr.f32.mxu1 %v7942_v46  ;;  %v3946_v42 = vsel %vm1886_vm7, %v7286_v34, %v7150_v13  ;;  %v3495_v44 = vmul.f32 %v3479_v29, %v7971_v37  ;;  %v3725_v17 = vmul.f32 %v3707_v51, %v7975_v58 }
 0x3af   : > { %3568 = vmatprep.subr.mxu0 %v3502_v47  ;;  %3790 = vmatprep.subr.mxu1 %v3732_v61  ;;  %v7300_v35 = vpop.permute.xlu1 %3905  ;;  %v3706_v53 = vsel %vm1646_vm6, %v7100_v27, %v7077_v52  ;;  %v7977_v61 = vld [vmem:[#allocation19_spill] sm:$0xff]  ;;  %v3724_v8 = vmul.f32 %v3714_v57, %v7973_v18  ;;  %v3713_v37 = vsel %vm1646_vm6, %v7094_v14, %v7121_v23 }
 0x3b0   : > { %4705 = vmatmul.mubr.msk.f32.gmra.mxu1 %vm457_vm2, %v3291_v15  ;;  %3569 = vmatpush1.msra.mxu0 %v3501_v5  ;;  %v3962_v47 = vmul.f32 %v3946_v42, %v7977_v61  ;;  %v3293_v15 = vld [vmem:[#allocation2 + $0x138] sm:$0xff]  ;;  %v3705_v27 = vsel %vm1646_vm6, %v7121_v23, %v7094_v14  ;;  %v3723_v5 = vmul.f32 %v3706_v53, %v7975_v58  ;;  %v3739_v42 = vld [vmem:[#allocation2 + $0x188] sm:$0xff] }
 0x3b1   : > { %4697 = vmatmul.mubr.msk.f32.gmra.mxu0 %vm457_vm2, %v3129_v20  ;;  %3791 = vmatpush1.msra.mxu1 %v3731_v6  ;;  %v4156_v26 = vpop.permute.xlu0 %4155  ;;  %v3938_v1 = vsel %vm1886_vm7, %v7150_v13, %v7286_v34  ;;  %v3512_v6 = vld [vmem:[#allocation2 + $0x140] sm:$0xff]  ;;  %v3722_v14 = vmul.f32 %v3713_v37, %v7973_v18  ;;  %v3945_v23 = vsel %vm1886_vm7, %v7108_v41, %v7170_v12  ;;  %v3740_v37 = vld [vmem:[#allocation2 + $0x190] sm:$0xff] }
 0x3b2   : > { %3570 = vmatprep.subr.mxu0 %v3500_v39  ;;  %3792 = vmatprep.subr.mxu1 %v3730_v7  ;;  %v4172_v3 = vsel %vm2126_vm8, %v4156_v26, %v7181_v22  ;;  %v4164_v20 = vsel %vm2126_vm8, %v7181_v22, %v4156_v26  ;;  %v7978_v7 = vld [vmem:[#allocation21_spill] sm:$0xff]  ;;  %v3721_v13 = vmul.f32 %v3705_v27, %v7975_v58 }
 0x3b3   : > { %3256 = vmatprep.mubr.f32.mxu0 %v7942_v46  ;;  %3571 = vmatpush1.msra.mxu0 %v3499_v28  ;;  %v7334_v11 = vpop.permute.xlu1 %4133  ;;  %v4188_v39 = vmul.f32 %v4172_v3, %v7978_v7  ;;  %v3937_v22 = vsel %vm1886_vm7, %v7170_v12, %v7108_v41  ;;  %v4171_v34 = vsel %vm2126_vm8, %v7164_v54, %v7218_v50  ;;  %v3738_v58 = vld [vmem:[#allocation2 + $0x180] sm:$0xff] }
 0x3b4   : > { %3793 = vmatpush1.msra.mxu1 %v3729_v16  ;;  %3418 = vmatprep.mubr.f32.mxu1 %v7942_v46  ;;  %v3961_v28 = vmul.f32 %v3938_v1, %v7979_v19  ;;  %v4187_v49 = vmul.f32 %v4164_v20, %v7980_v0  ;;  %v3960_v41 = vmul.f32 %v3945_v23, %v7977_v61 }
 0x3b5   : > { %4698 = vmatmul.mubr.msk.f32.gmra.mxu0 %vm457_vm2, %v3130_v55  ;;  %3572 = vmatprep.subr.mxu0 %v3498_v31  ;;  %v7353_v10 = vpop.permute.xlu0 %4149  ;;  %v3944_v12 = vsel %vm1886_vm7, %v7137_v21, %v7195_v32  ;;  %v4163_v26 = vsel %vm2126_vm8, %v7218_v50, %v7164_v54  ;;  %v3959_v36 = vmul.f32 %v3937_v22, %v7979_v19  ;;  %v3741_v22 = vld [vmem:[#allocation2 + $0x198] sm:$0xff] }
 0x3b6   : > { %3794 = vmatprep.subr.mxu1 %v3728_v48  ;;  %4706 = vmatmul.mubr.msk.f32.gmra.mxu1 %vm457_vm2, %v3292_v2  ;;  %v4170_v55 = vsel %vm2126_vm8, %v7227_v9, %v7268_v4  ;;  %v3936_v31 = vsel %vm1886_vm7, %v7195_v32, %v7137_v21  ;;  %v4186_v54 = vmul.f32 %v4171_v34, %v7978_v7  ;;  %v3513_v32 = vld [vmem:[#allocation2 + $0x148] sm:$0xff] }
 0x3b7   : > { %3573 = vmatpush1.msra.mxu0 %v3497_v59  ;;  %3795 = vmatpush1.msra.mxu1 %v3727_v62  ;;  %v7363_v63 = vpop.permute.xlu1 %3903  ;;  %v3943_v50 = vsel %vm1886_vm7, %v7177_v45, %v7243_v56  ;;  %v3958_v24 = vmul.f32 %v3944_v12, %v7977_v61  ;;  %v4185_v2 = vmul.f32 %v4163_v26, %v7980_v0 }
 0x3b8   : > { %3574 = vmatprep.subr.mxu0 %v3496_v60  ;;  %3796 = vmatprep.subr.mxu1 %v3726_v30  ;;  %v4162_v21 = vsel %vm2126_vm8, %v7268_v4, %v7227_v9  ;;  %v3935_v62 = vsel %vm1886_vm7, %v7243_v56, %v7177_v45  ;;  %v4184_v48 = vmul.f32 %v4170_v55, %v7978_v7  ;;  %v3742_v55 = vld [vmem:[#allocation2 + $0x1a0] sm:$0xff] }
 0x3b9   : > { %3262 = vmatprep.mubr.f32.mxu0 %v7942_v46  ;;  %3575 = vmatpush1.msra.mxu0 %v3495_v44  ;;  %v7380_v52 = vpop.permute.xlu0 %3919  ;;  %v3957_v59 = vmul.f32 %v3936_v31, %v7979_v19  ;;  %v3956_v51 = vmul.f32 %v3943_v50, %v7977_v61  ;;  %v4169_v9 = vsel %vm2126_vm8, %v7353_v10, %v7334_v11 }
 0x3ba   : > { %3797 = vmatpush1.msra.mxu1 %v3725_v17  ;;  %4699 = vmatmul.mubr.msk.f32.gmra.mxu0 %vm457_vm2, %v3131_v43  ;;  %v4183_v4 = vmul.f32 %v4162_v21, %v7980_v0  ;;  %v3942_v45 = vsel %vm1886_vm7, %v7254_v33, %v7300_v35  ;;  %v4161_v56 = vsel %vm2126_vm8, %v7334_v11, %v7353_v10 }
 0x3bb   : > { %3424 = vmatprep.mubr.f32.mxu1 %v7942_v46  ;;  %3798 = vmatprep.subr.mxu1 %v3724_v8  ;;  %v7396_v38 = vpop.permute.xlu1 %4131  ;;  %v3955_v60 = vmul.f32 %v3935_v62, %v7979_v19  ;;  %v3941_v57 = vsel %vm1886_vm7, %v7380_v52, %v7363_v63  ;;  %v3934_v11 = vsel %vm1886_vm7, %v7300_v35, %v7254_v33  ;;  %v3964_v62 = vld [vmem:[#allocation2 + $0x1c0] sm:$0xff] }
 0x3bc   : > { %4012 = vmatprep.subr.mxu0 %v3962_v47  ;;  %4707 = vmatmul.mubr.msk.f32.gmra.mxu1 %vm457_vm2, %v3293_v15  ;;  %v4182_v10 = vmul.f32 %v4169_v9, %v7978_v7  ;;  %v3954_v17 = vmul.f32 %v3942_v45, %v7977_v61  ;;  %v4181_v53 = vmul.f32 %v4161_v56, %v7980_v0  ;;  %v3514_v47 = vld [vmem:[#allocation2 + $0x150] sm:$0xff]  ;;  %v4193_v45 = vld [vmem:[#allocation2 + $0x218] sm:$0xff]  ;;  %v3968_v56 = vld [vmem:[#allocation2 + $0x1e0] sm:$0xff] }
 0x3bd   : > { %3799 = vmatpush1.msra.mxu1 %v3723_v5  ;;  %3608 = vmatprep.mubr.f32.mxu0 %v7942_v46  ;;  %v7411_v18 = vpop.permute.xlu0 %4147  ;;  %v3933_v33 = vsel %vm1886_vm7, %v7363_v63, %v7380_v52  ;;  %v3952_v35 = vmul.f32 %v3941_v57, %v7977_v61  ;;  %v3953_v15 = vmul.f32 %v3934_v11, %v7979_v19  ;;  %v4192_v9 = vld [vmem:[#allocation2 + $0x210] sm:$0xff] }
 0x3be   : > { %3800 = vmatprep.subr.mxu1 %v3722_v14  ;;  %4708 = vmatmul.mubr.msk.f32.vlgmr.msra.gmra.mxu0 %vm457_vm2, %v3512_v6  ;;  %v4168_v44 = vsel %vm2126_vm8, %v7411_v18, %v7396_v38  ;;  %v4160_v8 = vsel %vm2126_vm8, %v7396_v38, %v7411_v18  ;;  %v3951_v1 = vmul.f32 %v3933_v33, %v7979_v19  ;;  %v3515_v6 = vld [vmem:[#allocation2 + $0x158] sm:$0xff]  ;;  %v3970_v57 = vld [vmem:[#allocation2 + $0x1f0] sm:$0xff] }
 0x3bf   : > { %3801 = vmatpush1.msra.mxu1 %v3721_v13  ;;  %3834 = vmatprep.mubr.f32.mxu1 %v7942_v46  ;;  %v7430_v16 = vpop.permute.xlu1 %3901  ;;  %v4180_v27 = vmul.f32 %v4168_v44, %v7978_v7  ;;  %v4179_v20 = vmul.f32 %v4160_v8, %v7980_v0  ;;  %v4196_v11 = vld [vmem:[#allocation2 + $0x230] sm:$0xff]  ;;  %v4197_v44 = vld [vmem:[#allocation2 + $0x238] sm:$0xff] }
 0x3c0   : > { %4013 = vmatpush1.msra.mxu0 %v3961_v28  ;;  %4238 = vmatprep.subr.mxu1 %v4188_v39 }
 0x3c1   : > { %4716 = vmatmul.mubr.msk.f32.vlgmr.msra.gmra.mxu1 %vm457_vm2, %v3738_v58  ;;  %4014 = vmatprep.subr.mxu0 %v3960_v41  ;;  %v3918_v40 = vpop.permute.xlu0 %3917  ;;  %v3516_v58 = vld [vmem:[#allocation2 + $0x160] sm:$0xff] }
 0x3c2   : > { %4239 = vmatpush1.msra.mxu1 %v4187_v49  ;;  %4015 = vmatpush1.msra.mxu0 %v3959_v36  ;;  %v3940_v63 = vsel %vm1886_vm7, %v3918_v40, %v7430_v16  ;;  %v3932_v52 = vsel %vm1886_vm7, %v7430_v16, %v3918_v40  ;;  %v3517_v40 = vld [vmem:[#allocation2 + $0x168] sm:$0xff] }
 0x3c3   : > { %4240 = vmatprep.subr.mxu1 %v4186_v54  ;;  %3614 = vmatprep.mubr.f32.mxu0 %v7942_v46  ;;  %v4130_v29 = vpop.permute.xlu1 %4129  ;;  %v3950_v14 = vmul.f32 %v3940_v63, %v7977_v61  ;;  %v3949_v13 = vmul.f32 %v3932_v52, %v7979_v19 }
 0x3c4   : > { %4016 = vmatprep.subr.mxu0 %v3958_v24  ;;  %4241 = vmatpush1.msra.mxu1 %v4185_v2  ;;  %v3743_v2 = vld [vmem:[#allocation2 + $0x1a8] sm:$0xff] }
 0x3c5   : > { %4709 = vmatmul.mubr.msk.f32.gmra.mxu0 %vm457_vm2, %v3513_v32  ;;  %4242 = vmatprep.subr.mxu1 %v4184_v48  ;;  %v4146_v30 = vpop.permute.xlu0 %4145  ;;  %v3744_v32 = vld [vmem:[#allocation2 + $0x1b0] sm:$0xff]  ;;  %v4190_v48 = vld [vmem:[#allocation2 + $0x200] sm:$0xff] }
 0x3c6   : > { %4017 = vmatpush1.msra.mxu0 %v3957_v59  ;;  %3840 = vmatprep.mubr.f32.mxu1 %v7942_v46  ;;  %v4167_v38 = vsel %vm2126_vm8, %v4146_v30, %v4130_v29  ;;  %v4159_v23 = vsel %vm2126_vm8, %v4130_v29, %v4146_v30  ;;  %v3965_v29 = vld [vmem:[#allocation2 + $0x1c8] sm:$0xff] }
 0x3c7   : > { %4018 = vmatprep.subr.mxu0 %v3956_v51  ;;  %4243 = vmatpush1.msra.mxu1 %v4183_v4  ;;  %v3900_v43 = vpop.permute.xlu1 %3899  ;;  %v4178_v34 = vmul.f32 %v4167_v38, %v7978_v7  ;;  %v4177_v49 = vmul.f32 %v4159_v23, %v7980_v0  ;;  %v4191_v59 = vld [vmem:[#allocation2 + $0x208] sm:$0xff]  ;;  %v3966_v51 = vld [vmem:[#allocation2 + $0x1d0] sm:$0xff]  ;;  %v3967_v4 = vld [vmem:[#allocation2 + $0x1d8] sm:$0xff] }
 0x3c8   : > { %4717 = vmatmul.mubr.msk.f32.gmra.mxu1 %vm457_vm2, %v3739_v42  ;;  %4019 = vmatpush1.msra.mxu0 %v3955_v60  ;;  %v4194_v42 = vld [vmem:[#allocation2 + $0x220] sm:$0xff]  ;;  %v3969_v30 = vld [vmem:[#allocation2 + $0x1e8] sm:$0xff] }
 0x3c9   : > { %4244 = vmatprep.subr.mxu1 %v4182_v10  ;;  %3620 = vmatprep.mubr.f32.mxu0 %v7942_v46  ;;  %v3916_v3 = vpop.permute.xlu0 %3915  ;;  %v4195_v60 = vld [vmem:[#allocation2 + $0x228] sm:$0xff]  ;;  %v3971_v10 = vld [vmem:[#allocation2 + $0x1f8] sm:$0xff] }
 0x3ca   : > { %4020 = vmatprep.subr.mxu0 %v3954_v17  ;;  %4245 = vmatpush1.msra.mxu1 %v4181_v53  ;;  %v3939_v18 = vsel %vm1886_vm7, %v3916_v3, %v3900_v43  ;;  %v3931_v28 = vsel %vm1886_vm7, %v3900_v43, %v3916_v3 }
 0x3cb   : > { %4710 = vmatmul.mubr.msk.f32.gmra.mxu0 %vm457_vm2, %v3514_v47  ;;  %3846 = vmatprep.mubr.f32.mxu1 %v7942_v46  ;;  %v4128_v5 = vpop.permute.xlu1 %4127  ;;  %v3948_v12 = vmul.f32 %v3939_v18, %v7977_v61  ;;  %v3947_v31 = vmul.f32 %v3931_v28, %v7979_v19 }
 0x3cc   : > { %4021 = vmatpush1.msra.mxu0 %v3953_v15  ;;  %4718 = vmatmul.mubr.msk.f32.gmra.mxu1 %vm457_vm2, %v3740_v37 }
 0x3cd   : > { %4022 = vmatprep.subr.mxu0 %v3952_v35  ;;  %3626 = vmatprep.mubr.f32.mxu0 %v7942_v46  ;;  %v4144_v39 = vpop.permute.xlu0 %4143 }
 0x3ce   : > { %4023 = vmatpush1.msra.mxu0 %v3951_v1  ;;  %4246 = vmatprep.subr.mxu1 %v4180_v27  ;;  %v4166_v41 = vsel %vm2126_vm8, %v4144_v39, %v4128_v5  ;;  %v4158_v26 = vsel %vm2126_vm8, %v4128_v5, %v4144_v39 }
 0x3cf   : > { %4711 = vmatmul.mubr.msk.f32.gmra.mxu0 %vm457_vm2, %v3515_v6  ;;  %3852 = vmatprep.mubr.f32.mxu1 %v7942_v46  ;;  %v4126_v16 = vpop.permute.xlu1 %4125  ;;  %v4176_v50 = vmul.f32 %v4166_v41, %v7978_v7  ;;  %v4175_v24 = vmul.f32 %v4158_v26, %v7980_v0 }
 0x3d0   : > { %4247 = vmatpush1.msra.mxu1 %v4179_v20  ;;  %3632 = vmatprep.mubr.f32.mxu0 %v7942_v46 }
 0x3d1   : > { %4719 = vmatmul.mubr.msk.f32.gmra.mxu1 %vm457_vm2, %v3741_v22  ;;  %4024 = vmatprep.subr.mxu0 %v3950_v14  ;;  %v4142_v36 = vpop.permute.xlu0 %4141 }
 0x3d2   : > { %3858 = vmatprep.mubr.f32.mxu1 %v7942_v46  ;;  %4025 = vmatpush1.msra.mxu0 %v3949_v13  ;;  %v4165_v54 = vsel %vm2126_vm8, %v4142_v36, %v4126_v16  ;;  %v4157_v61 = vsel %vm2126_vm8, %v4126_v16, %v4142_v36 }
 0x3d3   : > { %4712 = vmatmul.mubr.msk.f32.gmra.mxu0 %vm457_vm2, %v3516_v58  ;;  %4248 = vmatprep.subr.mxu1 %v4178_v34  ;;  %v4174_v19 = vmul.f32 %v4165_v54, %v7978_v7  ;;  %v4173_v21 = vmul.f32 %v4157_v61, %v7980_v0  ;;  %v3519_v7 = vld [vmem:[#allocation2 + $0x178] sm:$0xff] }
 0x3d4   : > { %3638 = vmatprep.mubr.f32.mxu0 %v7942_v46  ;;  %4249 = vmatpush1.msra.mxu1 %v4177_v49  ;;  %v3745_v0 = vld [vmem:[#allocation2 + $0x1b8] sm:$0xff] }
 0x3d5   : > { %4720 = vmatmul.mubr.msk.f32.gmra.mxu1 %vm457_vm2, %v3742_v55  ;;  %4026 = vmatprep.subr.mxu0 %v3948_v12 }
 0x3d6   : > { %3864 = vmatprep.mubr.f32.mxu1 %v7942_v46  ;;  %4027 = vmatpush1.msra.mxu0 %v3947_v31 }
 0x3d7   : > { %4713 = vmatmul.mubr.msk.f32.gmra.mxu0 %vm457_vm2, %v3517_v40  ;;  %4250 = vmatprep.subr.mxu1 %v4176_v50 }
 0x3d8   : > { %3644 = vmatprep.mubr.f32.mxu0 %v7942_v46  ;;  %4251 = vmatpush1.msra.mxu1 %v4175_v24 }
 0x3d9   : > { %4721 = vmatmul.mubr.msk.f32.gmra.mxu1 %vm457_vm2, %v3743_v2  ;;  %4252 = vmatprep.subr.mxu1 %v4174_v19 }
 0x3da   : > { %3870 = vmatprep.mubr.f32.mxu1 %v7942_v46  ;;  %4253 = vmatpush1.msra.mxu1 %v4173_v21 }
 0x3db   : > { %4714 = vmatmul.mubr.msk.f32.gmra.mxu0 %vm457_vm2, %v3518_v25 }
 0x3dc   : > { %3650 = vmatprep.mubr.f32.mxu0 %v7942_v46 }
 0x3dd   : > { %4722 = vmatmul.mubr.msk.f32.gmra.mxu1 %vm457_vm2, %v3744_v32 }
 0x3de   : > { %3876 = vmatprep.mubr.f32.mxu1 %v7942_v46 }
 0x3df   : > { %4715 = vmatmul.mubr.msk.f32.gmra.mxu0 %vm457_vm2, %v3519_v7 }
 0x3e0   : > { %4060 = vmatprep.mubr.f32.mxu0 %v7942_v46 }
 0x3e1   : > { %4723 = vmatmul.mubr.msk.f32.gmra.mxu1 %vm457_vm2, %v3745_v0 }
 0x3e2   : > { %4286 = vmatprep.mubr.f32.mxu1 %v7942_v46 }
 0x3e3   : > { %4724 = vmatmul.mubr.msk.f32.vlgmr.msra.gmra.mxu0 %vm457_vm2, %v3964_v62 }
 0x3e4   : > { %4066 = vmatprep.mubr.f32.mxu0 %v7942_v46 }
 0x3e5   : > { %4732 = vmatmul.mubr.msk.f32.vlgmr.msra.gmra.mxu1 %vm457_vm2, %v4190_v48 }
 0x3e6   : > { %4292 = vmatprep.mubr.f32.mxu1 %v7942_v46 }
 0x3e7   : > { %4725 = vmatmul.mubr.msk.f32.gmra.mxu0 %vm457_vm2, %v3965_v29 }
 0x3e8   : > { %4072 = vmatprep.mubr.f32.mxu0 %v7942_v46 }
 0x3e9   : > { %4733 = vmatmul.mubr.msk.f32.gmra.mxu1 %vm457_vm2, %v4191_v59 }
 0x3ea   : > { %4298 = vmatprep.mubr.f32.mxu1 %v7942_v46 }
 0x3eb   : > { %4726 = vmatmul.mubr.msk.f32.gmra.mxu0 %vm457_vm2, %v3966_v51 }
 0x3ec   : > { %4078 = vmatprep.mubr.f32.mxu0 %v7942_v46 }
 0x3ed   : > { %4734 = vmatmul.mubr.msk.f32.gmra.mxu1 %vm457_vm2, %v4192_v9 }
 0x3ee   : > { %4304 = vmatprep.mubr.f32.mxu1 %v7942_v46 }
 0x3ef   : > { %4727 = vmatmul.mubr.msk.f32.gmra.mxu0 %vm457_vm2, %v3967_v4 }
 0x3f0   : > { %4084 = vmatprep.mubr.f32.mxu0 %v7942_v46 }
 0x3f1   : > { %4735 = vmatmul.mubr.msk.f32.gmra.mxu1 %vm457_vm2, %v4193_v45 }
 0x3f2   : > { %4310 = vmatprep.mubr.f32.mxu1 %v7942_v46 }
 0x3f3   : > { %4728 = vmatmul.mubr.msk.f32.gmra.mxu0 %vm457_vm2, %v3968_v56 }
 0x3f4   : > { %4090 = vmatprep.mubr.f32.mxu0 %v7942_v46 }
 0x3f5   : > { %4736 = vmatmul.mubr.msk.f32.gmra.mxu1 %vm457_vm2, %v4194_v42 }
 0x3f6   : > { %4316 = vmatprep.mubr.f32.mxu1 %v7942_v46 }
 0x3f7   : > { %4729 = vmatmul.mubr.msk.f32.gmra.mxu0 %vm457_vm2, %v3969_v30 }
 0x3f8   : > { %4096 = vmatprep.mubr.f32.mxu0 %v7942_v46 }
 0x3f9   : > { %4737 = vmatmul.mubr.msk.f32.gmra.mxu1 %vm457_vm2, %v4195_v60 }
 0x3fa   : > { %4322 = vmatprep.mubr.f32.mxu1 %v7942_v46 }
 0x3fb   : > { %4730 = vmatmul.mubr.msk.f32.gmra.mxu0 %vm457_vm2, %v3970_v57 }
 0x3fc   : > { %4102 = vmatprep.mubr.f32.mxu0 %v7942_v46 }
 0x3fd   : > { %4738 = vmatmul.mubr.msk.f32.gmra.mxu1 %vm457_vm2, %v4196_v11 }
 0x3fe   : > { %4328 = vmatprep.mubr.f32.mxu1 %v7942_v46 }
 0x3ff   : > { %4731 = vmatmul.mubr.msk.f32.gmra.mxu0 %vm457_vm2, %v3971_v10 }
 0x401   : > { %4739 = vmatmul.mubr.msk.f32.gmra.mxu1 %vm457_vm2, %v4197_v44 }
 0x415   : > { %v2649_v43 = vpop.f32.mrf.mxu1 }
 0x417   : > { %v2651_v17 = vpop.f32.mrf.mxu1 }
 0x419   : > { %v2655_v53 = vpop.f32.mrf.mxu1 }
 0x41b   : > { %v2657_v47 = vpop.f32.mrf.mxu1 }
 0x41d   : > { %v2661_v33 = vpop.f32.mrf.mxu1 }
 0x41f   : > { %v2663_v35 = vpop.f32.mrf.mxu1 }
 0x421   : > { %v2667_v8 = vpop.f32.mrf.mxu1 }
 0x423   : > { %v2669_v37 = vpop.f32.mrf.mxu1 }
 0x426   : > { %v2673_v3 = vpop.f32.mrf.mxu1 }
 0x428   : > { %v2675_v15 = vpop.f32.mrf.mxu1 }
 0x42c   : > { %v2679_v27 = vpop.f32.mrf.mxu1 }
 0x42e   : > { %v2681_v63 = vpop.f32.mrf.mxu1 }
 0x432   : > { %v2685_v52 = vpop.f32.mrf.mxu1 }
 0x434   : > { %v2687_v5 = vpop.f32.mrf.mxu1 }
 0x437   : > { %v2786_v46 = vpop.f32.mrf.mxu0 }
 0x438   : > { %v2691_v1 = vpop.f32.mrf.mxu1  ;;  %v2787_v20 = vadd.f32 %v2786_v46, %v2649_v43 }
 0x439   : > { %v2788_v6 = vpop.f32.mrf.mxu0 }
 0x43a   : > { %v2693_v38 = vpop.f32.mrf.mxu1  ;;  %v2789_v14 = vadd.f32 %v2788_v6, %v2651_v17 }
 0x43b   : > { %v2792_v23 = vpop.f32.mrf.mxu0 }
 0x43c   : > { %v2793_v39 = vadd.f32 %v2792_v23, %v2655_v53  ;;  %v2996_v13 = vpop.f32.mrf.mxu1 }
 0x43d   : > { %v7594_v22 = vadd.f32 %v2996_v13, %v2787_v20  ;;  %v2794_v18 = vpop.f32.mrf.mxu0 }
 0x43e   : > { %v2795_v34 = vadd.f32 %v2794_v18, %v2657_v47  ;;  %v2998_v28 = vpop.f32.mrf.mxu1 }
 0x43f   : > { %v7596_v49 = vadd.f32 %v2998_v28, %v2789_v14  ;;  %v2798_v58 = vpop.f32.mrf.mxu0 }
 0x440   : > { %v2799_v41 = vadd.f32 %v2798_v58, %v2661_v33  ;;  %v3002_v12 = vpop.f32.mrf.mxu1 }
 0x441   : > { %v7598_v26 = vadd.f32 %v3002_v12, %v2793_v39  ;;  %v2800_v16 = vpop.f32.mrf.mxu0 }
 0x442   : > { %v2801_v36 = vadd.f32 %v2800_v16, %v2663_v35  ;;  %v3004_v55 = vpop.f32.mrf.mxu1 }
 0x443   : > { %v7600_v31 = vadd.f32 %v3004_v55, %v2795_v34  ;;  %v2804_v54 = vpop.f32.mrf.mxu0 }
 0x444   : > { %v2805_v50 = vadd.f32 %v2804_v54, %v2667_v8  ;;  %v3008_v61 = vpop.f32.mrf.mxu1 }
 0x445   : > { %v7602_v40 = vadd.f32 %v3008_v61, %v2799_v41  ;;  %v2806_v24 = vpop.f32.mrf.mxu0 }
 0x446   : > { %v2807_v19 = vadd.f32 %v2806_v24, %v2669_v37  ;;  %v3010_v2 = vpop.f32.mrf.mxu1 }
 0x447   : > { %v7604_v21 = vadd.f32 %v3010_v2, %v2801_v36  ;;  %v2810_v25 = vpop.f32.mrf.mxu0 }
 0x448   : > { %v2811_v32 = vadd.f32 %v2810_v25, %v2673_v3  ;;  %v3014_v7 = vpop.f32.mrf.mxu1 }
 0x449   : > { %v7606_v0 = vadd.f32 %v3014_v7, %v2805_v50  ;;  %v2812_v62 = vpop.f32.mrf.mxu0 }
 0x44a   : > { %v2813_v48 = vadd.f32 %v2812_v62, %v2675_v15  ;;  %v3016_v29 = vpop.f32.mrf.mxu1 }
 0x44b   : > { %v7608_v59 = vadd.f32 %v3016_v29, %v2807_v19  ;;  %v2816_v51 = vpop.f32.mrf.mxu0 }
 0x44c   : > { %v2817_v9 = vadd.f32 %v2816_v51, %v2679_v27  ;;  %v3020_v4 = vpop.f32.mrf.mxu1 }
 0x44d   : > { %v7610_v45 = vadd.f32 %v3020_v4, %v2811_v32  ;;  %v2818_v56 = vpop.f32.mrf.mxu0 }
 0x44e   : > { %v2819_v42 = vadd.f32 %v2818_v56, %v2681_v63  ;;  %v3022_v30 = vpop.f32.mrf.mxu1 }
 0x44f   : > { %v7612_v60 = vadd.f32 %v3022_v30, %v2813_v48 }
 0x450   : > { %v2822_v57 = vpop.f32.mrf.mxu0  ;;  %v3026_v11 = vpop.f32.mrf.mxu1 }
 0x451   : > { %v2823_v10 = vadd.f32 %v2822_v57, %v2685_v52  ;;  %v7614_v44 = vadd.f32 %v3026_v11, %v2817_v9 }
 0x452   : > { %v2824_v43 = vpop.f32.mrf.mxu0  ;;  %v3028_v17 = vpop.f32.mrf.mxu1 }
 0x453   : > { %v2825_v53 = vadd.f32 %v2824_v43, %v2687_v5  ;;  %v7616_v47 = vadd.f32 %v3028_v17, %v2819_v42 }
 0x454   : > { %v3032_v33 = vpop.f32.mrf.mxu1 }
 0x455   : > { %v2828_v35 = vpop.f32.mrf.mxu0  ;;  %v7618_v8 = vadd.f32 %v3032_v33, %v2823_v10 }
 0x456   : > { %v2829_v37 = vadd.f32 %v2828_v35, %v2691_v1  ;;  %v3034_v3 = vpop.f32.mrf.mxu1 }
 0x457   : > { %v2830_v15 = vpop.f32.mrf.mxu0  ;;  %v7620_v27 = vadd.f32 %v3034_v3, %v2825_v53 }
 0x458   : > { %v2831_v63 = vadd.f32 %v2830_v15, %v2693_v38  ;;  %v3038_v46 = vpop.f32.mrf.mxu1 }
 0x459   : > { %7981 = vst [vmem:[#allocation9_spill] sm:$0xff] %v7620_v27  ;;  %v7622_v20 = vadd.f32 %v3038_v46, %v2829_v37 }
 0x45a   : > { %v3040_v52 = vpop.f32.mrf.mxu1 }
 0x45b   : > { %7982 = vst [vmem:[#allocation8_spill] sm:$0xff] %v7622_v20  ;;  %v7624_v6 = vadd.f32 %v3040_v52, %v2831_v63 }
 0x45c   : > { %v3384_v14 = vpop.f32.mrf.mxu1 }
 0x45d   : > { %7983 = vst [vmem:[#allocation11_spill] sm:$0xff] %v7624_v6  ;;  %v3222_v5 = vpop.f32.mrf.mxu0 }
 0x45e   : > { %v3386_v23 = vpop.f32.mrf.mxu1 }
 0x45f   : > { %v3224_v39 = vpop.f32.mrf.mxu0 }
 0x460   : > { %v7626_v13 = vpop.f32.mrf.mxu1 }
 0x461   : > { %v3228_v18 = vpop.f32.mrf.mxu0 }
 0x462   : > { %v7628_v34 = vpop.f32.mrf.mxu1 }
 0x463   : > { %v3230_v1 = vpop.f32.mrf.mxu0 }
 0x464   : > { %v7630_v28 = vpop.f32.mrf.mxu1 }
 0x465   : > { %v3234_v58 = vpop.f32.mrf.mxu0 }
 0x466   : > { %v7632_v38 = vpop.f32.mrf.mxu1 }
 0x467   : > { %v3236_v41 = vpop.f32.mrf.mxu0 }
 0x468   : > { %v7634_v12 = vpop.f32.mrf.mxu1 }
 0x469   : > { %v7636_v16 = vpop.f32.mrf.mxu0 }
 0x46a   : > { %v7638_v36 = vpop.f32.mrf.mxu1 }
 0x46b   : > { %v7640_v55 = vpop.f32.mrf.mxu0 }
 0x46c   : > { %v7642_v54 = vpop.f32.mrf.mxu1 }
 0x46d   : > { %v7644_v50 = vpop.f32.mrf.mxu0 }
 0x46e   : > { %v7646_v61 = vpop.f32.mrf.mxu1 }
 0x46f   : > { %v7648_v24 = vpop.f32.mrf.mxu0 }
 0x470   : > { %v7650_v19 = vpop.f32.mrf.mxu1 }
 0x471   : > { %v7652_v2 = vpop.f32.mrf.mxu0 }
 0x472   : > { %v7654_v25 = vpop.f32.mrf.mxu1 }
 0x473   : > { %7984 = vst [vmem:[#allocation10_spill] sm:$0xff] %v7654_v25  ;;  %v7656_v32 = vpop.f32.mrf.mxu0 }
 0x475   : > { %v7658_v7 = vpop.f32.mrf.mxu0 }
 0x476   : > { %v7660_v62 = vpop.f32.mrf.mxu1 }
 0x477   : > { %7985 = vst [vmem:[#allocation29_spill] sm:$0xff] %v7660_v62  ;;  %v7662_v48 = vpop.f32.mrf.mxu0 }
 0x478   : > { %7986 = vst [vmem:[#allocation28_spill] sm:$0xff] %v7662_v48  ;;  %v7664_v29 = vpop.f32.mrf.mxu1  ;;  %v3270_v48 = vadd.f32 %v3224_v39, %v7596_v49 }
 0x479   : > { %7987 = vst [vmem:[#allocation26_spill] sm:$0xff] %v7664_v29 }
 0x47a   : > { %v7666_v51 = vpop.f32.mrf.mxu0 }
 0x47b   : > { %7988 = vst [vmem:[#allocation27_spill] sm:$0xff] %v7666_v51  ;;  %v3269_v51 = vadd.f32 %v3222_v5, %v7594_v22  ;;  %v3272_v22 = vadd.f32 %v3230_v1, %v7600_v31 }
 0x47c   : > { %v7668_v9 = vpop.f32.mrf.mxu0  ;;  %v7670_v4 = vpop.f32.mrf.mxu1 }
 0x47d   : > { %7989 = vst [vmem:[#allocation25_spill] sm:$0xff] %v7668_v9  ;;  %7990 = vst [vmem:[#allocation24_spill] sm:$0xff] %v7670_v4 }
 0x47e   : > { %v7672_v56 = vpop.f32.mrf.mxu1  ;;  %v3610_v42 = vpop.f32.mrf.mxu0 }
 0x47f   : > { %7991 = vst [vmem:[#allocation23_spill] sm:$0xff] %v7672_v56 }
 0x480   : > { %v3612_v30 = vpop.f32.mrf.mxu0 }
 0x481   : > { %v3836_v57 = vpop.f32.mrf.mxu1 }
 0x483   : > { %v3838_v11 = vpop.f32.mrf.mxu1 }
 0x485   : > { %v3616_v10 = vpop.f32.mrf.mxu0 }
 0x487   : > { %v3618_v43 = vpop.f32.mrf.mxu0 }
 0x488   : > { %v3842_v17 = vpop.f32.mrf.mxu1 }
 0x48a   : > { %v3844_v53 = vpop.f32.mrf.mxu1 }
 0x48b   : > { %v3622_v33 = vpop.f32.mrf.mxu0 }
 0x48c   : > { %v7674_v35 = vpop.f32.mrf.mxu1 }
 0x48d   : > { %v3624_v37 = vpop.f32.mrf.mxu0 }
 0x48e   : > { %v7676_v3 = vpop.f32.mrf.mxu1 }
 0x48f   : > { %v3628_v15 = vpop.f32.mrf.mxu0 }
 0x491   : > { %v7678_v63 = vpop.f32.mrf.mxu0  ;;  %v7680_v46 = vpop.f32.mrf.mxu1 }
 0x493   : > { %v7682_v52 = vpop.f32.mrf.mxu0  ;;  %v7684_v56 = vpop.f32.mrf.mxu1 }
 0x494   : > { %7992 = vst [vmem:[#allocation22_spill] sm:$0xff] %v7684_v56  ;;  %v3431_v56 = vadd.f32 %v3384_v14, %v3269_v51  ;;  %v3274_v14 = vadd.f32 %v3236_v41, %v7604_v21  ;;  %v3276_v41 = vadd.f32 %v7640_v55, %v7608_v59 }
 0x495   : > { %v7686_v4 = vpop.f32.mrf.mxu0  ;;  %v7688_v9 = vpop.f32.mrf.mxu1 }
 0x496   : > { %7993 = vst [vmem:[#allocation30_spill] sm:$0xff] %v7686_v4  ;;  %7994 = vst [vmem:[#allocation13_spill] sm:$0xff] %v7688_v9  ;;  %v3271_v4 = vadd.f32 %v3228_v18, %v7598_v26  ;;  %v3657_v5 = vadd.f32 %v3610_v42, %v3431_v56  ;;  %v3436_v21 = vadd.f32 %v7632_v38, %v3274_v14 }
 0x497   : > { %v7690_v6 = vpop.f32.mrf.mxu0  ;;  %v7692_v29 = vpop.f32.mrf.mxu1 }
 0x498   : > { %7995 = vst [vmem:[#allocation12_spill] sm:$0xff] %v7690_v6  ;;  %7996 = vst [vmem:[#allocation40_spill] sm:$0xff] %v7692_v29  ;;  %v3432_v29 = vadd.f32 %v3386_v23, %v3270_v48  ;;  %v3433_v39 = vadd.f32 %v7626_v13, %v3271_v4  ;;  %v3434_v23 = vadd.f32 %v7628_v34, %v3272_v22 }
 0x499   : > { %v7695_v20 = vpop.f32.mrf.mxu0  ;;  %v7697_v62 = vpop.f32.mrf.mxu1  ;;  %v3883_v48 = vadd.f32 %v3836_v57, %v3657_v5 }
 0x49a   : > { %7997 = vst [vmem:[#allocation41_spill] sm:$0xff] %v7695_v20  ;;  %7998 = vst [vmem:[#allocation38_spill] sm:$0xff] %v7697_v62  ;;  %v3273_v20 = vadd.f32 %v3234_v58, %v7602_v40  ;;  %v3659_v31 = vadd.f32 %v3616_v10, %v3433_v39  ;;  %v3275_v40 = vadd.f32 %v7636_v16, %v7606_v0 }
 0x49b   : > { %v7700_v27 = vpop.f32.mrf.mxu0  ;;  %v7702_v25 = vpop.f32.mrf.mxu1  ;;  %v3277_v16 = vadd.f32 %v7644_v50, %v7610_v45 }
 0x49c   : > { %7999 = vst [vmem:[#allocation37_spill] sm:$0xff] %v7702_v25  ;;  %v3658_v25 = vadd.f32 %v3612_v30, %v3432_v29  ;;  %v3435_v1 = vadd.f32 %v7630_v28, %v3273_v20  ;;  %v3660_v29 = vadd.f32 %v3618_v43, %v3434_v23  ;;  %v4362_v30 = vpop.permute.xlu1 %4361  ;;  %v3885_v57 = vadd.f32 %v3842_v17, %v3659_v31  ;;  %v4367_v50 = vpop.permute.xlu0 %4366  ;;  %v4782_v31 = vld [vmem:[%s4913_s10 + $0x8] sm:$0xff] }
 0x49d   : > { %v7705_v9 = vpop.f32.mrf.mxu0  ;;  %v7707_v6 = vpop.f32.mrf.mxu1  ;;  %v3437_v0 = vadd.f32 %v7634_v12, %v3275_v40  ;;  %v3278_v17 = vadd.f32 %v7648_v24, %v7612_v60  ;;  %v3439_v60 = vadd.f32 %v7642_v54, %v3277_v16  ;;  %v3279_v24 = vadd.f32 %v7652_v2, %v7614_v44 }
 0x49e   : > { %v3884_v13 = vadd.f32 %v3838_v11, %v3658_v25  ;;  %v3661_v56 = vadd.f32 %v3622_v33, %v3435_v1  ;;  %v3662_v25 = vadd.f32 %v3624_v37, %v3436_v21  ;;  %v3886_v10 = vadd.f32 %v3844_v53, %v3660_v29  ;;  %v4781_v53 = vld [vmem:[%s4913_s10] sm:$0xff]  ;;  %v4783_v21 = vld [vmem:[%s4913_s10 + $0x10] sm:$0xff] }
 0x49f   : > { %v7711_v62 = vpop.f32.mrf.mxu0  ;;  %v7713_v49 = vpop.f32.mrf.mxu1  ;;  %v3438_v33 = vadd.f32 %v7638_v36, %v3276_v41  ;;  %v3663_v5 = vadd.f32 %v3628_v15, %v3437_v0  ;;  %v3440_v29 = vadd.f32 %v7646_v61, %v3278_v17  ;;  %v3280_v54 = vadd.f32 %v7656_v32, %v7616_v47  ;;  %v8000_v32 = vld [vmem:[#allocation22_spill] sm:$0xff] }
 0x4a0   : > { %v3887_v22 = vadd.f32 %v7674_v35, %v3661_v56  ;;  %v3888_v35 = vadd.f32 %v7676_v3, %v3662_v25  ;;  %v3665_v2 = vadd.f32 %v7682_v52, %v3439_v60  ;;  %v3441_v61 = vadd.f32 %v7650_v19, %v3279_v24  ;;  %v8003_v19 = vld [vmem:[#allocation9_spill] sm:$0xff]  ;;  %v8009_v60 = vld [vmem:[#allocation27_spill] sm:$0xff] }
 0x4a1   : > { %v7717_v26 = vpop.f32.mrf.mxu0  ;;  %v7719_v18 = vpop.f32.mrf.mxu1  ;;  %v3664_v15 = vadd.f32 %v7678_v63, %v3438_v33  ;;  %v3889_v44 = vadd.f32 %v7680_v46, %v3663_v5  ;;  %v3281_v47 = vadd.f32 %v7658_v7, %v7618_v8  ;;  %v8005_v8 = vld [vmem:[#allocation13_spill] sm:$0xff] }
 0x4a2   : > { %v3891_v7 = vadd.f32 %v8005_v8, %v3665_v2  ;;  %v4377_v5 = vpop.permute.xlu0 %4376 }
 0x4a3   : > { %v7725_v58 = vpop.f32.mrf.mxu1  ;;  %v4062_v51 = vpop.f32.mrf.mxu0  ;;  %v3890_v46 = vadd.f32 %v8000_v32, %v3664_v15 }
 0x4a4   : > { %v4109_v4 = vadd.f32 %v4062_v51, %v3883_v48 }
 0x4a5   : > { %v4064_v34 = vpop.f32.mrf.mxu0  ;;  %v4288_v42 = vpop.f32.mrf.mxu1 }
 0x4a6   : > { %v4110_v20 = vadd.f32 %v4064_v34, %v3884_v13  ;;  %v4335_v28 = vadd.f32 %v4288_v42, %v4109_v4  ;;  %v4372_v4 = vpop.permute.xlu1 %4371 }
 0x4a7   : > { %v4068_v11 = vpop.f32.mrf.mxu0  ;;  %v4290_v38 = vpop.f32.mrf.mxu1 }
 0x4a8   : > { %v4399_v43 = vadd.f32 %v4362_v30, %v4335_v28  ;;  %v4111_v59 = vadd.f32 %v4068_v11, %v3885_v57  ;;  %v4336_v55 = vadd.f32 %v4290_v38, %v4110_v20  ;;  %v4784_v28 = vld [vmem:[%s4913_s10 + $0x18] sm:$0xff]  ;;  %v8002_v38 = vld [vmem:[#allocation10_spill] sm:$0xff] }
 0x4a9   : > { %v4070_v45 = vpop.f32.mrf.mxu0  ;;  %v4294_v12 = vpop.f32.mrf.mxu1 }
 0x4aa   : > { %v4415_v37 = vadd.f32 %v4781_v53, %v4399_v43  ;;  %v4400_v36 = vadd.f32 %v4362_v30, %v4336_v55  ;;  %v4112_v39 = vadd.f32 %v4070_v45, %v3886_v10  ;;  %v4337_v14 = vadd.f32 %v4294_v12, %v4111_v59  ;;  %v8001_v30 = vld [vmem:[#allocation30_spill] sm:$0xff]  ;;  %v8004_v43 = vld [vmem:[#allocation28_spill] sm:$0xff]  ;;  %v4785_v45 = vld [vmem:[%s4913_s10 + $0x20] sm:$0xff] }
 0x4ab   : > { %v4074_v23 = vpop.f32.mrf.mxu0  ;;  %v4296_v48 = vpop.f32.mrf.mxu1  ;;  %v3666_v52 = vadd.f32 %v8001_v30, %v3440_v29  ;;  %v3442_v10 = vadd.f32 %v8002_v38, %v3280_v54  ;;  %v3282_v59 = vadd.f32 %v8004_v43, %v8003_v19  ;;  %v8006_v55 = vld [vmem:[#allocation12_spill] sm:$0xff] }
 0x4ac   : > { %4431 = vst [vmem:[%s7742_s23] sm:$0xff] %v4415_v37  ;;  %v4416_v1 = vadd.f32 %v4782_v31, %v4400_v36  ;;  %v4401_v40 = vadd.f32 %v4367_v50, %v4337_v14  ;;  %v4113_v51 = vadd.f32 %v4074_v23, %v3887_v22  ;;  %v4338_v13 = vadd.f32 %v4296_v48, %v4112_v39  ;;  %v8007_v36 = vld [vmem:[#allocation29_spill] sm:$0xff]  ;;  %v8008_v14 = vld [vmem:[#allocation8_spill] sm:$0xff] }
 0x4ad   : > { %v4076_v3 = vpop.f32.mrf.mxu0  ;;  %v4300_v63 = vpop.f32.mrf.mxu1  ;;  %v3667_v33 = vadd.f32 %v8006_v55, %v3441_v61  ;;  %v3443_v39 = vadd.f32 %v8007_v36, %v3281_v47  ;;  %v3283_v24 = vadd.f32 %v8009_v60, %v8008_v14  ;;  %v8011_v23 = vld [vmem:[#allocation41_spill] sm:$0xff]  ;;  %v4787_v47 = vld [vmem:[%s4913_s10 + $0x30] sm:$0xff] }
 0x4ae   : > { %4432 = vst [vmem:[%s7742_s23 + $0x8] sm:$0xff] %v4416_v1  ;;  %v4417_v41 = vadd.f32 %v4783_v21, %v4401_v40  ;;  %v4402_v56 = vadd.f32 %v4367_v50, %v4338_v13  ;;  %v4114_v34 = vadd.f32 %v4076_v3, %v3888_v35  ;;  %v4339_v42 = vadd.f32 %v4300_v63, %v4113_v51  ;;  %v8010_v35 = vld [vmem:[#allocation40_spill] sm:$0xff]  ;;  %v4786_v40 = vld [vmem:[%s4913_s10 + $0x28] sm:$0xff]  ;;  %v8013_v3 = vld [vmem:[#allocation11_spill] sm:$0xff]  ;;  %v4382_v61 = vpop.permute.xlu1 %4381 }
 0x4af   : > { %v4080_v57 = vpop.f32.mrf.mxu0  ;;  %v4302_v20 = vpop.f32.mrf.mxu1  ;;  %v3892_v15 = vadd.f32 %v8010_v35, %v3666_v52  ;;  %v3668_v48 = vadd.f32 %v8011_v23, %v3442_v10  ;;  %v8014_v63 = vld [vmem:[#allocation25_spill] sm:$0xff]  ;;  %v8015_v21 = vld [vmem:[#allocation38_spill] sm:$0xff] }
 0x4b0   : > { %4433 = vst [vmem:[%s7742_s23 + $0x10] sm:$0xff] %v4417_v41  ;;  %v4418_v0 = vadd.f32 %v4784_v28, %v4402_v56  ;;  %v4403_v16 = vadd.f32 %v4372_v4, %v4339_v42  ;;  %v4115_v25 = vadd.f32 %v4080_v57, %v3889_v44  ;;  %v4340_v11 = vadd.f32 %v4302_v20, %v4114_v34  ;;  %v8012_v44 = vld [vmem:[#allocation26_spill] sm:$0xff]  ;;  %v8016_v57 = vld [vmem:[#allocation24_spill] sm:$0xff]  ;;  %v8017_v28 = vld [vmem:[#allocation37_spill] sm:$0xff] }
 0x4b1   : > { %v4082_v17 = vpop.f32.mrf.mxu0  ;;  %v4306_v22 = vpop.f32.mrf.mxu1  ;;  %v3444_v2 = vadd.f32 %v8012_v44, %v3282_v59  ;;  %v3893_v41 = vadd.f32 %v8015_v21, %v3667_v33  ;;  %v3669_v56 = vadd.f32 %v7700_v27, %v3443_v39  ;;  %v3445_v20 = vadd.f32 %v8016_v57, %v3283_v24  ;;  %v8018_v59 = vld [vmem:[#allocation23_spill] sm:$0xff]  ;;  %v4790_v39 = vld [vmem:[%s4913_s10 + $0x48] sm:$0xff]  ;;  %v4793_v21 = vld [vmem:[%s4913_s10 + $0x60] sm:$0xff] }
 0x4b2   : > { %4434 = vst [vmem:[%s7742_s23 + $0x18] sm:$0xff] %v4418_v0  ;;  %v4419_v12 = vadd.f32 %v4785_v45, %v4403_v16  ;;  %v4404_v50 = vadd.f32 %v4372_v4, %v4340_v11  ;;  %v4116_v53 = vadd.f32 %v4082_v17, %v3890_v46  ;;  %v4341_v37 = vadd.f32 %v4306_v22, %v4115_v25  ;;  %v4788_v11 = vld [vmem:[%s4913_s10 + $0x38] sm:$0xff]  ;;  %v4789_v22 = vld [vmem:[%s4913_s10 + $0x40] sm:$0xff] }
 0x4b3   : > { %v4086_v31 = vpop.f32.mrf.mxu0  ;;  %v4308_v1 = vpop.f32.mrf.mxu1  ;;  %v3284_v4 = vadd.f32 %v8014_v63, %v8013_v3  ;;  %v3894_v0 = vadd.f32 %v8017_v28, %v3668_v48  ;;  %v3670_v16 = vadd.f32 %v7705_v9, %v3444_v2  ;;  %v3671_v55 = vadd.f32 %v7711_v62, %v3445_v20  ;;  %v4796_v28 = vld [vmem:[%s4913_s10 + $0x78] sm:$0xff] }
 0x4b4   : > { %4435 = vst [vmem:[%s7742_s23 + $0x20] sm:$0xff] %v4419_v12  ;;  %v4420_v51 = vadd.f32 %v4786_v40, %v4404_v50  ;;  %v4405_v13 = vadd.f32 %v4377_v5, %v4341_v37  ;;  %v4117_v29 = vadd.f32 %v4086_v31, %v3891_v7  ;;  %v4342_v54 = vadd.f32 %v4308_v1, %v4116_v53  ;;  %v4387_v9 = vpop.permute.xlu0 %4386  ;;  %v4392_v48 = vpop.permute.xlu1 %4391  ;;  %v4791_v31 = vld [vmem:[%s4913_s10 + $0x50] sm:$0xff] }
 0x4b5   : > { %v4088_v34 = vpop.f32.mrf.mxu0  ;;  %v4312_v42 = vpop.f32.mrf.mxu1  ;;  %v3446_v8 = vadd.f32 %v8018_v59, %v3284_v4  ;;  %v3895_v7 = vadd.f32 %v7707_v6, %v3669_v56  ;;  %v3896_v53 = vadd.f32 %v7713_v49, %v3670_v16  ;;  %v3897_v35 = vadd.f32 %v7719_v18, %v3671_v55 }
 0x4b6   : > { %4436 = vst [vmem:[%s7742_s23 + $0x28] sm:$0xff] %v4420_v51  ;;  %v4421_v32 = vadd.f32 %v4787_v47, %v4405_v13  ;;  %v4406_v46 = vadd.f32 %v4377_v5, %v4342_v54  ;;  %v4118_v30 = vadd.f32 %v4088_v34, %v3892_v15  ;;  %v4343_v52 = vadd.f32 %v4312_v42, %v4117_v29  ;;  %v4792_v54 = vld [vmem:[%s4913_s10 + $0x58] sm:$0xff]  ;;  %v4794_v47 = vld [vmem:[%s4913_s10 + $0x68] sm:$0xff] }
 0x4b7   : > { %v4092_v25 = vpop.f32.mrf.mxu0  ;;  %v4314_v27 = vpop.f32.mrf.mxu1  ;;  %v3672_v37 = vadd.f32 %v7717_v26, %v3446_v8 }
 0x4b8   : > { %4437 = vst [vmem:[%s7742_s23 + $0x30] sm:$0xff] %v4421_v32  ;;  %v4422_v38 = vadd.f32 %v4788_v11, %v4406_v46  ;;  %v4407_v10 = vadd.f32 %v4382_v61, %v4343_v52  ;;  %v4119_v19 = vadd.f32 %v4092_v25, %v3893_v41  ;;  %v4344_v43 = vadd.f32 %v4314_v27, %v4118_v30  ;;  %v4397_v42 = vpop.permute.xlu0 %4396  ;;  %v4795_v52 = vld [vmem:[%s4913_s10 + $0x70] sm:$0xff] }
 0x4b9   : > { %v4094_v33 = vpop.f32.mrf.mxu0  ;;  %v4318_v17 = vpop.f32.mrf.mxu1  ;;  %v3898_v51 = vadd.f32 %v7725_v58, %v3672_v37 }
 0x4ba   : > { %4438 = vst [vmem:[%s7742_s23 + $0x38] sm:$0xff] %v4422_v38  ;;  %v4423_v5 = vadd.f32 %v4789_v22, %v4407_v10  ;;  %v4408_v45 = vadd.f32 %v4382_v61, %v4344_v43  ;;  %v4120_v12 = vadd.f32 %v4094_v33, %v3894_v0  ;;  %v4345_v50 = vadd.f32 %v4318_v17, %v4119_v19 }
 0x4bb   : > { %v4098_v36 = vpop.f32.mrf.mxu0  ;;  %v4320_v6 = vpop.f32.mrf.mxu1 }
 0x4bc   : > { %4439 = vst [vmem:[%s7742_s23 + $0x40] sm:$0xff] %v4423_v5  ;;  %v4424_v62 = vadd.f32 %v4790_v39, %v4408_v45  ;;  %v4409_v14 = vadd.f32 %v4387_v9, %v4345_v50  ;;  %v4121_v60 = vadd.f32 %v4098_v36, %v3895_v7  ;;  %v4346_v24 = vadd.f32 %v4320_v6, %v4120_v12 }
 0x4bd   : > { %v4100_v15 = vpop.f32.mrf.mxu0  ;;  %v4324_v23 = vpop.f32.mrf.mxu1 }
 0x4be   : > { %4440 = vst [vmem:[%s7742_s23 + $0x48] sm:$0xff] %v4424_v62  ;;  %v4425_v49 = vadd.f32 %v4791_v31, %v4409_v14  ;;  %v4410_v26 = vadd.f32 %v4387_v9, %v4346_v24  ;;  %v4122_v1 = vadd.f32 %v4100_v15, %v3896_v53  ;;  %v4347_v40 = vadd.f32 %v4324_v23, %v4121_v60 }
 0x4bf   : > { %v4104_v13 = vpop.f32.mrf.mxu0  ;;  %v4326_v29 = vpop.f32.mrf.mxu1 }
 0x4c0   : > { %4441 = vst [vmem:[%s7742_s23 + $0x50] sm:$0xff] %v4425_v49  ;;  %v4426_v18 = vadd.f32 %v4792_v54, %v4410_v26  ;;  %v4411_v44 = vadd.f32 %v4392_v48, %v4347_v40  ;;  %v4123_v2 = vadd.f32 %v4104_v13, %v3897_v35  ;;  %v4348_v3 = vadd.f32 %v4326_v29, %v4122_v1 }
 0x4c1   : > { %v4106_v63 = vpop.f32.mrf.mxu0  ;;  %v4330_v4 = vpop.f32.mrf.mxu1 }
 0x4c2   : > { %4442 = vst [vmem:[%s7742_s23 + $0x58] sm:$0xff] %v4426_v18  ;;  %v4427_v41 = vadd.f32 %v4793_v21, %v4411_v44  ;;  %v4412_v58 = vadd.f32 %v4392_v48, %v4348_v3  ;;  %v4124_v56 = vadd.f32 %v4106_v63, %v3898_v51  ;;  %v4349_v34 = vadd.f32 %v4330_v4, %v4123_v2 }
 0x4c3   : > { %v4332_v61 = vpop.f32.mrf.mxu1 }
 0x4c4   : > { %4443 = vst [vmem:[%s7742_s23 + $0x60] sm:$0xff] %v4427_v41  ;;  %v4428_v32 = vadd.f32 %v4794_v47, %v4412_v58  ;;  %v4413_v46 = vadd.f32 %v4397_v42, %v4349_v34  ;;  %v4350_v30 = vadd.f32 %v4332_v61, %v4124_v56 }
 0x4c6   : > { %4444 = vst [vmem:[%s7742_s23 + $0x68] sm:$0xff] %v4428_v32  ;;  %v4429_v57 = vadd.f32 %v4795_v52, %v4413_v46  ;;  %v4414_v20 = vadd.f32 %v4397_v42, %v4350_v30 }
 0x4c8   : > { %4445 = vst [vmem:[%s7742_s23 + $0x70] sm:$0xff] %v4429_v57  ;;  %v4430_v0 = vadd.f32 %v4796_v28, %v4414_v20 }
 0x4ca   : > { %4446 = vst [vmem:[%s7742_s23 + $0x78] sm:$0xff] %v4430_v0 }
 0x4cb PF: > { %s17_s21 = sadd.s32 1, %s4833_s21  }
 0x4cc   : > { %p14_p1 = scmp.ge.s32.totalorder %s17_s21, 4  }
 0x4ce   :  { %16 = sbr.rel (!%p14_p1) target bundleno = 1 (0x1), region = 102 }
 0x4d3   :  { %4468 = vsyncpa [#allocation3], 1 }
 0x4d4   :  { %4470 = vsyncpa [#allocation3 + $0x1], 1 }

</bundles_post_ra>
